<compile_context>
chip_gen: v7x
topology: tpu7x:2x2x1
jax: 0.10.0
libtpu: 0.0.40
codegen_flags: <defaults>
</compile_context>

<pallas_src>
import functools

import jax
import jax.numpy as jnp
from jax.experimental import pallas as pl
from jax.experimental.pallas import tpu as pltpu


# ----------------------------------------------------------------------------
# Single-layer unidirectional LSTM — one pallas_call, in-kernel time loop.
# ----------------------------------------------------------------------------
def _lstm_kernel(x_ref, wih_ref, whh_ref, b_ref, out_ref, gx_scr, h_scr,
                 *, B, T, H):
    # x_ref : (B, T, Din)   out_ref: (B, T, H)
    # wih_ref: (Din, 4H)    whh_ref: (H, 4H)    b_ref: (1, 4H)  (b_ih + b_hh)
    # gx_scr: (T, B, 4H)    time-major input-gate pre-activations (VMEM only)
    # h_scr : (T, B, H)     time-major hidden states (VMEM only)
    wih = wih_ref[...]
    bias = b_ref[...]                                      # (1, 4H)

    # Hoisted input projection: off the recurrent critical path.
    for b in range(B):                                     # static unroll
        gx_scr[:, b, :] = (
            jnp.dot(x_ref[b], wih, preferred_element_type=jnp.float32) + bias)

    whh = whh_ref[...]

    def step(t, carry):
        h, c = carry                                       # (B, H) f32 each
        gates = gx_scr[t] + jnp.dot(h, whh, preferred_element_type=jnp.float32)
        i_g = jax.nn.sigmoid(gates[:, 0 * H:1 * H])        # PyTorch gate order
        f_g = jax.nn.sigmoid(gates[:, 1 * H:2 * H])
        g_g = jnp.tanh(gates[:, 2 * H:3 * H])
        o_g = jax.nn.sigmoid(gates[:, 3 * H:4 * H])
        c = f_g * c + i_g * g_g
        h = o_g * jnp.tanh(c)
        h_scr[t] = h
        return h, c

    init = (jnp.zeros((B, H), jnp.float32), jnp.zeros((B, H), jnp.float32))
    jax.lax.fori_loop(0, T, step, init, unroll=True)

    for b in range(B):                                     # static unroll
        out_ref[b] = h_scr[:, b, :].astype(out_ref.dtype)


def lstm_forward(x_btd, w_ih, w_hh, b_ih, b_hh):
    """x_btd: (B, T, Din) batch-first.  w_ih: (4H, Din), w_hh: (4H, H)."""
    B, T, Din = x_btd.shape
    H = w_hh.shape[1]

    wih_t = jnp.transpose(w_ih)                            # (Din, 4H)
    whh_t = jnp.transpose(w_hh)                            # (H, 4H)
    bias = (b_ih + b_hh)[None, :]                          # (1, 4H) pre-added

    kernel = functools.partial(_lstm_kernel, B=B, T=T, H=H)
    return pl.pallas_call(
        kernel,
        out_shape=jax.ShapeDtypeStruct((B, T, H), x_btd.dtype),
        grid_spec=pltpu.PrefetchScalarGridSpec(
            num_scalar_prefetch=0,
            grid=(1,),
            in_specs=[
                pl.BlockSpec((B, T, Din), lambda i: (0, 0, 0)),
                pl.BlockSpec((Din, 4 * H), lambda i: (0, 0)),
                pl.BlockSpec((H, 4 * H), lambda i: (0, 0)),
                pl.BlockSpec((1, 4 * H), lambda i: (0, 0)),
            ],
            out_specs=pl.BlockSpec((B, T, H), lambda i: (0, 0, 0)),
            scratch_shapes=[pltpu.VMEM((T, B, 4 * H), jnp.float32),
                            pltpu.VMEM((T, B, H), jnp.float32)],
        ),
        compiler_params=pltpu.CompilerParams(
            dimension_semantics=("arbitrary",)),           # recurrence inside
    )(x_btd, wih_t, whh_t, bias)


# ----------------------------------------------------------------------------
# Joint network with fused projections:
#   out = clsProj(tanh(projTr(bottle(h_tr))[:,:,None,:] + projPr(h_pr)[:,None,:,:]))
# ----------------------------------------------------------------------------
def _joint_kernel(x_ref, y_ref, wc_ref, bc_ref, wp_ref, bp_ref,
                  wcls_ref, bcls_ref, o_ref):
    # x_ref: (1, T, Htr)   y_ref: (1, U, Hpr)
    # wc_ref: (Htr, 256)  composed bottle∘projTr weight   bc_ref: (1, 256)
    # wp_ref: (Hpr, 256)                                   bp_ref: (1, 256)
    # wcls_ref: (256, Vpad) zero-padded                    bcls_ref: (1, Vpad)
    # o_ref: (1, T*U, Vpad)  lane-dense output
    x = x_ref[0]                                           # (T, Htr)
    y = y_ref[0]                                           # (U, Hpr)
    xp = jnp.dot(x, wc_ref[...], preferred_element_type=jnp.float32) + bc_ref[...]
    yp = jnp.dot(y, wp_ref[...], preferred_element_type=jnp.float32) + bp_ref[...]
    T, D = xp.shape
    U = yp.shape[0]
    z = jnp.tanh(xp[:, None, :] + yp[None, :, :])          # (T, U, 256)
    out = (jnp.dot(z.reshape(T * U, D), wcls_ref[...],
                   preferred_element_type=jnp.float32) + bcls_ref[...])
    o_ref[0] = out.astype(o_ref.dtype)


def joint_forward(h_tr, h_pr, w_bottle, b_bottle, w_projTr, b_projTr,
                  w_projPr, b_projPr, w_cls, b_cls):
    B, T, Htr = h_tr.shape
    U, Hpr = h_pr.shape[1], h_pr.shape[2]
    D = w_projTr.shape[0]                                  # 256
    V = w_cls.shape[0]
    Vpad = ((V + 127) // 128) * 128                        # lane-dense store

    # Compose bottle -> projTr offline (eval: dropout identity, no nonlinearity).
    wc = jnp.transpose(jnp.dot(w_projTr, w_bottle))        # (Htr, 256)
    bc = (jnp.dot(w_projTr, b_bottle) + b_projTr)[None, :]  # (1, 256)
    wp = jnp.transpose(w_projPr)                           # (Hpr, 256)
    bp = b_projPr[None, :]                                 # (1, 256)
    wcls = jnp.zeros((D, Vpad), jnp.float32).at[:, :V].set(jnp.transpose(w_cls))
    bcls = jnp.zeros((1, Vpad), jnp.float32).at[:, :V].set(b_cls[None, :])

    out = pl.pallas_call(
        _joint_kernel,
        out_shape=jax.ShapeDtypeStruct((B, T * U, Vpad), h_tr.dtype),
        grid_spec=pltpu.PrefetchScalarGridSpec(
            num_scalar_prefetch=0,
            grid=(B,),
            in_specs=[
                pl.BlockSpec((1, T, Htr), lambda b: (b, 0, 0)),
                pl.BlockSpec((1, U, Hpr), lambda b: (b, 0, 0)),
                pl.BlockSpec((Htr, D), lambda b: (0, 0)),
                pl.BlockSpec((1, D), lambda b: (0, 0)),
                pl.BlockSpec((Hpr, D), lambda b: (0, 0)),
                pl.BlockSpec((1, D), lambda b: (0, 0)),
                pl.BlockSpec((D, Vpad), lambda b: (0, 0)),
                pl.BlockSpec((1, Vpad), lambda b: (0, 0)),
            ],
            out_specs=pl.BlockSpec((1, T * U, Vpad), lambda b: (b, 0, 0)),
        ),
        compiler_params=pltpu.CompilerParams(
            dimension_semantics=("parallel",)),            # batch across cores
    )(h_tr, h_pr, wc, bc, wp, bp, wcls, bcls)

    return out[:, :, :V].reshape(B, T, U, V)


# ----------------------------------------------------------------------------
# Full RNNT forward (eval mode: nn.Dropout == identity)
# ----------------------------------------------------------------------------
def rnnt_forward(params, speech, tokens):
    h_tr = lstm_forward(speech, *params["tnet"])           # (B, T, hid_tr)
    emb = params["pr_emb"][tokens]                         # embedding gather (glue)
    h_pr = lstm_forward(emb, *params["pnet"])              # (B, U, hid_pr)
    return joint_forward(h_tr, h_pr,
                         params["bottle_w"], params["bottle_b"],
                         params["projTr_w"], params["projTr_b"],
                         params["projPr_w"], params["projPr_b"],
                         params["cls_w"], params["cls_b"])  # (B, T, U, vocab)


rnnt_forward_jit = jax.jit(rnnt_forward)


# ----------------------------------------------------------------------------
# Pure-JAX reference (mirrors the PyTorch module in eval mode)
# ----------------------------------------------------------------------------
def _ref_lstm(x, w_ih, w_hh, b_ih, b_hh):
    B, T, _ = x.shape
    H = w_hh.shape[1]

    def step(carry, x_t):
        h, c = carry
        gates = x_t @ w_ih.T + b_ih + h @ w_hh.T + b_hh
        i, f, g, o = jnp.split(gates, 4, axis=-1)
        i = jax.nn.sigmoid(i); f = jax.nn.sigmoid(f)
        g = jnp.tanh(g); o = jax.nn.sigmoid(o)
        c = f * c + i * g
        h = o * jnp.tanh(c)
        return (h, c), h

    h0 = jnp.zeros((B, H), jnp.float32)
    (_, _), hs = jax.lax.scan(step, (h0, h0), jnp.transpose(x, (1, 0, 2)))
    return jnp.transpose(hs, (1, 0, 2))


def rnnt_reference(params, speech, tokens):
    h_tr = _ref_lstm(speech, *params["tnet"])
    x = h_tr @ params["bottle_w"].T + params["bottle_b"]
    emb = params["pr_emb"][tokens]
    h_pr = _ref_lstm(emb, *params["pnet"])
    xp = x @ params["projTr_w"].T + params["projTr_b"]
    yp = h_pr @ params["projPr_w"].T + params["projPr_b"]
    z = jnp.tanh(xp[:, :, None, :] + yp[:, None, :, :])
    return z @ params["cls_w"].T + params["cls_b"]


# ----------------------------------------------------------------------------
def init_params(key, in_dim, hid_tr, hid_pr, vocab, emb_dim=10):
    ks = jax.random.split(key, 16)

    def w(k, shape, fan_in):
        return (jax.random.normal(k, shape, jnp.float32) / jnp.sqrt(fan_in)).astype(jnp.float32)

    return {
        # tNet: LstmEncoder(1, in_dim, hid_tr, unidirectional)
        "tnet": (w(ks[0], (4 * hid_tr, in_dim), in_dim),
                 w(ks[1], (4 * hid_tr, hid_tr), hid_tr),
                 w(ks[2], (4 * hid_tr,), hid_tr),
                 w(ks[3], (4 * hid_tr,), hid_tr)),
        # bottle: Linear(hid_tr, 768)
        "bottle_w": w(ks[4], (768, hid_tr), hid_tr),
        "bottle_b": w(ks[5], (768,), hid_tr),
        # prEmb: Embedding(vocab, 10)
        "pr_emb": w(ks[6], (vocab, emb_dim), 1.0),
        # pNet: LstmEncoder(1, 10, hid_pr, unidirectional)
        "pnet": (w(ks[7], (4 * hid_pr, emb_dim), emb_dim),
                 w(ks[8], (4 * hid_pr, hid_pr), hid_pr),
                 w(ks[9], (4 * hid_pr,), hid_pr),
                 w(ks[10], (4 * hid_pr,), hid_pr)),
        # projTr: Linear(768, 256); projPr: Linear(hid_pr, 256)
        "projTr_w": w(ks[11], (256, 768), 768),
        "projTr_b": w(ks[12], (256,), 768),
        "projPr_w": w(ks[13], (256, hid_pr), hid_pr),
        "projPr_b": w(ks[14], (256,), hid_pr),
        # clsProj: Linear(256, vocab)
        "cls_w": w(ks[15], (vocab, 256), 256),
        "cls_b": jnp.zeros((vocab,), jnp.float32),
    }


if __name__ == "__main__":
    B, T, U = 2, 8, 8
    in_dim, hid_tr, hid_pr, vocab = 16, 32, 32, 40

    key = jax.random.PRNGKey(0)
    k_par, k_sp, k_tok = jax.random.split(key, 3)

    params = init_params(k_par, in_dim, hid_tr, hid_pr, vocab)
    speech = jax.random.normal(k_sp, (B, T, in_dim), jnp.float32)
    tokens = jax.random.randint(k_tok, (B, U), 0, vocab, jnp.int32)

    pred = rnnt_forward_jit(params, speech, tokens)
    pred = jax.block_until_ready(pred)

    assert pred.shape == (B, T, U, vocab), pred.shape
    assert pred.dtype == jnp.float32
    assert bool(jnp.all(jnp.isfinite(pred)))

    ref = jax.block_until_ready(rnnt_reference(params, speech, tokens))
    assert bool(jnp.allclose(pred, ref, rtol=2e-2, atol=2e-2)), (
        float(jnp.max(jnp.abs(pred - ref))))

    print("KERNEL_OK")
</pallas_src>

<mosaic_0001>
module attributes {stable_mosaic.version = 11 : i64} {
  func.func @_lstm_kernel(%arg0: i32, %arg1: memref<2x8x10xf32, #tpu.memory_space<vmem>>, %arg2: memref<10x128xf32, #tpu.memory_space<vmem>>, %arg3: memref<32x128xf32, #tpu.memory_space<vmem>>, %arg4: memref<1x128xf32, #tpu.memory_space<vmem>>, %arg5: memref<2x8x32xf32, #tpu.memory_space<vmem>>, %arg6: memref<8x2x128xf32, #tpu.memory_space<vmem>>, %arg7: memref<8x2x32xf32, #tpu.memory_space<vmem>>) attributes {dimension_semantics = [#tpu.dimension_semantics<arbitrary>], iteration_bounds = array<i64: 1>, scalar_prefetch = 0 : i64, scratch_operands = 2 : i64, tpu.core_type = #tpu.core_type<tc>, window_params = [{pipeline_mode = #tpu.pipeline_mode<synchronous>, transform_indices = @transform_0, window_bounds = array<i64: 2, 8, 10>}, {pipeline_mode = #tpu.pipeline_mode<synchronous>, transform_indices = @transform_1, window_bounds = array<i64: 10, 128>}, {pipeline_mode = #tpu.pipeline_mode<synchronous>, transform_indices = @transform_2, window_bounds = array<i64: 32, 128>}, {pipeline_mode = #tpu.pipeline_mode<synchronous>, transform_indices = @transform_3, window_bounds = array<i64: 1, 128>}, {pipeline_mode = #tpu.pipeline_mode<synchronous>, transform_indices = @transform_4, window_bounds = array<i64: 2, 8, 32>}]} {
    %c0 = arith.constant 0 : index
    %c0_0 = arith.constant 0 : index
    %0 = vector.load %arg2[%c0, %c0_0] : memref<10x128xf32, #tpu.memory_space<vmem>>, vector<10x128xf32>
    %c0_1 = arith.constant 0 : index
    %c0_2 = arith.constant 0 : index
    %1 = vector.load %arg4[%c0_1, %c0_2] : memref<1x128xf32, #tpu.memory_space<vmem>>, vector<1x128xf32>
    %c0_3 = arith.constant 0 : index
    %c0_4 = arith.constant 0 : index
    %c0_5 = arith.constant 0 : index
    %2 = vector.load %arg1[%c0_3, %c0_4, %c0_5] : memref<2x8x10xf32, #tpu.memory_space<vmem>>, vector<1x8x10xf32>
    %3 = vector.shape_cast %2 : vector<1x8x10xf32> to vector<8x10xf32>
    %cst = arith.constant dense<0.000000e+00> : vector<8x128xf32>
    %4 = tpu.matmul %3, %0, %cst {dimension_numbers = #tpu.dot_dimension_numbers<[1], [0], [0], [1], [0, 0, 1, 1], [], []>} : vector<8x10xf32>, vector<10x128xf32>, vector<8x128xf32> -> vector<8x128xf32>
    %5 = vector.broadcast %1 : vector<1x128xf32> to vector<8x128xf32>
    %6 = arith.addf %4, %5 : vector<8x128xf32>
    %c0_6 = arith.constant 0 : index
    %c0_7 = arith.constant 0 : index
    %c0_8 = arith.constant 0 : index
    %7 = vector.load %arg6[%c0_6, %c0_7, %c0_8] : memref<8x2x128xf32, #tpu.memory_space<vmem>>, vector<8x1x128xf32>
    %8 = vector.shape_cast %7 : vector<8x1x128xf32> to vector<8x128xf32>
    %9 = vector.shape_cast %6 : vector<8x128xf32> to vector<8x1x128xf32>
    tpu.vector_store %arg6[%c0_6, %c0_7, %c0_8], %9 {strides = array<i32>} : memref<8x2x128xf32, #tpu.memory_space<vmem>>, vector<8x1x128xf32>,
    %c1 = arith.constant 1 : index
    %c0_9 = arith.constant 0 : index
    %c0_10 = arith.constant 0 : index
    %10 = vector.load %arg1[%c1, %c0_9, %c0_10] : memref<2x8x10xf32, #tpu.memory_space<vmem>>, vector<1x8x10xf32>
    %11 = vector.shape_cast %10 : vector<1x8x10xf32> to vector<8x10xf32>
    %cst_11 = arith.constant dense<0.000000e+00> : vector<8x128xf32>
    %12 = tpu.matmul %11, %0, %cst_11 {dimension_numbers = #tpu.dot_dimension_numbers<[1], [0], [0], [1], [0, 0, 1, 1], [], []>} : vector<8x10xf32>, vector<10x128xf32>, vector<8x128xf32> -> vector<8x128xf32>
    %13 = vector.broadcast %1 : vector<1x128xf32> to vector<8x128xf32>
    %14 = arith.addf %12, %13 : vector<8x128xf32>
    %c0_12 = arith.constant 0 : index
    %c1_13 = arith.constant 1 : index
    %c0_14 = arith.constant 0 : index
    %15 = vector.load %arg6[%c0_12, %c1_13, %c0_14] : memref<8x2x128xf32, #tpu.memory_space<vmem>>, vector<8x1x128xf32>
    %16 = vector.shape_cast %15 : vector<8x1x128xf32> to vector<8x128xf32>
    %17 = vector.shape_cast %14 : vector<8x128xf32> to vector<8x1x128xf32>
    tpu.vector_store %arg6[%c0_12, %c1_13, %c0_14], %17 {strides = array<i32>} : memref<8x2x128xf32, #tpu.memory_space<vmem>>, vector<8x1x128xf32>,
    %c0_15 = arith.constant 0 : index
    %c0_16 = arith.constant 0 : index
    %18 = vector.load %arg3[%c0_15, %c0_16] : memref<32x128xf32, #tpu.memory_space<vmem>>, vector<32x128xf32>
    %cst_17 = arith.constant 0.000000e+00 : f32
    %19 = vector.broadcast %cst_17 : f32 to vector<2x32xf32>
    %cst_18 = arith.constant 0.000000e+00 : f32
    %20 = vector.broadcast %cst_18 : f32 to vector<2x32xf32>
    %c0_i32 = arith.constant 0 : i32
    %21 = arith.index_cast %c0_i32 : i32 to index
    %c0_19 = arith.constant 0 : index
    %c0_20 = arith.constant 0 : index
    %22 = vector.load %arg6[%21, %c0_19, %c0_20] : memref<8x2x128xf32, #tpu.memory_space<vmem>>, vector<1x2x128xf32>
    %23 = vector.shape_cast %22 : vector<1x2x128xf32> to vector<2x128xf32>
    %cst_21 = arith.constant dense<0.000000e+00> : vector<2x128xf32>
    %24 = tpu.matmul %19, %18, %cst_21 {dimension_numbers = #tpu.dot_dimension_numbers<[1], [0], [0], [1], [0, 0, 1, 1], [], []>} : vector<2x32xf32>, vector<32x128xf32>, vector<2x128xf32> -> vector<2x128xf32>
    %25 = arith.addf %23, %24 : vector<2x128xf32>
    %26 = vector.extract_strided_slice %25 {offsets = [0, 0], sizes = [2, 32], strides = [1, 1]} : vector<2x128xf32> to vector<2x32xf32>
    %27 = arith.negf %26 : vector<2x32xf32>
    %28 = math.exp %27 : vector<2x32xf32>
    %cst_22 = arith.constant 1.000000e+00 : f32
    %29 = vector.broadcast %cst_22 : f32 to vector<2x32xf32>
    %30 = arith.addf %29, %28 : vector<2x32xf32>
    %31 = arith.divf %29, %30 : vector<2x32xf32>
    %32 = vector.extract_strided_slice %25 {offsets = [0, 32], sizes = [2, 32], strides = [1, 1]} : vector<2x128xf32> to vector<2x32xf32>
    %33 = arith.negf %32 : vector<2x32xf32>
    %34 = math.exp %33 : vector<2x32xf32>
    %cst_23 = arith.constant 1.000000e+00 : f32
    %35 = vector.broadcast %cst_23 : f32 to vector<2x32xf32>
    %36 = arith.addf %35, %34 : vector<2x32xf32>
    %37 = arith.divf %35, %36 : vector<2x32xf32>
    %38 = vector.extract_strided_slice %25 {offsets = [0, 64], sizes = [2, 32], strides = [1, 1]} : vector<2x128xf32> to vector<2x32xf32>
    %39 = math.tanh %38 : vector<2x32xf32>
    %40 = vector.extract_strided_slice %25 {offsets = [0, 96], sizes = [2, 32], strides = [1, 1]} : vector<2x128xf32> to vector<2x32xf32>
    %41 = arith.negf %40 : vector<2x32xf32>
    %42 = math.exp %41 : vector<2x32xf32>
    %cst_24 = arith.constant 1.000000e+00 : f32
    %43 = vector.broadcast %cst_24 : f32 to vector<2x32xf32>
    %44 = arith.addf %43, %42 : vector<2x32xf32>
    %45 = arith.divf %43, %44 : vector<2x32xf32>
    %46 = arith.mulf %37, %20 : vector<2x32xf32>
    %47 = arith.mulf %31, %39 : vector<2x32xf32>
    %48 = arith.addf %46, %47 : vector<2x32xf32>
    %49 = math.tanh %48 : vector<2x32xf32>
    %50 = arith.mulf %45, %49 : vector<2x32xf32>
    %51 = arith.index_cast %c0_i32 : i32 to index
    %c0_25 = arith.constant 0 : index
    %c0_26 = arith.constant 0 : index
    %52 = vector.load %arg7[%51, %c0_25, %c0_26] : memref<8x2x32xf32, #tpu.memory_space<vmem>>, vector<1x2x32xf32>
    %53 = vector.shape_cast %52 : vector<1x2x32xf32> to vector<2x32xf32>
    %54 = vector.shape_cast %50 : vector<2x32xf32> to vector<1x2x32xf32>
    tpu.vector_store %arg7[%51, %c0_25, %c0_26], %54 {strides = array<i32>} : memref<8x2x32xf32, #tpu.memory_space<vmem>>, vector<1x2x32xf32>,
    %c1_i32 = arith.constant 1 : i32
    %55 = arith.index_cast %c1_i32 : i32 to index
    %c0_27 = arith.constant 0 : index
    %c0_28 = arith.constant 0 : index
    %56 = vector.load %arg6[%55, %c0_27, %c0_28] : memref<8x2x128xf32, #tpu.memory_space<vmem>>, vector<1x2x128xf32>
    %57 = vector.shape_cast %56 : vector<1x2x128xf32> to vector<2x128xf32>
    %cst_29 = arith.constant dense<0.000000e+00> : vector<2x128xf32>
    %58 = tpu.matmul %50, %18, %cst_29 {dimension_numbers = #tpu.dot_dimension_numbers<[1], [0], [0], [1], [0, 0, 1, 1], [], []>} : vector<2x32xf32>, vector<32x128xf32>, vector<2x128xf32> -> vector<2x128xf32>
    %59 = arith.addf %57, %58 : vector<2x128xf32>
    %60 = vector.extract_strided_slice %59 {offsets = [0, 0], sizes = [2, 32], strides = [1, 1]} : vector<2x128xf32> to vector<2x32xf32>
    %61 = arith.negf %60 : vector<2x32xf32>
    %62 = math.exp %61 : vector<2x32xf32>
    %cst_30 = arith.constant 1.000000e+00 : f32
    %63 = vector.broadcast %cst_30 : f32 to vector<2x32xf32>
    %64 = arith.addf %63, %62 : vector<2x32xf32>
    %65 = arith.divf %63, %64 : vector<2x32xf32>
    %66 = vector.extract_strided_slice %59 {offsets = [0, 32], sizes = [2, 32], strides = [1, 1]} : vector<2x128xf32> to vector<2x32xf32>
    %67 = arith.negf %66 : vector<2x32xf32>
    %68 = math.exp %67 : vector<2x32xf32>
    %cst_31 = arith.constant 1.000000e+00 : f32
    %69 = vector.broadcast %cst_31 : f32 to vector<2x32xf32>
    %70 = arith.addf %69, %68 : vector<2x32xf32>
    %71 = arith.divf %69, %70 : vector<2x32xf32>
    %72 = vector.extract_strided_slice %59 {offsets = [0, 64], sizes = [2, 32], strides = [1, 1]} : vector<2x128xf32> to vector<2x32xf32>
    %73 = math.tanh %72 : vector<2x32xf32>
    %74 = vector.extract_strided_slice %59 {offsets = [0, 96], sizes = [2, 32], strides = [1, 1]} : vector<2x128xf32> to vector<2x32xf32>
    %75 = arith.negf %74 : vector<2x32xf32>
    %76 = math.exp %75 : vector<2x32xf32>
    %cst_32 = arith.constant 1.000000e+00 : f32
    %77 = vector.broadcast %cst_32 : f32 to vector<2x32xf32>
    %78 = arith.addf %77, %76 : vector<2x32xf32>
    %79 = arith.divf %77, %78 : vector<2x32xf32>
    %80 = arith.mulf %71, %48 : vector<2x32xf32>
    %81 = arith.mulf %65, %73 : vector<2x32xf32>
    %82 = arith.addf %80, %81 : vector<2x32xf32>
    %83 = math.tanh %82 : vector<2x32xf32>
    %84 = arith.mulf %79, %83 : vector<2x32xf32>
    %85 = arith.index_cast %c1_i32 : i32 to index
    %c0_33 = arith.constant 0 : index
    %c0_34 = arith.constant 0 : index
    %86 = vector.load %arg7[%85, %c0_33, %c0_34] : memref<8x2x32xf32, #tpu.memory_space<vmem>>, vector<1x2x32xf32>
    %87 = vector.shape_cast %86 : vector<1x2x32xf32> to vector<2x32xf32>
    %88 = vector.shape_cast %84 : vector<2x32xf32> to vector<1x2x32xf32>
    tpu.vector_store %arg7[%85, %c0_33, %c0_34], %88 {strides = array<i32>} : memref<8x2x32xf32, #tpu.memory_space<vmem>>, vector<1x2x32xf32>,
    %c2_i32 = arith.constant 2 : i32
    %89 = arith.index_cast %c2_i32 : i32 to index
    %c0_35 = arith.constant 0 : index
    %c0_36 = arith.constant 0 : index
    %90 = vector.load %arg6[%89, %c0_35, %c0_36] : memref<8x2x128xf32, #tpu.memory_space<vmem>>, vector<1x2x128xf32>
    %91 = vector.shape_cast %90 : vector<1x2x128xf32> to vector<2x128xf32>
    %cst_37 = arith.constant dense<0.000000e+00> : vector<2x128xf32>
    %92 = tpu.matmul %84, %18, %cst_37 {dimension_numbers = #tpu.dot_dimension_numbers<[1], [0], [0], [1], [0, 0, 1, 1], [], []>} : vector<2x32xf32>, vector<32x128xf32>, vector<2x128xf32> -> vector<2x128xf32>
    %93 = arith.addf %91, %92 : vector<2x128xf32>
    %94 = vector.extract_strided_slice %93 {offsets = [0, 0], sizes = [2, 32], strides = [1, 1]} : vector<2x128xf32> to vector<2x32xf32>
    %95 = arith.negf %94 : vector<2x32xf32>
    %96 = math.exp %95 : vector<2x32xf32>
    %cst_38 = arith.constant 1.000000e+00 : f32
    %97 = vector.broadcast %cst_38 : f32 to vector<2x32xf32>
    %98 = arith.addf %97, %96 : vector<2x32xf32>
    %99 = arith.divf %97, %98 : vector<2x32xf32>
    %100 = vector.extract_strided_slice %93 {offsets = [0, 32], sizes = [2, 32], strides = [1, 1]} : vector<2x128xf32> to vector<2x32xf32>
    %101 = arith.negf %100 : vector<2x32xf32>
    %102 = math.exp %101 : vector<2x32xf32>
    %cst_39 = arith.constant 1.000000e+00 : f32
    %103 = vector.broadcast %cst_39 : f32 to vector<2x32xf32>
    %104 = arith.addf %103, %102 : vector<2x32xf32>
    %105 = arith.divf %103, %104 : vector<2x32xf32>
    %106 = vector.extract_strided_slice %93 {offsets = [0, 64], sizes = [2, 32], strides = [1, 1]} : vector<2x128xf32> to vector<2x32xf32>
    %107 = math.tanh %106 : vector<2x32xf32>
    %108 = vector.extract_strided_slice %93 {offsets = [0, 96], sizes = [2, 32], strides = [1, 1]} : vector<2x128xf32> to vector<2x32xf32>
    %109 = arith.negf %108 : vector<2x32xf32>
    %110 = math.exp %109 : vector<2x32xf32>
    %cst_40 = arith.constant 1.000000e+00 : f32
    %111 = vector.broadcast %cst_40 : f32 to vector<2x32xf32>
    %112 = arith.addf %111, %110 : vector<2x32xf32>
    %113 = arith.divf %111, %112 : vector<2x32xf32>
    %114 = arith.mulf %105, %82 : vector<2x32xf32>
    %115 = arith.mulf %99, %107 : vector<2x32xf32>
    %116 = arith.addf %114, %115 : vector<2x32xf32>
    %117 = math.tanh %116 : vector<2x32xf32>
    %118 = arith.mulf %113, %117 : vector<2x32xf32>
    %119 = arith.index_cast %c2_i32 : i32 to index
    %c0_41 = arith.constant 0 : index
    %c0_42 = arith.constant 0 : index
    %120 = vector.load %arg7[%119, %c0_41, %c0_42] : memref<8x2x32xf32, #tpu.memory_space<vmem>>, vector<1x2x32xf32>
    %121 = vector.shape_cast %120 : vector<1x2x32xf32> to vector<2x32xf32>
    %122 = vector.shape_cast %118 : vector<2x32xf32> to vector<1x2x32xf32>
    tpu.vector_store %arg7[%119, %c0_41, %c0_42], %122 {strides = array<i32>} : memref<8x2x32xf32, #tpu.memory_space<vmem>>, vector<1x2x32xf32>,
    %c3_i32 = arith.constant 3 : i32
    %123 = arith.index_cast %c3_i32 : i32 to index
    %c0_43 = arith.constant 0 : index
    %c0_44 = arith.constant 0 : index
    %124 = vector.load %arg6[%123, %c0_43, %c0_44] : memref<8x2x128xf32, #tpu.memory_space<vmem>>, vector<1x2x128xf32>
    %125 = vector.shape_cast %124 : vector<1x2x128xf32> to vector<2x128xf32>
    %cst_45 = arith.constant dense<0.000000e+00> : vector<2x128xf32>
    %126 = tpu.matmul %118, %18, %cst_45 {dimension_numbers = #tpu.dot_dimension_numbers<[1], [0], [0], [1], [0, 0, 1, 1], [], []>} : vector<2x32xf32>, vector<32x128xf32>, vector<2x128xf32> -> vector<2x128xf32>
    %127 = arith.addf %125, %126 : vector<2x128xf32>
    %128 = vector.extract_strided_slice %127 {offsets = [0, 0], sizes = [2, 32], strides = [1, 1]} : vector<2x128xf32> to vector<2x32xf32>
    %129 = arith.negf %128 : vector<2x32xf32>
    %130 = math.exp %129 : vector<2x32xf32>
    %cst_46 = arith.constant 1.000000e+00 : f32
    %131 = vector.broadcast %cst_46 : f32 to vector<2x32xf32>
    %132 = arith.addf %131, %130 : vector<2x32xf32>
    %133 = arith.divf %131, %132 : vector<2x32xf32>
    %134 = vector.extract_strided_slice %127 {offsets = [0, 32], sizes = [2, 32], strides = [1, 1]} : vector<2x128xf32> to vector<2x32xf32>
    %135 = arith.negf %134 : vector<2x32xf32>
    %136 = math.exp %135 : vector<2x32xf32>
    %cst_47 = arith.constant 1.000000e+00 : f32
    %137 = vector.broadcast %cst_47 : f32 to vector<2x32xf32>
    %138 = arith.addf %137, %136 : vector<2x32xf32>
    %139 = arith.divf %137, %138 : vector<2x32xf32>
    %140 = vector.extract_strided_slice %127 {offsets = [0, 64], sizes = [2, 32], strides = [1, 1]} : vector<2x128xf32> to vector<2x32xf32>
    %141 = math.tanh %140 : vector<2x32xf32>
    %142 = vector.extract_strided_slice %127 {offsets = [0, 96], sizes = [2, 32], strides = [1, 1]} : vector<2x128xf32> to vector<2x32xf32>
    %143 = arith.negf %142 : vector<2x32xf32>
    %144 = math.exp %143 : vector<2x32xf32>
    %cst_48 = arith.constant 1.000000e+00 : f32
    %145 = vector.broadcast %cst_48 : f32 to vector<2x32xf32>
    %146 = arith.addf %145, %144 : vector<2x32xf32>
    %147 = arith.divf %145, %146 : vector<2x32xf32>
    %148 = arith.mulf %139, %116 : vector<2x32xf32>
    %149 = arith.mulf %133, %141 : vector<2x32xf32>
    %150 = arith.addf %148, %149 : vector<2x32xf32>
    %151 = math.tanh %150 : vector<2x32xf32>
    %152 = arith.mulf %147, %151 : vector<2x32xf32>
    %153 = arith.index_cast %c3_i32 : i32 to index
    %c0_49 = arith.constant 0 : index
    %c0_50 = arith.constant 0 : index
    %154 = vector.load %arg7[%153, %c0_49, %c0_50] : memref<8x2x32xf32, #tpu.memory_space<vmem>>, vector<1x2x32xf32>
    %155 = vector.shape_cast %154 : vector<1x2x32xf32> to vector<2x32xf32>
    %156 = vector.shape_cast %152 : vector<2x32xf32> to vector<1x2x32xf32>
    tpu.vector_store %arg7[%153, %c0_49, %c0_50], %156 {strides = array<i32>} : memref<8x2x32xf32, #tpu.memory_space<vmem>>, vector<1x2x32xf32>,
    %c4_i32 = arith.constant 4 : i32
    %157 = arith.index_cast %c4_i32 : i32 to index
    %c0_51 = arith.constant 0 : index
    %c0_52 = arith.constant 0 : index
    %158 = vector.load %arg6[%157, %c0_51, %c0_52] : memref<8x2x128xf32, #tpu.memory_space<vmem>>, vector<1x2x128xf32>
    %159 = vector.shape_cast %158 : vector<1x2x128xf32> to vector<2x128xf32>
    %cst_53 = arith.constant dense<0.000000e+00> : vector<2x128xf32>
    %160 = tpu.matmul %152, %18, %cst_53 {dimension_numbers = #tpu.dot_dimension_numbers<[1], [0], [0], [1], [0, 0, 1, 1], [], []>} : vector<2x32xf32>, vector<32x128xf32>, vector<2x128xf32> -> vector<2x128xf32>
    %161 = arith.addf %159, %160 : vector<2x128xf32>
    %162 = vector.extract_strided_slice %161 {offsets = [0, 0], sizes = [2, 32], strides = [1, 1]} : vector<2x128xf32> to vector<2x32xf32>
    %163 = arith.negf %162 : vector<2x32xf32>
    %164 = math.exp %163 : vector<2x32xf32>
    %cst_54 = arith.constant 1.000000e+00 : f32
    %165 = vector.broadcast %cst_54 : f32 to vector<2x32xf32>
    %166 = arith.addf %165, %164 : vector<2x32xf32>
    %167 = arith.divf %165, %166 : vector<2x32xf32>
    %168 = vector.extract_strided_slice %161 {offsets = [0, 32], sizes = [2, 32], strides = [1, 1]} : vector<2x128xf32> to vector<2x32xf32>
    %169 = arith.negf %168 : vector<2x32xf32>
    %170 = math.exp %169 : vector<2x32xf32>
    %cst_55 = arith.constant 1.000000e+00 : f32
    %171 = vector.broadcast %cst_55 : f32 to vector<2x32xf32>
    %172 = arith.addf %171, %170 : vector<2x32xf32>
    %173 = arith.divf %171, %172 : vector<2x32xf32>
    %174 = vector.extract_strided_slice %161 {offsets = [0, 64], sizes = [2, 32], strides = [1, 1]} : vector<2x128xf32> to vector<2x32xf32>
    %175 = math.tanh %174 : vector<2x32xf32>
    %176 = vector.extract_strided_slice %161 {offsets = [0, 96], sizes = [2, 32], strides = [1, 1]} : vector<2x128xf32> to vector<2x32xf32>
    %177 = arith.negf %176 : vector<2x32xf32>
    %178 = math.exp %177 : vector<2x32xf32>
    %cst_56 = arith.constant 1.000000e+00 : f32
    %179 = vector.broadcast %cst_56 : f32 to vector<2x32xf32>
    %180 = arith.addf %179, %178 : vector<2x32xf32>
    %181 = arith.divf %179, %180 : vector<2x32xf32>
    %182 = arith.mulf %173, %150 : vector<2x32xf32>
    %183 = arith.mulf %167, %175 : vector<2x32xf32>
    %184 = arith.addf %182, %183 : vector<2x32xf32>
    %185 = math.tanh %184 : vector<2x32xf32>
    %186 = arith.mulf %181, %185 : vector<2x32xf32>
    %187 = arith.index_cast %c4_i32 : i32 to index
    %c0_57 = arith.constant 0 : index
    %c0_58 = arith.constant 0 : index
    %188 = vector.load %arg7[%187, %c0_57, %c0_58] : memref<8x2x32xf32, #tpu.memory_space<vmem>>, vector<1x2x32xf32>
    %189 = vector.shape_cast %188 : vector<1x2x32xf32> to vector<2x32xf32>
    %190 = vector.shape_cast %186 : vector<2x32xf32> to vector<1x2x32xf32>
    tpu.vector_store %arg7[%187, %c0_57, %c0_58], %190 {strides = array<i32>} : memref<8x2x32xf32, #tpu.memory_space<vmem>>, vector<1x2x32xf32>,
    %c5_i32 = arith.constant 5 : i32
    %191 = arith.index_cast %c5_i32 : i32 to index
    %c0_59 = arith.constant 0 : index
    %c0_60 = arith.constant 0 : index
    %192 = vector.load %arg6[%191, %c0_59, %c0_60] : memref<8x2x128xf32, #tpu.memory_space<vmem>>, vector<1x2x128xf32>
    %193 = vector.shape_cast %192 : vector<1x2x128xf32> to vector<2x128xf32>
    %cst_61 = arith.constant dense<0.000000e+00> : vector<2x128xf32>
    %194 = tpu.matmul %186, %18, %cst_61 {dimension_numbers = #tpu.dot_dimension_numbers<[1], [0], [0], [1], [0, 0, 1, 1], [], []>} : vector<2x32xf32>, vector<32x128xf32>, vector<2x128xf32> -> vector<2x128xf32>
    %195 = arith.addf %193, %194 : vector<2x128xf32>
    %196 = vector.extract_strided_slice %195 {offsets = [0, 0], sizes = [2, 32], strides = [1, 1]} : vector<2x128xf32> to vector<2x32xf32>
    %197 = arith.negf %196 : vector<2x32xf32>
    %198 = math.exp %197 : vector<2x32xf32>
    %cst_62 = arith.constant 1.000000e+00 : f32
    %199 = vector.broadcast %cst_62 : f32 to vector<2x32xf32>
    %200 = arith.addf %199, %198 : vector<2x32xf32>
    %201 = arith.divf %199, %200 : vector<2x32xf32>
    %202 = vector.extract_strided_slice %195 {offsets = [0, 32], sizes = [2, 32], strides = [1, 1]} : vector<2x128xf32> to vector<2x32xf32>
    %203 = arith.negf %202 : vector<2x32xf32>
    %204 = math.exp %203 : vector<2x32xf32>
    %cst_63 = arith.constant 1.000000e+00 : f32
    %205 = vector.broadcast %cst_63 : f32 to vector<2x32xf32>
    %206 = arith.addf %205, %204 : vector<2x32xf32>
    %207 = arith.divf %205, %206 : vector<2x32xf32>
    %208 = vector.extract_strided_slice %195 {offsets = [0, 64], sizes = [2, 32], strides = [1, 1]} : vector<2x128xf32> to vector<2x32xf32>
    %209 = math.tanh %208 : vector<2x32xf32>
    %210 = vector.extract_strided_slice %195 {offsets = [0, 96], sizes = [2, 32], strides = [1, 1]} : vector<2x128xf32> to vector<2x32xf32>
    %211 = arith.negf %210 : vector<2x32xf32>
    %212 = math.exp %211 : vector<2x32xf32>
    %cst_64 = arith.constant 1.000000e+00 : f32
    %213 = vector.broadcast %cst_64 : f32 to vector<2x32xf32>
    %214 = arith.addf %213, %212 : vector<2x32xf32>
    %215 = arith.divf %213, %214 : vector<2x32xf32>
    %216 = arith.mulf %207, %184 : vector<2x32xf32>
    %217 = arith.mulf %201, %209 : vector<2x32xf32>
    %218 = arith.addf %216, %217 : vector<2x32xf32>
    %219 = math.tanh %218 : vector<2x32xf32>
    %220 = arith.mulf %215, %219 : vector<2x32xf32>
    %221 = arith.index_cast %c5_i32 : i32 to index
    %c0_65 = arith.constant 0 : index
    %c0_66 = arith.constant 0 : index
    %222 = vector.load %arg7[%221, %c0_65, %c0_66] : memref<8x2x32xf32, #tpu.memory_space<vmem>>, vector<1x2x32xf32>
    %223 = vector.shape_cast %222 : vector<1x2x32xf32> to vector<2x32xf32>
    %224 = vector.shape_cast %220 : vector<2x32xf32> to vector<1x2x32xf32>
    tpu.vector_store %arg7[%221, %c0_65, %c0_66], %224 {strides = array<i32>} : memref<8x2x32xf32, #tpu.memory_space<vmem>>, vector<1x2x32xf32>,
    %c6_i32 = arith.constant 6 : i32
    %225 = arith.index_cast %c6_i32 : i32 to index
    %c0_67 = arith.constant 0 : index
    %c0_68 = arith.constant 0 : index
    %226 = vector.load %arg6[%225, %c0_67, %c0_68] : memref<8x2x128xf32, #tpu.memory_space<vmem>>, vector<1x2x128xf32>
    %227 = vector.shape_cast %226 : vector<1x2x128xf32> to vector<2x128xf32>
    %cst_69 = arith.constant dense<0.000000e+00> : vector<2x128xf32>
    %228 = tpu.matmul %220, %18, %cst_69 {dimension_numbers = #tpu.dot_dimension_numbers<[1], [0], [0], [1], [0, 0, 1, 1], [], []>} : vector<2x32xf32>, vector<32x128xf32>, vector<2x128xf32> -> vector<2x128xf32>
    %229 = arith.addf %227, %228 : vector<2x128xf32>
    %230 = vector.extract_strided_slice %229 {offsets = [0, 0], sizes = [2, 32], strides = [1, 1]} : vector<2x128xf32> to vector<2x32xf32>
    %231 = arith.negf %230 : vector<2x32xf32>
    %232 = math.exp %231 : vector<2x32xf32>
    %cst_70 = arith.constant 1.000000e+00 : f32
    %233 = vector.broadcast %cst_70 : f32 to vector<2x32xf32>
    %234 = arith.addf %233, %232 : vector<2x32xf32>
    %235 = arith.divf %233, %234 : vector<2x32xf32>
    %236 = vector.extract_strided_slice %229 {offsets = [0, 32], sizes = [2, 32], strides = [1, 1]} : vector<2x128xf32> to vector<2x32xf32>
    %237 = arith.negf %236 : vector<2x32xf32>
    %238 = math.exp %237 : vector<2x32xf32>
    %cst_71 = arith.constant 1.000000e+00 : f32
    %239 = vector.broadcast %cst_71 : f32 to vector<2x32xf32>
    %240 = arith.addf %239, %238 : vector<2x32xf32>
    %241 = arith.divf %239, %240 : vector<2x32xf32>
    %242 = vector.extract_strided_slice %229 {offsets = [0, 64], sizes = [2, 32], strides = [1, 1]} : vector<2x128xf32> to vector<2x32xf32>
    %243 = math.tanh %242 : vector<2x32xf32>
    %244 = vector.extract_strided_slice %229 {offsets = [0, 96], sizes = [2, 32], strides = [1, 1]} : vector<2x128xf32> to vector<2x32xf32>
    %245 = arith.negf %244 : vector<2x32xf32>
    %246 = math.exp %245 : vector<2x32xf32>
    %cst_72 = arith.constant 1.000000e+00 : f32
    %247 = vector.broadcast %cst_72 : f32 to vector<2x32xf32>
    %248 = arith.addf %247, %246 : vector<2x32xf32>
    %249 = arith.divf %247, %248 : vector<2x32xf32>
    %250 = arith.mulf %241, %218 : vector<2x32xf32>
    %251 = arith.mulf %235, %243 : vector<2x32xf32>
    %252 = arith.addf %250, %251 : vector<2x32xf32>
    %253 = math.tanh %252 : vector<2x32xf32>
    %254 = arith.mulf %249, %253 : vector<2x32xf32>
    %255 = arith.index_cast %c6_i32 : i32 to index
    %c0_73 = arith.constant 0 : index
    %c0_74 = arith.constant 0 : index
    %256 = vector.load %arg7[%255, %c0_73, %c0_74] : memref<8x2x32xf32, #tpu.memory_space<vmem>>, vector<1x2x32xf32>
    %257 = vector.shape_cast %256 : vector<1x2x32xf32> to vector<2x32xf32>
    %258 = vector.shape_cast %254 : vector<2x32xf32> to vector<1x2x32xf32>
    tpu.vector_store %arg7[%255, %c0_73, %c0_74], %258 {strides = array<i32>} : memref<8x2x32xf32, #tpu.memory_space<vmem>>, vector<1x2x32xf32>,
    %c7_i32 = arith.constant 7 : i32
    %259 = arith.index_cast %c7_i32 : i32 to index
    %c0_75 = arith.constant 0 : index
    %c0_76 = arith.constant 0 : index
    %260 = vector.load %arg6[%259, %c0_75, %c0_76] : memref<8x2x128xf32, #tpu.memory_space<vmem>>, vector<1x2x128xf32>
    %261 = vector.shape_cast %260 : vector<1x2x128xf32> to vector<2x128xf32>
    %cst_77 = arith.constant dense<0.000000e+00> : vector<2x128xf32>
    %262 = tpu.matmul %254, %18, %cst_77 {dimension_numbers = #tpu.dot_dimension_numbers<[1], [0], [0], [1], [0, 0, 1, 1], [], []>} : vector<2x32xf32>, vector<32x128xf32>, vector<2x128xf32> -> vector<2x128xf32>
    %263 = arith.addf %261, %262 : vector<2x128xf32>
    %264 = vector.extract_strided_slice %263 {offsets = [0, 0], sizes = [2, 32], strides = [1, 1]} : vector<2x128xf32> to vector<2x32xf32>
    %265 = arith.negf %264 : vector<2x32xf32>
    %266 = math.exp %265 : vector<2x32xf32>
    %cst_78 = arith.constant 1.000000e+00 : f32
    %267 = vector.broadcast %cst_78 : f32 to vector<2x32xf32>
    %268 = arith.addf %267, %266 : vector<2x32xf32>
    %269 = arith.divf %267, %268 : vector<2x32xf32>
    %270 = vector.extract_strided_slice %263 {offsets = [0, 32], sizes = [2, 32], strides = [1, 1]} : vector<2x128xf32> to vector<2x32xf32>
    %271 = arith.negf %270 : vector<2x32xf32>
    %272 = math.exp %271 : vector<2x32xf32>
    %cst_79 = arith.constant 1.000000e+00 : f32
    %273 = vector.broadcast %cst_79 : f32 to vector<2x32xf32>
    %274 = arith.addf %273, %272 : vector<2x32xf32>
    %275 = arith.divf %273, %274 : vector<2x32xf32>
    %276 = vector.extract_strided_slice %263 {offsets = [0, 64], sizes = [2, 32], strides = [1, 1]} : vector<2x128xf32> to vector<2x32xf32>
    %277 = math.tanh %276 : vector<2x32xf32>
    %278 = vector.extract_strided_slice %263 {offsets = [0, 96], sizes = [2, 32], strides = [1, 1]} : vector<2x128xf32> to vector<2x32xf32>
    %279 = arith.negf %278 : vector<2x32xf32>
    %280 = math.exp %279 : vector<2x32xf32>
    %cst_80 = arith.constant 1.000000e+00 : f32
    %281 = vector.broadcast %cst_80 : f32 to vector<2x32xf32>
    %282 = arith.addf %281, %280 : vector<2x32xf32>
    %283 = arith.divf %281, %282 : vector<2x32xf32>
    %284 = arith.mulf %275, %252 : vector<2x32xf32>
    %285 = arith.mulf %269, %277 : vector<2x32xf32>
    %286 = arith.addf %284, %285 : vector<2x32xf32>
    %287 = math.tanh %286 : vector<2x32xf32>
    %288 = arith.mulf %283, %287 : vector<2x32xf32>
    %289 = arith.index_cast %c7_i32 : i32 to index
    %c0_81 = arith.constant 0 : index
    %c0_82 = arith.constant 0 : index
    %290 = vector.load %arg7[%289, %c0_81, %c0_82] : memref<8x2x32xf32, #tpu.memory_space<vmem>>, vector<1x2x32xf32>
    %291 = vector.shape_cast %290 : vector<1x2x32xf32> to vector<2x32xf32>
    %292 = vector.shape_cast %288 : vector<2x32xf32> to vector<1x2x32xf32>
    tpu.vector_store %arg7[%289, %c0_81, %c0_82], %292 {strides = array<i32>} : memref<8x2x32xf32, #tpu.memory_space<vmem>>, vector<1x2x32xf32>,
    %c8_i32 = arith.constant 8 : i32
    %c0_83 = arith.constant 0 : index
    %c0_84 = arith.constant 0 : index
    %c0_85 = arith.constant 0 : index
    %293 = vector.load %arg7[%c0_83, %c0_84, %c0_85] : memref<8x2x32xf32, #tpu.memory_space<vmem>>, vector<8x1x32xf32>
    %294 = vector.shape_cast %293 : vector<8x1x32xf32> to vector<8x32xf32>
    %c0_86 = arith.constant 0 : index
    %c0_87 = arith.constant 0 : index
    %c0_88 = arith.constant 0 : index
    %295 = vector.load %arg5[%c0_86, %c0_87, %c0_88] : memref<2x8x32xf32, #tpu.memory_space<vmem>>, vector<1x8x32xf32>
    %296 = vector.shape_cast %295 : vector<1x8x32xf32> to vector<8x32xf32>
    %297 = vector.shape_cast %294 : vector<8x32xf32> to vector<1x8x32xf32>
    tpu.vector_store %arg5[%c0_86, %c0_87, %c0_88], %297 {strides = array<i32>} : memref<2x8x32xf32, #tpu.memory_space<vmem>>, vector<1x8x32xf32>,
    %c0_89 = arith.constant 0 : index
    %c1_90 = arith.constant 1 : index
    %c0_91 = arith.constant 0 : index
    %298 = vector.load %arg7[%c0_89, %c1_90, %c0_91] : memref<8x2x32xf32, #tpu.memory_space<vmem>>, vector<8x1x32xf32>
    %299 = vector.shape_cast %298 : vector<8x1x32xf32> to vector<8x32xf32>
    %c1_92 = arith.constant 1 : index
    %c0_93 = arith.constant 0 : index
    %c0_94 = arith.constant 0 : index
    %300 = vector.load %arg5[%c1_92, %c0_93, %c0_94] : memref<2x8x32xf32, #tpu.memory_space<vmem>>, vector<1x8x32xf32>
    %301 = vector.shape_cast %300 : vector<1x8x32xf32> to vector<8x32xf32>
    %302 = vector.shape_cast %299 : vector<8x32xf32> to vector<1x8x32xf32>
    tpu.vector_store %arg5[%c1_92, %c0_93, %c0_94], %302 {strides = array<i32>} : memref<2x8x32xf32, #tpu.memory_space<vmem>>, vector<1x8x32xf32>,
    return
  }
  func.func @transform_0(%arg0: i32) -> (i32, i32, i32) {
    %c0_i32 = arith.constant 0 : i32
    %c0_i32_0 = arith.constant 0 : i32
    %c0_i32_1 = arith.constant 0 : i32
    %c0_i32_2 = arith.constant 0 : i32
    return %c0_i32, %c0_i32_0, %c0_i32_1 : i32, i32, i32
  }
  func.func @transform_1(%arg0: i32) -> (i32, i32) {
    %c0_i32 = arith.constant 0 : i32
    %c0_i32_0 = arith.constant 0 : i32
    %c0_i32_1 = arith.constant 0 : i32
    return %c0_i32, %c0_i32_0 : i32, i32
  }
  func.func @transform_2(%arg0: i32) -> (i32, i32) {
    %c0_i32 = arith.constant 0 : i32
    %c0_i32_0 = arith.constant 0 : i32
    %c0_i32_1 = arith.constant 0 : i32
    return %c0_i32, %c0_i32_0 : i32, i32
  }
  func.func @transform_3(%arg0: i32) -> (i32, i32) {
    %c0_i32 = arith.constant 0 : i32
    %c0_i32_0 = arith.constant 0 : i32
    %c0_i32_1 = arith.constant 0 : i32
    return %c0_i32, %c0_i32_0 : i32, i32
  }
  func.func @transform_4(%arg0: i32) -> (i32, i32, i32) {
    %c0_i32 = arith.constant 0 : i32
    %c0_i32_0 = arith.constant 0 : i32
    %c0_i32_1 = arith.constant 0 : i32
    %c0_i32_2 = arith.constant 0 : i32
    return %c0_i32, %c0_i32_0, %c0_i32_1 : i32, i32, i32
  }
}

module attributes {stable_mosaic.version = 11 : i64} {
  func.func @_lstm_kernel(%arg0: i32, %arg1: memref<2x8x16xf32, #tpu.memory_space<vmem>>, %arg2: memref<16x128xf32, #tpu.memory_space<vmem>>, %arg3: memref<32x128xf32, #tpu.memory_space<vmem>>, %arg4: memref<1x128xf32, #tpu.memory_space<vmem>>, %arg5: memref<2x8x32xf32, #tpu.memory_space<vmem>>, %arg6: memref<8x2x128xf32, #tpu.memory_space<vmem>>, %arg7: memref<8x2x32xf32, #tpu.memory_space<vmem>>) attributes {dimension_semantics = [#tpu.dimension_semantics<arbitrary>], iteration_bounds = array<i64: 1>, scalar_prefetch = 0 : i64, scratch_operands = 2 : i64, tpu.core_type = #tpu.core_type<tc>, window_params = [{pipeline_mode = #tpu.pipeline_mode<synchronous>, transform_indices = @transform_0, window_bounds = array<i64: 2, 8, 16>}, {pipeline_mode = #tpu.pipeline_mode<synchronous>, transform_indices = @transform_1, window_bounds = array<i64: 16, 128>}, {pipeline_mode = #tpu.pipeline_mode<synchronous>, transform_indices = @transform_2, window_bounds = array<i64: 32, 128>}, {pipeline_mode = #tpu.pipeline_mode<synchronous>, transform_indices = @transform_3, window_bounds = array<i64: 1, 128>}, {pipeline_mode = #tpu.pipeline_mode<synchronous>, transform_indices = @transform_4, window_bounds = array<i64: 2, 8, 32>}]} {
    %c0 = arith.constant 0 : index
    %c0_0 = arith.constant 0 : index
    %0 = vector.load %arg2[%c0, %c0_0] : memref<16x128xf32, #tpu.memory_space<vmem>>, vector<16x128xf32>
    %c0_1 = arith.constant 0 : index
    %c0_2 = arith.constant 0 : index
    %1 = vector.load %arg4[%c0_1, %c0_2] : memref<1x128xf32, #tpu.memory_space<vmem>>, vector<1x128xf32>
    %c0_3 = arith.constant 0 : index
    %c0_4 = arith.constant 0 : index
    %c0_5 = arith.constant 0 : index
    %2 = vector.load %arg1[%c0_3, %c0_4, %c0_5] : memref<2x8x16xf32, #tpu.memory_space<vmem>>, vector<1x8x16xf32>
    %3 = vector.shape_cast %2 : vector<1x8x16xf32> to vector<8x16xf32>
    %cst = arith.constant dense<0.000000e+00> : vector<8x128xf32>
    %4 = tpu.matmul %3, %0, %cst {dimension_numbers = #tpu.dot_dimension_numbers<[1], [0], [0], [1], [0, 0, 1, 1], [], []>} : vector<8x16xf32>, vector<16x128xf32>, vector<8x128xf32> -> vector<8x128xf32>
    %5 = vector.broadcast %1 : vector<1x128xf32> to vector<8x128xf32>
    %6 = arith.addf %4, %5 : vector<8x128xf32>
    %c0_6 = arith.constant 0 : index
    %c0_7 = arith.constant 0 : index
    %c0_8 = arith.constant 0 : index
    %7 = vector.load %arg6[%c0_6, %c0_7, %c0_8] : memref<8x2x128xf32, #tpu.memory_space<vmem>>, vector<8x1x128xf32>
    %8 = vector.shape_cast %7 : vector<8x1x128xf32> to vector<8x128xf32>
    %9 = vector.shape_cast %6 : vector<8x128xf32> to vector<8x1x128xf32>
    tpu.vector_store %arg6[%c0_6, %c0_7, %c0_8], %9 {strides = array<i32>} : memref<8x2x128xf32, #tpu.memory_space<vmem>>, vector<8x1x128xf32>,
    %c1 = arith.constant 1 : index
    %c0_9 = arith.constant 0 : index
    %c0_10 = arith.constant 0 : index
    %10 = vector.load %arg1[%c1, %c0_9, %c0_10] : memref<2x8x16xf32, #tpu.memory_space<vmem>>, vector<1x8x16xf32>
    %11 = vector.shape_cast %10 : vector<1x8x16xf32> to vector<8x16xf32>
    %cst_11 = arith.constant dense<0.000000e+00> : vector<8x128xf32>
    %12 = tpu.matmul %11, %0, %cst_11 {dimension_numbers = #tpu.dot_dimension_numbers<[1], [0], [0], [1], [0, 0, 1, 1], [], []>} : vector<8x16xf32>, vector<16x128xf32>, vector<8x128xf32> -> vector<8x128xf32>
    %13 = vector.broadcast %1 : vector<1x128xf32> to vector<8x128xf32>
    %14 = arith.addf %12, %13 : vector<8x128xf32>
    %c0_12 = arith.constant 0 : index
    %c1_13 = arith.constant 1 : index
    %c0_14 = arith.constant 0 : index
    %15 = vector.load %arg6[%c0_12, %c1_13, %c0_14] : memref<8x2x128xf32, #tpu.memory_space<vmem>>, vector<8x1x128xf32>
    %16 = vector.shape_cast %15 : vector<8x1x128xf32> to vector<8x128xf32>
    %17 = vector.shape_cast %14 : vector<8x128xf32> to vector<8x1x128xf32>
    tpu.vector_store %arg6[%c0_12, %c1_13, %c0_14], %17 {strides = array<i32>} : memref<8x2x128xf32, #tpu.memory_space<vmem>>, vector<8x1x128xf32>,
    %c0_15 = arith.constant 0 : index
    %c0_16 = arith.constant 0 : index
    %18 = vector.load %arg3[%c0_15, %c0_16] : memref<32x128xf32, #tpu.memory_space<vmem>>, vector<32x128xf32>
    %cst_17 = arith.constant 0.000000e+00 : f32
    %19 = vector.broadcast %cst_17 : f32 to vector<2x32xf32>
    %cst_18 = arith.constant 0.000000e+00 : f32
    %20 = vector.broadcast %cst_18 : f32 to vector<2x32xf32>
    %c0_i32 = arith.constant 0 : i32
    %21 = arith.index_cast %c0_i32 : i32 to index
    %c0_19 = arith.constant 0 : index
    %c0_20 = arith.constant 0 : index
    %22 = vector.load %arg6[%21, %c0_19, %c0_20] : memref<8x2x128xf32, #tpu.memory_space<vmem>>, vector<1x2x128xf32>
    %23 = vector.shape_cast %22 : vector<1x2x128xf32> to vector<2x128xf32>
    %cst_21 = arith.constant dense<0.000000e+00> : vector<2x128xf32>
    %24 = tpu.matmul %19, %18, %cst_21 {dimension_numbers = #tpu.dot_dimension_numbers<[1], [0], [0], [1], [0, 0, 1, 1], [], []>} : vector<2x32xf32>, vector<32x128xf32>, vector<2x128xf32> -> vector<2x128xf32>
    %25 = arith.addf %23, %24 : vector<2x128xf32>
    %26 = vector.extract_strided_slice %25 {offsets = [0, 0], sizes = [2, 32], strides = [1, 1]} : vector<2x128xf32> to vector<2x32xf32>
    %27 = arith.negf %26 : vector<2x32xf32>
    %28 = math.exp %27 : vector<2x32xf32>
    %cst_22 = arith.constant 1.000000e+00 : f32
    %29 = vector.broadcast %cst_22 : f32 to vector<2x32xf32>
    %30 = arith.addf %29, %28 : vector<2x32xf32>
    %31 = arith.divf %29, %30 : vector<2x32xf32>
    %32 = vector.extract_strided_slice %25 {offsets = [0, 32], sizes = [2, 32], strides = [1, 1]} : vector<2x128xf32> to vector<2x32xf32>
    %33 = arith.negf %32 : vector<2x32xf32>
    %34 = math.exp %33 : vector<2x32xf32>
    %cst_23 = arith.constant 1.000000e+00 : f32
    %35 = vector.broadcast %cst_23 : f32 to vector<2x32xf32>
    %36 = arith.addf %35, %34 : vector<2x32xf32>
    %37 = arith.divf %35, %36 : vector<2x32xf32>
    %38 = vector.extract_strided_slice %25 {offsets = [0, 64], sizes = [2, 32], strides = [1, 1]} : vector<2x128xf32> to vector<2x32xf32>
    %39 = math.tanh %38 : vector<2x32xf32>
    %40 = vector.extract_strided_slice %25 {offsets = [0, 96], sizes = [2, 32], strides = [1, 1]} : vector<2x128xf32> to vector<2x32xf32>
    %41 = arith.negf %40 : vector<2x32xf32>
    %42 = math.exp %41 : vector<2x32xf32>
    %cst_24 = arith.constant 1.000000e+00 : f32
    %43 = vector.broadcast %cst_24 : f32 to vector<2x32xf32>
    %44 = arith.addf %43, %42 : vector<2x32xf32>
    %45 = arith.divf %43, %44 : vector<2x32xf32>
    %46 = arith.mulf %37, %20 : vector<2x32xf32>
    %47 = arith.mulf %31, %39 : vector<2x32xf32>
    %48 = arith.addf %46, %47 : vector<2x32xf32>
    %49 = math.tanh %48 : vector<2x32xf32>
    %50 = arith.mulf %45, %49 : vector<2x32xf32>
    %51 = arith.index_cast %c0_i32 : i32 to index
    %c0_25 = arith.constant 0 : index
    %c0_26 = arith.constant 0 : index
    %52 = vector.load %arg7[%51, %c0_25, %c0_26] : memref<8x2x32xf32, #tpu.memory_space<vmem>>, vector<1x2x32xf32>
    %53 = vector.shape_cast %52 : vector<1x2x32xf32> to vector<2x32xf32>
    %54 = vector.shape_cast %50 : vector<2x32xf32> to vector<1x2x32xf32>
    tpu.vector_store %arg7[%51, %c0_25, %c0_26], %54 {strides = array<i32>} : memref<8x2x32xf32, #tpu.memory_space<vmem>>, vector<1x2x32xf32>,
    %c1_i32 = arith.constant 1 : i32
    %55 = arith.index_cast %c1_i32 : i32 to index
    %c0_27 = arith.constant 0 : index
    %c0_28 = arith.constant 0 : index
    %56 = vector.load %arg6[%55, %c0_27, %c0_28] : memref<8x2x128xf32, #tpu.memory_space<vmem>>, vector<1x2x128xf32>
    %57 = vector.shape_cast %56 : vector<1x2x128xf32> to vector<2x128xf32>
    %cst_29 = arith.constant dense<0.000000e+00> : vector<2x128xf32>
    %58 = tpu.matmul %50, %18, %cst_29 {dimension_numbers = #tpu.dot_dimension_numbers<[1], [0], [0], [1], [0, 0, 1, 1], [], []>} : vector<2x32xf32>, vector<32x128xf32>, vector<2x128xf32> -> vector<2x128xf32>
    %59 = arith.addf %57, %58 : vector<2x128xf32>
    %60 = vector.extract_strided_slice %59 {offsets = [0, 0], sizes = [2, 32], strides = [1, 1]} : vector<2x128xf32> to vector<2x32xf32>
    %61 = arith.negf %60 : vector<2x32xf32>
    %62 = math.exp %61 : vector<2x32xf32>
    %cst_30 = arith.constant 1.000000e+00 : f32
    %63 = vector.broadcast %cst_30 : f32 to vector<2x32xf32>
    %64 = arith.addf %63, %62 : vector<2x32xf32>
    %65 = arith.divf %63, %64 : vector<2x32xf32>
    %66 = vector.extract_strided_slice %59 {offsets = [0, 32], sizes = [2, 32], strides = [1, 1]} : vector<2x128xf32> to vector<2x32xf32>
    %67 = arith.negf %66 : vector<2x32xf32>
    %68 = math.exp %67 : vector<2x32xf32>
    %cst_31 = arith.constant 1.000000e+00 : f32
    %69 = vector.broadcast %cst_31 : f32 to vector<2x32xf32>
    %70 = arith.addf %69, %68 : vector<2x32xf32>
    %71 = arith.divf %69, %70 : vector<2x32xf32>
    %72 = vector.extract_strided_slice %59 {offsets = [0, 64], sizes = [2, 32], strides = [1, 1]} : vector<2x128xf32> to vector<2x32xf32>
    %73 = math.tanh %72 : vector<2x32xf32>
    %74 = vector.extract_strided_slice %59 {offsets = [0, 96], sizes = [2, 32], strides = [1, 1]} : vector<2x128xf32> to vector<2x32xf32>
    %75 = arith.negf %74 : vector<2x32xf32>
    %76 = math.exp %75 : vector<2x32xf32>
    %cst_32 = arith.constant 1.000000e+00 : f32
    %77 = vector.broadcast %cst_32 : f32 to vector<2x32xf32>
    %78 = arith.addf %77, %76 : vector<2x32xf32>
    %79 = arith.divf %77, %78 : vector<2x32xf32>
    %80 = arith.mulf %71, %48 : vector<2x32xf32>
    %81 = arith.mulf %65, %73 : vector<2x32xf32>
    %82 = arith.addf %80, %81 : vector<2x32xf32>
    %83 = math.tanh %82 : vector<2x32xf32>
    %84 = arith.mulf %79, %83 : vector<2x32xf32>
    %85 = arith.index_cast %c1_i32 : i32 to index
    %c0_33 = arith.constant 0 : index
    %c0_34 = arith.constant 0 : index
    %86 = vector.load %arg7[%85, %c0_33, %c0_34] : memref<8x2x32xf32, #tpu.memory_space<vmem>>, vector<1x2x32xf32>
    %87 = vector.shape_cast %86 : vector<1x2x32xf32> to vector<2x32xf32>
    %88 = vector.shape_cast %84 : vector<2x32xf32> to vector<1x2x32xf32>
    tpu.vector_store %arg7[%85, %c0_33, %c0_34], %88 {strides = array<i32>} : memref<8x2x32xf32, #tpu.memory_space<vmem>>, vector<1x2x32xf32>,
    %c2_i32 = arith.constant 2 : i32
    %89 = arith.index_cast %c2_i32 : i32 to index
    %c0_35 = arith.constant 0 : index
    %c0_36 = arith.constant 0 : index
    %90 = vector.load %arg6[%89, %c0_35, %c0_36] : memref<8x2x128xf32, #tpu.memory_space<vmem>>, vector<1x2x128xf32>
    %91 = vector.shape_cast %90 : vector<1x2x128xf32> to vector<2x128xf32>
    %cst_37 = arith.constant dense<0.000000e+00> : vector<2x128xf32>
    %92 = tpu.matmul %84, %18, %cst_37 {dimension_numbers = #tpu.dot_dimension_numbers<[1], [0], [0], [1], [0, 0, 1, 1], [], []>} : vector<2x32xf32>, vector<32x128xf32>, vector<2x128xf32> -> vector<2x128xf32>
    %93 = arith.addf %91, %92 : vector<2x128xf32>
    %94 = vector.extract_strided_slice %93 {offsets = [0, 0], sizes = [2, 32], strides = [1, 1]} : vector<2x128xf32> to vector<2x32xf32>
    %95 = arith.negf %94 : vector<2x32xf32>
    %96 = math.exp %95 : vector<2x32xf32>
    %cst_38 = arith.constant 1.000000e+00 : f32
    %97 = vector.broadcast %cst_38 : f32 to vector<2x32xf32>
    %98 = arith.addf %97, %96 : vector<2x32xf32>
    %99 = arith.divf %97, %98 : vector<2x32xf32>
    %100 = vector.extract_strided_slice %93 {offsets = [0, 32], sizes = [2, 32], strides = [1, 1]} : vector<2x128xf32> to vector<2x32xf32>
    %101 = arith.negf %100 : vector<2x32xf32>
    %102 = math.exp %101 : vector<2x32xf32>
    %cst_39 = arith.constant 1.000000e+00 : f32
    %103 = vector.broadcast %cst_39 : f32 to vector<2x32xf32>
    %104 = arith.addf %103, %102 : vector<2x32xf32>
    %105 = arith.divf %103, %104 : vector<2x32xf32>
    %106 = vector.extract_strided_slice %93 {offsets = [0, 64], sizes = [2, 32], strides = [1, 1]} : vector<2x128xf32> to vector<2x32xf32>
    %107 = math.tanh %106 : vector<2x32xf32>
    %108 = vector.extract_strided_slice %93 {offsets = [0, 96], sizes = [2, 32], strides = [1, 1]} : vector<2x128xf32> to vector<2x32xf32>
    %109 = arith.negf %108 : vector<2x32xf32>
    %110 = math.exp %109 : vector<2x32xf32>
    %cst_40 = arith.constant 1.000000e+00 : f32
    %111 = vector.broadcast %cst_40 : f32 to vector<2x32xf32>
    %112 = arith.addf %111, %110 : vector<2x32xf32>
    %113 = arith.divf %111, %112 : vector<2x32xf32>
    %114 = arith.mulf %105, %82 : vector<2x32xf32>
    %115 = arith.mulf %99, %107 : vector<2x32xf32>
    %116 = arith.addf %114, %115 : vector<2x32xf32>
    %117 = math.tanh %116 : vector<2x32xf32>
    %118 = arith.mulf %113, %117 : vector<2x32xf32>
    %119 = arith.index_cast %c2_i32 : i32 to index
    %c0_41 = arith.constant 0 : index
    %c0_42 = arith.constant 0 : index
    %120 = vector.load %arg7[%119, %c0_41, %c0_42] : memref<8x2x32xf32, #tpu.memory_space<vmem>>, vector<1x2x32xf32>
    %121 = vector.shape_cast %120 : vector<1x2x32xf32> to vector<2x32xf32>
    %122 = vector.shape_cast %118 : vector<2x32xf32> to vector<1x2x32xf32>
    tpu.vector_store %arg7[%119, %c0_41, %c0_42], %122 {strides = array<i32>} : memref<8x2x32xf32, #tpu.memory_space<vmem>>, vector<1x2x32xf32>,
    %c3_i32 = arith.constant 3 : i32
    %123 = arith.index_cast %c3_i32 : i32 to index
    %c0_43 = arith.constant 0 : index
    %c0_44 = arith.constant 0 : index
    %124 = vector.load %arg6[%123, %c0_43, %c0_44] : memref<8x2x128xf32, #tpu.memory_space<vmem>>, vector<1x2x128xf32>
    %125 = vector.shape_cast %124 : vector<1x2x128xf32> to vector<2x128xf32>
    %cst_45 = arith.constant dense<0.000000e+00> : vector<2x128xf32>
    %126 = tpu.matmul %118, %18, %cst_45 {dimension_numbers = #tpu.dot_dimension_numbers<[1], [0], [0], [1], [0, 0, 1, 1], [], []>} : vector<2x32xf32>, vector<32x128xf32>, vector<2x128xf32> -> vector<2x128xf32>
    %127 = arith.addf %125, %126 : vector<2x128xf32>
    %128 = vector.extract_strided_slice %127 {offsets = [0, 0], sizes = [2, 32], strides = [1, 1]} : vector<2x128xf32> to vector<2x32xf32>
    %129 = arith.negf %128 : vector<2x32xf32>
    %130 = math.exp %129 : vector<2x32xf32>
    %cst_46 = arith.constant 1.000000e+00 : f32
    %131 = vector.broadcast %cst_46 : f32 to vector<2x32xf32>
    %132 = arith.addf %131, %130 : vector<2x32xf32>
    %133 = arith.divf %131, %132 : vector<2x32xf32>
    %134 = vector.extract_strided_slice %127 {offsets = [0, 32], sizes = [2, 32], strides = [1, 1]} : vector<2x128xf32> to vector<2x32xf32>
    %135 = arith.negf %134 : vector<2x32xf32>
    %136 = math.exp %135 : vector<2x32xf32>
    %cst_47 = arith.constant 1.000000e+00 : f32
    %137 = vector.broadcast %cst_47 : f32 to vector<2x32xf32>
    %138 = arith.addf %137, %136 : vector<2x32xf32>
    %139 = arith.divf %137, %138 : vector<2x32xf32>
    %140 = vector.extract_strided_slice %127 {offsets = [0, 64], sizes = [2, 32], strides = [1, 1]} : vector<2x128xf32> to vector<2x32xf32>
    %141 = math.tanh %140 : vector<2x32xf32>
    %142 = vector.extract_strided_slice %127 {offsets = [0, 96], sizes = [2, 32], strides = [1, 1]} : vector<2x128xf32> to vector<2x32xf32>
    %143 = arith.negf %142 : vector<2x32xf32>
    %144 = math.exp %143 : vector<2x32xf32>
    %cst_48 = arith.constant 1.000000e+00 : f32
    %145 = vector.broadcast %cst_48 : f32 to vector<2x32xf32>
    %146 = arith.addf %145, %144 : vector<2x32xf32>
    %147 = arith.divf %145, %146 : vector<2x32xf32>
    %148 = arith.mulf %139, %116 : vector<2x32xf32>
    %149 = arith.mulf %133, %141 : vector<2x32xf32>
    %150 = arith.addf %148, %149 : vector<2x32xf32>
    %151 = math.tanh %150 : vector<2x32xf32>
    %152 = arith.mulf %147, %151 : vector<2x32xf32>
    %153 = arith.index_cast %c3_i32 : i32 to index
    %c0_49 = arith.constant 0 : index
    %c0_50 = arith.constant 0 : index
    %154 = vector.load %arg7[%153, %c0_49, %c0_50] : memref<8x2x32xf32, #tpu.memory_space<vmem>>, vector<1x2x32xf32>
    %155 = vector.shape_cast %154 : vector<1x2x32xf32> to vector<2x32xf32>
    %156 = vector.shape_cast %152 : vector<2x32xf32> to vector<1x2x32xf32>
    tpu.vector_store %arg7[%153, %c0_49, %c0_50], %156 {strides = array<i32>} : memref<8x2x32xf32, #tpu.memory_space<vmem>>, vector<1x2x32xf32>,
    %c4_i32 = arith.constant 4 : i32
    %157 = arith.index_cast %c4_i32 : i32 to index
    %c0_51 = arith.constant 0 : index
    %c0_52 = arith.constant 0 : index
    %158 = vector.load %arg6[%157, %c0_51, %c0_52] : memref<8x2x128xf32, #tpu.memory_space<vmem>>, vector<1x2x128xf32>
    %159 = vector.shape_cast %158 : vector<1x2x128xf32> to vector<2x128xf32>
    %cst_53 = arith.constant dense<0.000000e+00> : vector<2x128xf32>
    %160 = tpu.matmul %152, %18, %cst_53 {dimension_numbers = #tpu.dot_dimension_numbers<[1], [0], [0], [1], [0, 0, 1, 1], [], []>} : vector<2x32xf32>, vector<32x128xf32>, vector<2x128xf32> -> vector<2x128xf32>
    %161 = arith.addf %159, %160 : vector<2x128xf32>
    %162 = vector.extract_strided_slice %161 {offsets = [0, 0], sizes = [2, 32], strides = [1, 1]} : vector<2x128xf32> to vector<2x32xf32>
    %163 = arith.negf %162 : vector<2x32xf32>
    %164 = math.exp %163 : vector<2x32xf32>
    %cst_54 = arith.constant 1.000000e+00 : f32
    %165 = vector.broadcast %cst_54 : f32 to vector<2x32xf32>
    %166 = arith.addf %165, %164 : vector<2x32xf32>
    %167 = arith.divf %165, %166 : vector<2x32xf32>
    %168 = vector.extract_strided_slice %161 {offsets = [0, 32], sizes = [2, 32], strides = [1, 1]} : vector<2x128xf32> to vector<2x32xf32>
    %169 = arith.negf %168 : vector<2x32xf32>
    %170 = math.exp %169 : vector<2x32xf32>
    %cst_55 = arith.constant 1.000000e+00 : f32
    %171 = vector.broadcast %cst_55 : f32 to vector<2x32xf32>
    %172 = arith.addf %171, %170 : vector<2x32xf32>
    %173 = arith.divf %171, %172 : vector<2x32xf32>
    %174 = vector.extract_strided_slice %161 {offsets = [0, 64], sizes = [2, 32], strides = [1, 1]} : vector<2x128xf32> to vector<2x32xf32>
    %175 = math.tanh %174 : vector<2x32xf32>
    %176 = vector.extract_strided_slice %161 {offsets = [0, 96], sizes = [2, 32], strides = [1, 1]} : vector<2x128xf32> to vector<2x32xf32>
    %177 = arith.negf %176 : vector<2x32xf32>
    %178 = math.exp %177 : vector<2x32xf32>
    %cst_56 = arith.constant 1.000000e+00 : f32
    %179 = vector.broadcast %cst_56 : f32 to vector<2x32xf32>
    %180 = arith.addf %179, %178 : vector<2x32xf32>
    %181 = arith.divf %179, %180 : vector<2x32xf32>
    %182 = arith.mulf %173, %150 : vector<2x32xf32>
    %183 = arith.mulf %167, %175 : vector<2x32xf32>
    %184 = arith.addf %182, %183 : vector<2x32xf32>
    %185 = math.tanh %184 : vector<2x32xf32>
    %186 = arith.mulf %181, %185 : vector<2x32xf32>
    %187 = arith.index_cast %c4_i32 : i32 to index
    %c0_57 = arith.constant 0 : index
    %c0_58 = arith.constant 0 : index
    %188 = vector.load %arg7[%187, %c0_57, %c0_58] : memref<8x2x32xf32, #tpu.memory_space<vmem>>, vector<1x2x32xf32>
    %189 = vector.shape_cast %188 : vector<1x2x32xf32> to vector<2x32xf32>
    %190 = vector.shape_cast %186 : vector<2x32xf32> to vector<1x2x32xf32>
    tpu.vector_store %arg7[%187, %c0_57, %c0_58], %190 {strides = array<i32>} : memref<8x2x32xf32, #tpu.memory_space<vmem>>, vector<1x2x32xf32>,
    %c5_i32 = arith.constant 5 : i32
    %191 = arith.index_cast %c5_i32 : i32 to index
    %c0_59 = arith.constant 0 : index
    %c0_60 = arith.constant 0 : index
    %192 = vector.load %arg6[%191, %c0_59, %c0_60] : memref<8x2x128xf32, #tpu.memory_space<vmem>>, vector<1x2x128xf32>
    %193 = vector.shape_cast %192 : vector<1x2x128xf32> to vector<2x128xf32>
    %cst_61 = arith.constant dense<0.000000e+00> : vector<2x128xf32>
    %194 = tpu.matmul %186, %18, %cst_61 {dimension_numbers = #tpu.dot_dimension_numbers<[1], [0], [0], [1], [0, 0, 1, 1], [], []>} : vector<2x32xf32>, vector<32x128xf32>, vector<2x128xf32> -> vector<2x128xf32>
    %195 = arith.addf %193, %194 : vector<2x128xf32>
    %196 = vector.extract_strided_slice %195 {offsets = [0, 0], sizes = [2, 32], strides = [1, 1]} : vector<2x128xf32> to vector<2x32xf32>
    %197 = arith.negf %196 : vector<2x32xf32>
    %198 = math.exp %197 : vector<2x32xf32>
    %cst_62 = arith.constant 1.000000e+00 : f32
    %199 = vector.broadcast %cst_62 : f32 to vector<2x32xf32>
    %200 = arith.addf %199, %198 : vector<2x32xf32>
    %201 = arith.divf %199, %200 : vector<2x32xf32>
    %202 = vector.extract_strided_slice %195 {offsets = [0, 32], sizes = [2, 32], strides = [1, 1]} : vector<2x128xf32> to vector<2x32xf32>
    %203 = arith.negf %202 : vector<2x32xf32>
    %204 = math.exp %203 : vector<2x32xf32>
    %cst_63 = arith.constant 1.000000e+00 : f32
    %205 = vector.broadcast %cst_63 : f32 to vector<2x32xf32>
    %206 = arith.addf %205, %204 : vector<2x32xf32>
    %207 = arith.divf %205, %206 : vector<2x32xf32>
    %208 = vector.extract_strided_slice %195 {offsets = [0, 64], sizes = [2, 32], strides = [1, 1]} : vector<2x128xf32> to vector<2x32xf32>
    %209 = math.tanh %208 : vector<2x32xf32>
    %210 = vector.extract_strided_slice %195 {offsets = [0, 96], sizes = [2, 32], strides = [1, 1]} : vector<2x128xf32> to vector<2x32xf32>
    %211 = arith.negf %210 : vector<2x32xf32>
    %212 = math.exp %211 : vector<2x32xf32>
    %cst_64 = arith.constant 1.000000e+00 : f32
    %213 = vector.broadcast %cst_64 : f32 to vector<2x32xf32>
    %214 = arith.addf %213, %212 : vector<2x32xf32>
    %215 = arith.divf %213, %214 : vector<2x32xf32>
    %216 = arith.mulf %207, %184 : vector<2x32xf32>
    %217 = arith.mulf %201, %209 : vector<2x32xf32>
    %218 = arith.addf %216, %217 : vector<2x32xf32>
    %219 = math.tanh %218 : vector<2x32xf32>
    %220 = arith.mulf %215, %219 : vector<2x32xf32>
    %221 = arith.index_cast %c5_i32 : i32 to index
    %c0_65 = arith.constant 0 : index
    %c0_66 = arith.constant 0 : index
    %222 = vector.load %arg7[%221, %c0_65, %c0_66] : memref<8x2x32xf32, #tpu.memory_space<vmem>>, vector<1x2x32xf32>
    %223 = vector.shape_cast %222 : vector<1x2x32xf32> to vector<2x32xf32>
    %224 = vector.shape_cast %220 : vector<2x32xf32> to vector<1x2x32xf32>
    tpu.vector_store %arg7[%221, %c0_65, %c0_66], %224 {strides = array<i32>} : memref<8x2x32xf32, #tpu.memory_space<vmem>>, vector<1x2x32xf32>,
    %c6_i32 = arith.constant 6 : i32
    %225 = arith.index_cast %c6_i32 : i32 to index
    %c0_67 = arith.constant 0 : index
    %c0_68 = arith.constant 0 : index
    %226 = vector.load %arg6[%225, %c0_67, %c0_68] : memref<8x2x128xf32, #tpu.memory_space<vmem>>, vector<1x2x128xf32>
    %227 = vector.shape_cast %226 : vector<1x2x128xf32> to vector<2x128xf32>
    %cst_69 = arith.constant dense<0.000000e+00> : vector<2x128xf32>
    %228 = tpu.matmul %220, %18, %cst_69 {dimension_numbers = #tpu.dot_dimension_numbers<[1], [0], [0], [1], [0, 0, 1, 1], [], []>} : vector<2x32xf32>, vector<32x128xf32>, vector<2x128xf32> -> vector<2x128xf32>
    %229 = arith.addf %227, %228 : vector<2x128xf32>
    %230 = vector.extract_strided_slice %229 {offsets = [0, 0], sizes = [2, 32], strides = [1, 1]} : vector<2x128xf32> to vector<2x32xf32>
    %231 = arith.negf %230 : vector<2x32xf32>
    %232 = math.exp %231 : vector<2x32xf32>
    %cst_70 = arith.constant 1.000000e+00 : f32
    %233 = vector.broadcast %cst_70 : f32 to vector<2x32xf32>
    %234 = arith.addf %233, %232 : vector<2x32xf32>
    %235 = arith.divf %233, %234 : vector<2x32xf32>
    %236 = vector.extract_strided_slice %229 {offsets = [0, 32], sizes = [2, 32], strides = [1, 1]} : vector<2x128xf32> to vector<2x32xf32>
    %237 = arith.negf %236 : vector<2x32xf32>
    %238 = math.exp %237 : vector<2x32xf32>
    %cst_71 = arith.constant 1.000000e+00 : f32
    %239 = vector.broadcast %cst_71 : f32 to vector<2x32xf32>
    %240 = arith.addf %239, %238 : vector<2x32xf32>
    %241 = arith.divf %239, %240 : vector<2x32xf32>
    %242 = vector.extract_strided_slice %229 {offsets = [0, 64], sizes = [2, 32], strides = [1, 1]} : vector<2x128xf32> to vector<2x32xf32>
    %243 = math.tanh %242 : vector<2x32xf32>
    %244 = vector.extract_strided_slice %229 {offsets = [0, 96], sizes = [2, 32], strides = [1, 1]} : vector<2x128xf32> to vector<2x32xf32>
    %245 = arith.negf %244 : vector<2x32xf32>
    %246 = math.exp %245 : vector<2x32xf32>
    %cst_72 = arith.constant 1.000000e+00 : f32
    %247 = vector.broadcast %cst_72 : f32 to vector<2x32xf32>
    %248 = arith.addf %247, %246 : vector<2x32xf32>
    %249 = arith.divf %247, %248 : vector<2x32xf32>
    %250 = arith.mulf %241, %218 : vector<2x32xf32>
    %251 = arith.mulf %235, %243 : vector<2x32xf32>
    %252 = arith.addf %250, %251 : vector<2x32xf32>
    %253 = math.tanh %252 : vector<2x32xf32>
    %254 = arith.mulf %249, %253 : vector<2x32xf32>
    %255 = arith.index_cast %c6_i32 : i32 to index
    %c0_73 = arith.constant 0 : index
    %c0_74 = arith.constant 0 : index
    %256 = vector.load %arg7[%255, %c0_73, %c0_74] : memref<8x2x32xf32, #tpu.memory_space<vmem>>, vector<1x2x32xf32>
    %257 = vector.shape_cast %256 : vector<1x2x32xf32> to vector<2x32xf32>
    %258 = vector.shape_cast %254 : vector<2x32xf32> to vector<1x2x32xf32>
    tpu.vector_store %arg7[%255, %c0_73, %c0_74], %258 {strides = array<i32>} : memref<8x2x32xf32, #tpu.memory_space<vmem>>, vector<1x2x32xf32>,
    %c7_i32 = arith.constant 7 : i32
    %259 = arith.index_cast %c7_i32 : i32 to index
    %c0_75 = arith.constant 0 : index
    %c0_76 = arith.constant 0 : index
    %260 = vector.load %arg6[%259, %c0_75, %c0_76] : memref<8x2x128xf32, #tpu.memory_space<vmem>>, vector<1x2x128xf32>
    %261 = vector.shape_cast %260 : vector<1x2x128xf32> to vector<2x128xf32>
    %cst_77 = arith.constant dense<0.000000e+00> : vector<2x128xf32>
    %262 = tpu.matmul %254, %18, %cst_77 {dimension_numbers = #tpu.dot_dimension_numbers<[1], [0], [0], [1], [0, 0, 1, 1], [], []>} : vector<2x32xf32>, vector<32x128xf32>, vector<2x128xf32> -> vector<2x128xf32>
    %263 = arith.addf %261, %262 : vector<2x128xf32>
    %264 = vector.extract_strided_slice %263 {offsets = [0, 0], sizes = [2, 32], strides = [1, 1]} : vector<2x128xf32> to vector<2x32xf32>
    %265 = arith.negf %264 : vector<2x32xf32>
    %266 = math.exp %265 : vector<2x32xf32>
    %cst_78 = arith.constant 1.000000e+00 : f32
    %267 = vector.broadcast %cst_78 : f32 to vector<2x32xf32>
    %268 = arith.addf %267, %266 : vector<2x32xf32>
    %269 = arith.divf %267, %268 : vector<2x32xf32>
    %270 = vector.extract_strided_slice %263 {offsets = [0, 32], sizes = [2, 32], strides = [1, 1]} : vector<2x128xf32> to vector<2x32xf32>
    %271 = arith.negf %270 : vector<2x32xf32>
    %272 = math.exp %271 : vector<2x32xf32>
    %cst_79 = arith.constant 1.000000e+00 : f32
    %273 = vector.broadcast %cst_79 : f32 to vector<2x32xf32>
    %274 = arith.addf %273, %272 : vector<2x32xf32>
    %275 = arith.divf %273, %274 : vector<2x32xf32>
    %276 = vector.extract_strided_slice %263 {offsets = [0, 64], sizes = [2, 32], strides = [1, 1]} : vector<2x128xf32> to vector<2x32xf32>
    %277 = math.tanh %276 : vector<2x32xf32>
    %278 = vector.extract_strided_slice %263 {offsets = [0, 96], sizes = [2, 32], strides = [1, 1]} : vector<2x128xf32> to vector<2x32xf32>
    %279 = arith.negf %278 : vector<2x32xf32>
    %280 = math.exp %279 : vector<2x32xf32>
    %cst_80 = arith.constant 1.000000e+00 : f32
    %281 = vector.broadcast %cst_80 : f32 to vector<2x32xf32>
    %282 = arith.addf %281, %280 : vector<2x32xf32>
    %283 = arith.divf %281, %282 : vector<2x32xf32>
    %284 = arith.mulf %275, %252 : vector<2x32xf32>
    %285 = arith.mulf %269, %277 : vector<2x32xf32>
    %286 = arith.addf %284, %285 : vector<2x32xf32>
    %287 = math.tanh %286 : vector<2x32xf32>
    %288 = arith.mulf %283, %287 : vector<2x32xf32>
    %289 = arith.index_cast %c7_i32 : i32 to index
    %c0_81 = arith.constant 0 : index
    %c0_82 = arith.constant 0 : index
    %290 = vector.load %arg7[%289, %c0_81, %c0_82] : memref<8x2x32xf32, #tpu.memory_space<vmem>>, vector<1x2x32xf32>
    %291 = vector.shape_cast %290 : vector<1x2x32xf32> to vector<2x32xf32>
    %292 = vector.shape_cast %288 : vector<2x32xf32> to vector<1x2x32xf32>
    tpu.vector_store %arg7[%289, %c0_81, %c0_82], %292 {strides = array<i32>} : memref<8x2x32xf32, #tpu.memory_space<vmem>>, vector<1x2x32xf32>,
    %c8_i32 = arith.constant 8 : i32
    %c0_83 = arith.constant 0 : index
    %c0_84 = arith.constant 0 : index
    %c0_85 = arith.constant 0 : index
    %293 = vector.load %arg7[%c0_83, %c0_84, %c0_85] : memref<8x2x32xf32, #tpu.memory_space<vmem>>, vector<8x1x32xf32>
    %294 = vector.shape_cast %293 : vector<8x1x32xf32> to vector<8x32xf32>
    %c0_86 = arith.constant 0 : index
    %c0_87 = arith.constant 0 : index
    %c0_88 = arith.constant 0 : index
    %295 = vector.load %arg5[%c0_86, %c0_87, %c0_88] : memref<2x8x32xf32, #tpu.memory_space<vmem>>, vector<1x8x32xf32>
    %296 = vector.shape_cast %295 : vector<1x8x32xf32> to vector<8x32xf32>
    %297 = vector.shape_cast %294 : vector<8x32xf32> to vector<1x8x32xf32>
    tpu.vector_store %arg5[%c0_86, %c0_87, %c0_88], %297 {strides = array<i32>} : memref<2x8x32xf32, #tpu.memory_space<vmem>>, vector<1x8x32xf32>,
    %c0_89 = arith.constant 0 : index
    %c1_90 = arith.constant 1 : index
    %c0_91 = arith.constant 0 : index
    %298 = vector.load %arg7[%c0_89, %c1_90, %c0_91] : memref<8x2x32xf32, #tpu.memory_space<vmem>>, vector<8x1x32xf32>
    %299 = vector.shape_cast %298 : vector<8x1x32xf32> to vector<8x32xf32>
    %c1_92 = arith.constant 1 : index
    %c0_93 = arith.constant 0 : index
    %c0_94 = arith.constant 0 : index
    %300 = vector.load %arg5[%c1_92, %c0_93, %c0_94] : memref<2x8x32xf32, #tpu.memory_space<vmem>>, vector<1x8x32xf32>
    %301 = vector.shape_cast %300 : vector<1x8x32xf32> to vector<8x32xf32>
    %302 = vector.shape_cast %299 : vector<8x32xf32> to vector<1x8x32xf32>
    tpu.vector_store %arg5[%c1_92, %c0_93, %c0_94], %302 {strides = array<i32>} : memref<2x8x32xf32, #tpu.memory_space<vmem>>, vector<1x8x32xf32>,
    return
  }
  func.func @transform_0(%arg0: i32) -> (i32, i32, i32) {
    %c0_i32 = arith.constant 0 : i32
    %c0_i32_0 = arith.constant 0 : i32
    %c0_i32_1 = arith.constant 0 : i32
    %c0_i32_2 = arith.constant 0 : i32
    return %c0_i32, %c0_i32_0, %c0_i32_1 : i32, i32, i32
  }
  func.func @transform_1(%arg0: i32) -> (i32, i32) {
    %c0_i32 = arith.constant 0 : i32
    %c0_i32_0 = arith.constant 0 : i32
    %c0_i32_1 = arith.constant 0 : i32
    return %c0_i32, %c0_i32_0 : i32, i32
  }
  func.func @transform_2(%arg0: i32) -> (i32, i32) {
    %c0_i32 = arith.constant 0 : i32
    %c0_i32_0 = arith.constant 0 : i32
    %c0_i32_1 = arith.constant 0 : i32
    return %c0_i32, %c0_i32_0 : i32, i32
  }
  func.func @transform_3(%arg0: i32) -> (i32, i32) {
    %c0_i32 = arith.constant 0 : i32
    %c0_i32_0 = arith.constant 0 : i32
    %c0_i32_1 = arith.constant 0 : i32
    return %c0_i32, %c0_i32_0 : i32, i32
  }
  func.func @transform_4(%arg0: i32) -> (i32, i32, i32) {
    %c0_i32 = arith.constant 0 : i32
    %c0_i32_0 = arith.constant 0 : i32
    %c0_i32_1 = arith.constant 0 : i32
    %c0_i32_2 = arith.constant 0 : i32
    return %c0_i32, %c0_i32_0, %c0_i32_1 : i32, i32, i32
  }
}

module attributes {stable_mosaic.version = 11 : i64} {
  func.func @_joint_kernel(%arg0: i32, %arg1: memref<1x8x32xf32, #tpu.memory_space<vmem>>, %arg2: memref<1x8x32xf32, #tpu.memory_space<vmem>>, %arg3: memref<32x256xf32, #tpu.memory_space<vmem>>, %arg4: memref<1x256xf32, #tpu.memory_space<vmem>>, %arg5: memref<32x256xf32, #tpu.memory_space<vmem>>, %arg6: memref<1x256xf32, #tpu.memory_space<vmem>>, %arg7: memref<256x128xf32, #tpu.memory_space<vmem>>, %arg8: memref<1x128xf32, #tpu.memory_space<vmem>>, %arg9: memref<1x64x128xf32, #tpu.memory_space<vmem>>) attributes {dimension_semantics = [#tpu.dimension_semantics<parallel>], iteration_bounds = array<i64: 2>, scalar_prefetch = 0 : i64, scratch_operands = 0 : i64, tpu.core_type = #tpu.core_type<tc>, window_params = [{transform_indices = @transform_0, window_bounds = array<i64: 1, 8, 32>}, {transform_indices = @transform_1, window_bounds = array<i64: 1, 8, 32>}, {pipeline_mode = #tpu.pipeline_mode<synchronous>, transform_indices = @transform_2, window_bounds = array<i64: 32, 256>}, {pipeline_mode = #tpu.pipeline_mode<synchronous>, transform_indices = @transform_3, window_bounds = array<i64: 1, 256>}, {pipeline_mode = #tpu.pipeline_mode<synchronous>, transform_indices = @transform_4, window_bounds = array<i64: 32, 256>}, {pipeline_mode = #tpu.pipeline_mode<synchronous>, transform_indices = @transform_5, window_bounds = array<i64: 1, 256>}, {pipeline_mode = #tpu.pipeline_mode<synchronous>, transform_indices = @transform_6, window_bounds = array<i64: 256, 128>}, {pipeline_mode = #tpu.pipeline_mode<synchronous>, transform_indices = @transform_7, window_bounds = array<i64: 1, 128>}, {transform_indices = @transform_8, window_bounds = array<i64: 1, 64, 128>}]} {
    %c0 = arith.constant 0 : index
    %c0_0 = arith.constant 0 : index
    %c0_1 = arith.constant 0 : index
    %0 = vector.load %arg1[%c0, %c0_0, %c0_1] : memref<1x8x32xf32, #tpu.memory_space<vmem>>, vector<1x8x32xf32>
    %1 = vector.shape_cast %0 : vector<1x8x32xf32> to vector<8x32xf32>
    %c0_2 = arith.constant 0 : index
    %c0_3 = arith.constant 0 : index
    %c0_4 = arith.constant 0 : index
    %2 = vector.load %arg2[%c0_2, %c0_3, %c0_4] : memref<1x8x32xf32, #tpu.memory_space<vmem>>, vector<1x8x32xf32>
    %3 = vector.shape_cast %2 : vector<1x8x32xf32> to vector<8x32xf32>
    %c0_5 = arith.constant 0 : index
    %c0_6 = arith.constant 0 : index
    %4 = vector.load %arg3[%c0_5, %c0_6] : memref<32x256xf32, #tpu.memory_space<vmem>>, vector<32x256xf32>
    %cst = arith.constant dense<0.000000e+00> : vector<8x256xf32>
    %5 = tpu.matmul %1, %4, %cst {dimension_numbers = #tpu.dot_dimension_numbers<[1], [0], [0], [1], [0, 0, 1, 1], [], []>} : vector<8x32xf32>, vector<32x256xf32>, vector<8x256xf32> -> vector<8x256xf32>
    %c0_7 = arith.constant 0 : index
    %c0_8 = arith.constant 0 : index
    %6 = vector.load %arg4[%c0_7, %c0_8] : memref<1x256xf32, #tpu.memory_space<vmem>>, vector<1x256xf32>
    %7 = vector.broadcast %6 : vector<1x256xf32> to vector<8x256xf32>
    %8 = arith.addf %5, %7 : vector<8x256xf32>
    %c0_9 = arith.constant 0 : index
    %c0_10 = arith.constant 0 : index
    %9 = vector.load %arg5[%c0_9, %c0_10] : memref<32x256xf32, #tpu.memory_space<vmem>>, vector<32x256xf32>
    %cst_11 = arith.constant dense<0.000000e+00> : vector<8x256xf32>
    %10 = tpu.matmul %3, %9, %cst_11 {dimension_numbers = #tpu.dot_dimension_numbers<[1], [0], [0], [1], [0, 0, 1, 1], [], []>} : vector<8x32xf32>, vector<32x256xf32>, vector<8x256xf32> -> vector<8x256xf32>
    %c0_12 = arith.constant 0 : index
    %c0_13 = arith.constant 0 : index
    %11 = vector.load %arg6[%c0_12, %c0_13] : memref<1x256xf32, #tpu.memory_space<vmem>>, vector<1x256xf32>
    %12 = vector.broadcast %11 : vector<1x256xf32> to vector<8x256xf32>
    %13 = arith.addf %10, %12 : vector<8x256xf32>
    %14 = vector.shape_cast %8 : vector<8x256xf32> to vector<8x1x256xf32>
    %15 = vector.shape_cast %13 : vector<8x256xf32> to vector<1x8x256xf32>
    %16 = vector.broadcast %14 : vector<8x1x256xf32> to vector<8x8x256xf32>
    %17 = vector.broadcast %15 : vector<1x8x256xf32> to vector<8x8x256xf32>
    %18 = arith.addf %16, %17 : vector<8x8x256xf32>
    %19 = math.tanh %18 : vector<8x8x256xf32>
    %20 = vector.shape_cast %19 : vector<8x8x256xf32> to vector<64x256xf32>
    %c0_14 = arith.constant 0 : index
    %c0_15 = arith.constant 0 : index
    %21 = vector.load %arg7[%c0_14, %c0_15] : memref<256x128xf32, #tpu.memory_space<vmem>>, vector<256x128xf32>
    %cst_16 = arith.constant dense<0.000000e+00> : vector<64x128xf32>
    %22 = tpu.matmul %20, %21, %cst_16 {dimension_numbers = #tpu.dot_dimension_numbers<[1], [0], [0], [1], [0, 0, 1, 1], [], []>} : vector<64x256xf32>, vector<256x128xf32>, vector<64x128xf32> -> vector<64x128xf32>
    %c0_17 = arith.constant 0 : index
    %c0_18 = arith.constant 0 : index
    %23 = vector.load %arg8[%c0_17, %c0_18] : memref<1x128xf32, #tpu.memory_space<vmem>>, vector<1x128xf32>
    %24 = vector.broadcast %23 : vector<1x128xf32> to vector<64x128xf32>
    %25 = arith.addf %22, %24 : vector<64x128xf32>
    %c0_19 = arith.constant 0 : index
    %c0_20 = arith.constant 0 : index
    %c0_21 = arith.constant 0 : index
    %26 = vector.load %arg9[%c0_19, %c0_20, %c0_21] : memref<1x64x128xf32, #tpu.memory_space<vmem>>, vector<1x64x128xf32>
    %27 = vector.shape_cast %26 : vector<1x64x128xf32> to vector<64x128xf32>
    %28 = vector.shape_cast %25 : vector<64x128xf32> to vector<1x64x128xf32>
    tpu.vector_store %arg9[%c0_19, %c0_20, %c0_21], %28 {strides = array<i32>} : memref<1x64x128xf32, #tpu.memory_space<vmem>>, vector<1x64x128xf32>,
    return
  }
  func.func @transform_0(%arg0: i32) -> (i32, i32, i32) {
    %c0_i32 = arith.constant 0 : i32
    %c0_i32_0 = arith.constant 0 : i32
    %c0_i32_1 = arith.constant 0 : i32
    return %arg0, %c0_i32, %c0_i32_0 : i32, i32, i32
  }
  func.func @transform_1(%arg0: i32) -> (i32, i32, i32) {
    %c0_i32 = arith.constant 0 : i32
    %c0_i32_0 = arith.constant 0 : i32
    %c0_i32_1 = arith.constant 0 : i32
    return %arg0, %c0_i32, %c0_i32_0 : i32, i32, i32
  }
  func.func @transform_2(%arg0: i32) -> (i32, i32) {
    %c0_i32 = arith.constant 0 : i32
    %c0_i32_0 = arith.constant 0 : i32
    %c0_i32_1 = arith.constant 0 : i32
    return %c0_i32, %c0_i32_0 : i32, i32
  }
  func.func @transform_3(%arg0: i32) -> (i32, i32) {
    %c0_i32 = arith.constant 0 : i32
    %c0_i32_0 = arith.constant 0 : i32
    %c0_i32_1 = arith.constant 0 : i32
    return %c0_i32, %c0_i32_0 : i32, i32
  }
  func.func @transform_4(%arg0: i32) -> (i32, i32) {
    %c0_i32 = arith.constant 0 : i32
    %c0_i32_0 = arith.constant 0 : i32
    %c0_i32_1 = arith.constant 0 : i32
    return %c0_i32, %c0_i32_0 : i32, i32
  }
  func.func @transform_5(%arg0: i32) -> (i32, i32) {
    %c0_i32 = arith.constant 0 : i32
    %c0_i32_0 = arith.constant 0 : i32
    %c0_i32_1 = arith.constant 0 : i32
    return %c0_i32, %c0_i32_0 : i32, i32
  }
  func.func @transform_6(%arg0: i32) -> (i32, i32) {
    %c0_i32 = arith.constant 0 : i32
    %c0_i32_0 = arith.constant 0 : i32
    %c0_i32_1 = arith.constant 0 : i32
    return %c0_i32, %c0_i32_0 : i32, i32
  }
  func.func @transform_7(%arg0: i32) -> (i32, i32) {
    %c0_i32 = arith.constant 0 : i32
    %c0_i32_0 = arith.constant 0 : i32
    %c0_i32_1 = arith.constant 0 : i32
    return %c0_i32, %c0_i32_0 : i32, i32
  }
  func.func @transform_8(%arg0: i32) -> (i32, i32, i32) {
    %c0_i32 = arith.constant 0 : i32
    %c0_i32_0 = arith.constant 0 : i32
    %c0_i32_1 = arith.constant 0 : i32
    return %arg0, %c0_i32, %c0_i32_0 : i32, i32, i32
  }
}

</mosaic_0001>

<bundles_post_ra>
// kernel: rnnt_forward.4
= control target key start
LH: loop header
LB: loop body
LE: loop exit
PB: predicated region body
PF: predicated region fallthrough
CT: control target
= control target key end

     0   :  { %vm31_vm0 = vcmask 1041408   ;;  %v1538_v0 = vmov 0.0|0.0   ;;  %vm1539_vm1 = vmmov 1   ;;  %vm1540_vm3 = vmmov 0   ;;  %s1544_s30 = smov 32   ;;  %s1715_s1 = inlined_call_operand.vmem [shape: f32[10,128], index: 1, kind: input, shape index: {}]   ;;  %s1716_s2 = inlined_call_operand.vmem [shape: f32[32,128], index: 2, kind: input, shape index: {}]   ;;  %s1717_s0 = inlined_call_operand.vmem [shape: f32[2,8,10], index: 0, kind: input, shape index: {}]   ;;  %s1718_s3 = inlined_call_operand.vmem [shape: f32[1,128], index: 3, kind: input, shape index: {}]   ;;  %s1719_s4 = inlined_call_operand.vmem [shape: f32[2,8,32], index: 4, kind: output, shape index: {}]  }
   0x1   :  { %1411 = vmatprep.subr.bf16.mxu0 %v1538_v0  ;;  %1415 = vmatprep.subr.bf16.mxu1 %v1538_v0  ;;  %v17_v1 = vld [vmem:[%s1715_s1] sm:$0xff]  ;;  %v18_v2 = vld [vmem:[%s1715_s1 + $0x8] sm:$0x3]  ;;  %vm1413_vm2 = vmpackc.low %vm31_vm0, %vm1539_vm1  ;;  %v1541_v4 = vmov 0.0   ;;  %vm27_vm4 = vcmask 80896   ;;  %v110_v15 = vlaneseq  ;;  %vm420_vm5 = vcmask 254976  }
   0x2   :  { %v1412_v3 = vpack.c.bf16 %v18_v2, %v17_v1  ;;  %1313 = vmatprep.mubr.msk.f32.mxu0 %vm1540_vm3, %v1541_v4  ;;  %1320 = vmatprep.mubr.msk.f32.mxu1 %vm1540_vm3, %v1541_v4  ;;  %v312_v5 = vld [vmem:[%s1716_s2] sm:$0xff]  ;;  %v313_v6 = vld [vmem:[%s1716_s2 + $0x8] sm:$0xff]  ;;  %v314_v10 = vld [vmem:[%s1716_s2 + $0x10] sm:$0xff]  ;;  %v1542_v13 = vmov 1966171168   ;;  %vm317_vm6 = vcmask 261120  }
   0x3   :  { %v20_v7 = vld [vmem:[%s1717_s0] sm:$0xff]  ;;  %v1240_v8 = vld [vmem:[%s1717_s0 + $0x8] sm:$0xff]  ;;  %v1594_v9 = vpack.c.bf16 %v313_v6, %v312_v5  ;;  %v315_v11 = vld [vmem:[%s1716_s2 + $0x18] sm:$0xff]  ;;  %v108_v14 = vunpack.c.l.s4 %v1542_v13  ;;  %v111_v17 = vshrl.u32 %v110_v15, 7  ;;  %vm1174_vm7 = vcmask 1041409  }
   0x4   :  { %1414 = vmatpush3.bf16.msk.msra.mxu0 %vm1413_vm2, %v1412_v3  ;;  %1418 = vmatpush3.bf16.msk.msra.mxu1 %vm1413_vm2, %v1412_v3  ;;  %v1605_v12 = vpack.c.bf16 %v315_v11, %v314_v10  ;;  %v1233_v18 = vld [vmem:[%s1718_s3] ss:$0 sm:$0xff]  ;;  %s1543_s3 = smov 64   ;;  %vm1177_vm8 = vcmask 1042434   ;;  %vm1180_vm9 = vcmask 1043459   ;;  %vm1183_vm10 = vcmask 1044484  }
   0x5   :  { %1419 = vmatprep.subr.bf16.mxu0 %v1538_v0  ;;  %1425 = vmatprep.subr.bf16.mxu1 %v1538_v0  ;;  %v109_v16 = vunpack.c.0.s8 %v108_v14  ;;  %vm1186_vm11 = vcmask 1045509   ;;  %vm1189_vm12 = vcmask 1046534   ;;  %vm1192_vm13 = vcmask 1047559  }
   0x7   :  { %1314 = vmatmul.mubr.msk.f32.vlgmr.msra.gmra.mrb[0].mxu0 %vm27_vm4, %v20_v7  ;;  %1321 = vmatmul.mubr.msk.f32.vlgmr.msra.gmra.mrb[0].mxu1 %vm27_vm4, %v1240_v8  ;;  %v112_v19 = vsub.s32 %v109_v16, %v111_v17 }
   0x8   :  { %1421 = vmatpush3.bf16.msra.mxu0 %v1594_v9  ;;  %1331 = vmatprep.mubr.msk.f32.mxu0 %vm1540_vm3, %v1541_v4 }
   0x9   :  { %1422 = vmatprep.subr.bf16.mxu0 %v1538_v0  ;;  %1427 = vmatpush3.bf16.msra.mxu1 %v1594_v9 }
   0xa   :  { %1428 = vmatprep.subr.bf16.mxu1 %v1538_v0  ;;  %1342 = vmatprep.mubr.msk.f32.mxu1 %vm1540_vm3, %v1541_v4 }
   0xc   :  { %1424 = vmatpush3.bf16.msra.mxu0 %v1605_v12 }
   0xd   :  { %1430 = vmatpush3.bf16.msra.mxu1 %v1605_v12  ;;  %1431 = vmatprep.subr.bf16.mxu0 %v1538_v0 }
   0xe   :  { %1437 = vmatprep.subr.bf16.mxu1 %v1538_v0 }
   0xf   :  { %1332 = vmatmul.mubr.f32.vlgmr.msra.gmra.mrb[2].mxu0 %v1541_v4 }
  0x10   :  { %1433 = vmatpush3.bf16.msra.mxu0 %v1594_v9  ;;  %1353 = vmatprep.mubr.msk.f32.mxu0 %vm1540_vm3, %v1541_v4 }
  0x11   :  { %1434 = vmatprep.subr.bf16.mxu0 %v1538_v0 }
  0x14   :  { %1436 = vmatpush3.bf16.msra.mxu0 %v1605_v12 }
  0x15   :  { %1443 = vmatprep.subr.bf16.mxu0 %v1538_v0 }
  0xda   :  { %v101_v20 = vpop.f32.mrb[0].mxu0  ;;  %v242_v21 = vpop.f32.mrb[0].mxu1 }
  0xdb   :  { %v102_v22 = vadd.f32 %v1233_v18, %v101_v20  ;;  %v243_v23 = vadd.f32 %v1233_v18, %v242_v21  ;;  %v1315_v24 = vpop.f32.mrb[1].mxu0  ;;  %v1322_v25 = vpop.f32.mrb[1].mxu1 }
  0xdd   :  { %v106_v26 = vcombine.high %v102_v22, %v102_v22  ;;  %v113_v27 = vrot.slane %v102_v22, %v112_v19  ;;  %v247_v28 = vcombine.high %v243_v23, %v243_v23  ;;  %v254_v29 = vrot.slane %v243_v23, %v112_v19 }
  0xdf   :  { %v120_v30 = vrot.slane %v106_v26, %v112_v19  ;;  %v121_v31 = vcombine.high %v113_v27, %v113_v27  ;;  %v129_v32 = vrot.slane %v113_v27, %v112_v19  ;;  %1236 = vst.sshfl [vmem:[#allocation2] sm:$0x1 pattern:$0x73625140] %v113_v27  ;;  %v261_v33 = vrot.slane %v247_v28, %v112_v19 }
  0xe0   :  { %1243 = vst.sshfl [vmem:[#allocation2 + $0x1] sm:$0x1 pattern:$0x73625140] %v254_v29  ;;  %v262_v34 = vcombine.high %v254_v29, %v254_v29  ;;  %v270_v35 = vrot.slane %v254_v29, %v112_v19 }
  0xe1   :  { %v122_v36 = vcombine.high %v120_v30, %v120_v30  ;;  %v136_v37 = vrot.slane %v120_v30, %v112_v19  ;;  %v143_v38 = vrot.slane %v121_v31, %v112_v19  ;;  %v151_v39 = vcombine.high %v129_v32, %v129_v32  ;;  %1237 = vst.sshfl [vmem:[#allocation2 + $0x2] sm:$0x1 pattern:$0x73625140] %v121_v31 }
  0xe2   :  { %1238 = vst.sshfl [vmem:[#allocation2 + $0x8] sm:$0x1 pattern:$0x73625140] %v120_v30  ;;  %v263_v40 = vcombine.high %v261_v33, %v261_v33  ;;  %v277_v41 = vrot.slane %v261_v33, %v112_v19  ;;  %v284_v42 = vrot.slane %v262_v34, %v112_v19  ;;  %v292_v43 = vcombine.high %v270_v35, %v270_v35  ;;  %v387_v44 = vpop.f32.mrb[2].mxu0 }
  0xe3   :  { %1245 = vst.sshfl [vmem:[#allocation2 + $0x9] sm:$0x1 pattern:$0x73625140] %v261_v33  ;;  %v150_v45 = vrot.slane %v122_v36, %v112_v19  ;;  %v152_v46 = vcombine.high %v136_v37, %v136_v37  ;;  %v153_v47 = vcombine.high %v143_v38, %v143_v38  ;;  %165 = vst [vmem:[#allocation2 + $0x4] sm:$0x1] %v151_v39 }
  0xe4   :  { %1244 = vst.sshfl [vmem:[#allocation2 + $0x3] sm:$0x1 pattern:$0x73625140] %v262_v34  ;;  %v1333_v48 = vpop.f32.mrb[3].mxu0  ;;  %v291_v49 = vrot.slane %v263_v40, %v112_v19  ;;  %v293_v50 = vcombine.high %v277_v41, %v277_v41  ;;  %v294_v51 = vcombine.high %v284_v42, %v284_v42 }
  0xe5   :  { %1239 = vst.sshfl [vmem:[#allocation2 + $0xa] sm:$0x1 pattern:$0x73625140] %v122_v36  ;;  %306 = vst [vmem:[#allocation2 + $0x5] sm:$0x1] %v292_v43  ;;  %v154_v52 = vcombine.high %v150_v45, %v150_v45 }
  0xe6   :  { %1246 = vst.sshfl [vmem:[#allocation2 + $0xb] sm:$0x1 pattern:$0x73625140] %v263_v40  ;;  %166 = vst [vmem:[#allocation2 + $0x6] sm:$0x1] %v153_v47  ;;  %v295_v53 = vcombine.high %v291_v49, %v291_v49 }
  0xe7   :  { %169 = vst [vmem:[#allocation2 + $0xc] sm:$0x1] %v152_v46  ;;  %307 = vst [vmem:[#allocation2 + $0x7] sm:$0x1] %v294_v51  ;;  %v316_v54 = vld [vmem:[#allocation2] sm:$0x3] }
  0xe8   :  { %310 = vst [vmem:[#allocation2 + $0xd] sm:$0x1] %v293_v50  ;;  %170 = vst [vmem:[#allocation2 + $0xe] sm:$0x1] %v154_v52  ;;  %v391_v55 = vadd.f32 %v387_v44, %v316_v54 }
  0xe9   :  { %311 = vst [vmem:[#allocation2 + $0xf] sm:$0x1] %v295_v53 }
  0xea   :  { %1474 = vtanh.f32 %v391_v55  ;;  %v1247_v57 = vmul.f32 -1.442695, %v391_v55 }
  0xeb   :  { %v423_v8 = vld [vmem:[#allocation2 + $0x2] sm:$0x3] }
  0xec   :  { %1476 = vpow2.f32 %v1247_v57  ;;  %v528_v28 = vld [vmem:[#allocation2 + $0x4] sm:$0x3] }
  0xee   :  { %v633_v46 = vld [vmem:[#allocation2 + $0x6] sm:$0x3] }
  0xf4   :  { %v1475_v56 = vpop.eup %1474 }
  0xf5   :  { %401 = vrot.lane.b32.xlu0 %v1475_v56, %s1543_s3 }
  0xf6   :  { %v1477_v58 = vpop.eup %1476 }
  0xf7   :  { %v395_v59 = vadd.f32 1.0, %v1477_v58 }
  0xf9   :  { %1478 = vrcp.f32 %v395_v59 }
 0x103   :  { %v1479_v60 = vpop.eup %1478 }
 0x104   :  { %v399_v63 = vmul.f32 0.0, %v1479_v60 }
 0x167   :  { %v402_v61 = vpop.permute.xlu0 %401 }
 0x168   :  { %v404_v62 = vmul.f32 %v1479_v60, %v402_v61 }
 0x16a   :  { %406 = vrot.lane.b32.xlu0 %v404_v62, %s1544_s30 }
 0x1dc   :  { %v407_v1 = vpop.permute.xlu0 %406 }
 0x1dd   :  { %v409_v2 = vadd.f32 %v407_v1, %v399_v63  ;;  %v738_v1 = vld [vmem:[#allocation2 + $0x8] sm:$0x3] }
 0x1df   :  { %1480 = vtanh.f32 %v409_v2 }
 0x1e9   :  { %v1481_v3 = vpop.eup %1480 }
 0x1ea   :  { %412 = vrot.lane.b32.xlu1 %v1481_v3, %s1543_s3 }
 0x25c   :  { %v413_v5 = vpop.permute.xlu1 %412 }
 0x25d   :  { %v415_v6 = vmul.f32 %v1479_v60, %v413_v5 }
 0x25f   :  { %417 = vrot.lane.b32.xlu1 %v415_v6, %s1544_s30 }
 0x2d1   :  { %v418_v7 = vpop.permute.xlu1 %417 }
 0x2d2   :  { %421 = vst.msk [vmem:[#allocation3] sm:$0x3] %vm420_vm5, %v418_v7  ;;  %1343 = vmatmul.mubr.msk.f32.vlgmr.msra.gmra.mrb[2].mxu1 %vm317_vm6, %v418_v7 }
 0x2d3   :  { %1439 = vmatpush3.bf16.msra.mxu1 %v1594_v9  ;;  %1364 = vmatprep.mubr.msk.f32.mxu1 %vm1540_vm3, %v1541_v4 }
 0x2d4   :  { %1440 = vmatprep.subr.bf16.mxu1 %v1538_v0 }
 0x2d7   :  { %1442 = vmatpush3.bf16.msra.mxu1 %v1605_v12 }
 0x2d8   :  { %1449 = vmatprep.subr.bf16.mxu1 %v1538_v0 }
 0x3a5   :  { %v492_v10 = vpop.f32.mrb[2].mxu1 }
 0x3a6   :  { %v496_v11 = vadd.f32 %v492_v10, %v423_v8  ;;  %v1344_v13 = vpop.f32.mrb[3].mxu1 }
 0x3a8   :  { %1482 = vtanh.f32 %v496_v11  ;;  %v1249_v15 = vmul.f32 -1.442695, %v496_v11 }
 0x3aa   :  { %1484 = vpow2.f32 %v1249_v15 }
 0x3b2   :  { %v1483_v14 = vpop.eup %1482 }
 0x3b3   :  { %506 = vrot.lane.b32.xlu0 %v1483_v14, %s1543_s3 }
 0x3b4   :  { %v1485_v16 = vpop.eup %1484 }
 0x3b5   :  { %v500_v17 = vadd.f32 1.0, %v1485_v16 }
 0x3b7   :  { %1486 = vrcp.f32 %v500_v17 }
 0x3c1   :  { %v1487_v18 = vpop.eup %1486 }
 0x3c2   :  { %v504_v21 = vmul.f32 %v1487_v18, %v409_v2 }
 0x425   :  { %v507_v19 = vpop.permute.xlu0 %506 }
 0x426   :  { %v509_v20 = vmul.f32 %v1487_v18, %v507_v19 }
 0x428   :  { %511 = vrot.lane.b32.xlu1 %v509_v20, %s1544_s30 }
 0x49a   :  { %v512_v22 = vpop.permute.xlu1 %511 }
 0x49b   :  { %v514_v23 = vadd.f32 %v512_v22, %v504_v21  ;;  %v843_v22 = vld [vmem:[#allocation2 + $0xa] sm:$0x3] }
 0x49d   :  { %1488 = vtanh.f32 %v514_v23 }
 0x4a7   :  { %v1489_v24 = vpop.eup %1488 }
 0x4a8   :  { %517 = vrot.lane.b32.xlu0 %v1489_v24, %s1543_s3 }
 0x51a   :  { %v518_v25 = vpop.permute.xlu0 %517 }
 0x51b   :  { %v520_v26 = vmul.f32 %v1487_v18, %v518_v25 }
 0x51d   :  { %522 = vrot.lane.b32.xlu1 %v520_v26, %s1544_s30 }
 0x58f   :  { %v523_v27 = vpop.permute.xlu1 %522 }
 0x590   :  { %526 = vst.msk [vmem:[#allocation3 + $0x2] sm:$0x3] %vm420_vm5, %v523_v27  ;;  %1354 = vmatmul.mubr.msk.f32.vlgmr.msra.gmra.mrb[4].mxu0 %vm317_vm6, %v523_v27 }
 0x591   :  { %1445 = vmatpush3.bf16.msra.mxu0 %v1594_v9  ;;  %1375 = vmatprep.mubr.msk.f32.mxu0 %vm1540_vm3, %v1541_v4 }
 0x592   :  { %1446 = vmatprep.subr.bf16.mxu0 %v1538_v0 }
 0x595   :  { %1448 = vmatpush3.bf16.msra.mxu0 %v1605_v12 }
 0x596   :  { %1455 = vmatprep.subr.bf16.mxu0 %v1538_v0 }
 0x663   :  { %v597_v29 = vpop.f32.mrb[4].mxu0 }
 0x664   :  { %v601_v30 = vadd.f32 %v597_v29, %v528_v28  ;;  %v1355_v31 = vpop.f32.mrb[5].mxu0 }
 0x666   :  { %1490 = vtanh.f32 %v601_v30  ;;  %v1251_v33 = vmul.f32 -1.442695, %v601_v30 }
 0x668   :  { %1492 = vpow2.f32 %v1251_v33 }
 0x670   :  { %v1491_v32 = vpop.eup %1490 }
 0x671   :  { %611 = vrot.lane.b32.xlu0 %v1491_v32, %s1543_s3 }
 0x672   :  { %v1493_v34 = vpop.eup %1492 }
 0x673   :  { %v605_v35 = vadd.f32 1.0, %v1493_v34 }
 0x675   :  { %1494 = vrcp.f32 %v605_v35 }
 0x67f   :  { %v1495_v36 = vpop.eup %1494 }
 0x680   :  { %v609_v39 = vmul.f32 %v1495_v36, %v514_v23 }
 0x6e3   :  { %v612_v37 = vpop.permute.xlu0 %611 }
 0x6e4   :  { %v614_v38 = vmul.f32 %v1495_v36, %v612_v37 }
 0x6e6   :  { %616 = vrot.lane.b32.xlu1 %v614_v38, %s1544_s30 }
 0x758   :  { %v617_v40 = vpop.permute.xlu1 %616 }
 0x759   :  { %v619_v41 = vadd.f32 %v617_v40, %v609_v39 }
 0x75b   :  { %1496 = vtanh.f32 %v619_v41 }
 0x765   :  { %v1497_v42 = vpop.eup %1496 }
 0x766   :  { %622 = vrot.lane.b32.xlu0 %v1497_v42, %s1543_s3 }
 0x7d8   :  { %v623_v43 = vpop.permute.xlu0 %622 }
 0x7d9   :  { %v625_v44 = vmul.f32 %v1495_v36, %v623_v43  ;;  %v948_v36 = vld [vmem:[#allocation2 + $0xc] sm:$0x3] }
 0x7db   :  { %627 = vrot.lane.b32.xlu1 %v625_v44, %s1544_s30 }
 0x84d   :  { %v628_v45 = vpop.permute.xlu1 %627 }
 0x84e   :  { %631 = vst.msk [vmem:[#allocation3 + $0x4] sm:$0x3] %vm420_vm5, %v628_v45  ;;  %1365 = vmatmul.mubr.msk.f32.vlgmr.msra.gmra.mrb[4].mxu1 %vm317_vm6, %v628_v45 }
 0x84f   :  { %1451 = vmatpush3.bf16.msra.mxu1 %v1594_v9  ;;  %1386 = vmatprep.mubr.msk.f32.mxu1 %vm1540_vm3, %v1541_v4 }
 0x850   :  { %1452 = vmatprep.subr.bf16.mxu1 %v1538_v0 }
 0x853   :  { %1454 = vmatpush3.bf16.msra.mxu1 %v1605_v12 }
 0x854   :  { %1461 = vmatprep.subr.bf16.mxu1 %v1538_v0 }
 0x921   :  { %v702_v47 = vpop.f32.mrb[4].mxu1 }
 0x922   :  { %v706_v48 = vadd.f32 %v702_v47, %v633_v46  ;;  %v1366_v49 = vpop.f32.mrb[5].mxu1 }
 0x924   :  { %1498 = vtanh.f32 %v706_v48  ;;  %v1253_v51 = vmul.f32 -1.442695, %v706_v48 }
 0x926   :  { %1500 = vpow2.f32 %v1253_v51 }
 0x92e   :  { %v1499_v50 = vpop.eup %1498 }
 0x92f   :  { %716 = vrot.lane.b32.xlu0 %v1499_v50, %s1543_s3 }
 0x930   :  { %v1501_v52 = vpop.eup %1500 }
 0x931   :  { %v710_v53 = vadd.f32 1.0, %v1501_v52 }
 0x933   :  { %1502 = vrcp.f32 %v710_v53 }
 0x93d   :  { %v1503_v54 = vpop.eup %1502 }
 0x93e   :  { %v714_v57 = vmul.f32 %v1503_v54, %v619_v41 }
 0x9a1   :  { %v717_v55 = vpop.permute.xlu0 %716 }
 0x9a2   :  { %v719_v56 = vmul.f32 %v1503_v54, %v717_v55 }
 0x9a4   :  { %721 = vrot.lane.b32.xlu1 %v719_v56, %s1544_s30 }
 0xa16   :  { %v722_v58 = vpop.permute.xlu1 %721 }
 0xa17   :  { %v724_v59 = vadd.f32 %v722_v58, %v714_v57 }
 0xa19   :  { %1504 = vtanh.f32 %v724_v59 }
 0xa23   :  { %v1505_v60 = vpop.eup %1504 }
 0xa24   :  { %727 = vrot.lane.b32.xlu0 %v1505_v60, %s1543_s3 }
 0xa96   :  { %v728_v61 = vpop.permute.xlu0 %727 }
 0xa97   :  { %v730_v62 = vmul.f32 %v1503_v54, %v728_v61  ;;  %v1053_v54 = vld [vmem:[#allocation2 + $0xe] sm:$0x3] }
 0xa99   :  { %732 = vrot.lane.b32.xlu1 %v730_v62, %s1544_s30 }
 0xb0b   :  { %v733_v63 = vpop.permute.xlu1 %732 }
 0xb0c   :  { %736 = vst.msk [vmem:[#allocation3 + $0x6] sm:$0x3] %vm420_vm5, %v733_v63  ;;  %1376 = vmatmul.mubr.msk.f32.vlgmr.msra.gmra.mrb[6].mxu0 %vm317_vm6, %v733_v63 }
 0xb0d   :  { %1457 = vmatpush3.bf16.msra.mxu0 %v1594_v9  ;;  %1397 = vmatprep.mubr.msk.f32.mxu0 %vm1540_vm3, %v1541_v4 }
 0xb0e   :  { %1458 = vmatprep.subr.bf16.mxu0 %v1538_v0 }
 0xb11   :  { %1460 = vmatpush3.bf16.msra.mxu0 %v1605_v12 }
 0xbdf   :  { %v807_v2 = vpop.f32.mrb[6].mxu0 }
 0xbe0   :  { %v811_v3 = vadd.f32 %v807_v2, %v738_v1  ;;  %v1377_v5 = vpop.f32.mrb[7].mxu0 }
 0xbe2   :  { %1506 = vtanh.f32 %v811_v3  ;;  %v1255_v7 = vmul.f32 -1.442695, %v811_v3 }
 0xbe4   :  { %1508 = vpow2.f32 %v1255_v7 }
 0xbec   :  { %v1507_v6 = vpop.eup %1506 }
 0xbed   :  { %821 = vrot.lane.b32.xlu0 %v1507_v6, %s1543_s3 }
 0xbee   :  { %v1509_v8 = vpop.eup %1508 }
 0xbef   :  { %v815_v10 = vadd.f32 1.0, %v1509_v8 }
 0xbf1   :  { %1510 = vrcp.f32 %v815_v10  ;;  %v1158_v10 = vld [vmem:[#allocation3 + $0x2] sm:$0x1] }
 0xbfb   :  { %v1511_v11 = vpop.eup %1510 }
 0xbfc   :  { %v819_v15 = vmul.f32 %v1511_v11, %v724_v59 }
 0xc5f   :  { %v822_v13 = vpop.permute.xlu0 %821 }
 0xc60   :  { %v824_v14 = vmul.f32 %v1511_v11, %v822_v13  ;;  %v1159_v13 = vld [vmem:[#allocation3 + $0x4] sm:$0x1] }
 0xc62   :  { %826 = vrot.lane.b32.xlu1 %v824_v14, %s1544_s30  ;;  %v1173_v14 = vrot.slane %v1158_v10, 7 }
 0xcd4   :  { %v827_v16 = vpop.permute.xlu1 %826 }
 0xcd5   :  { %v829_v17 = vadd.f32 %v827_v16, %v819_v15  ;;  %v1198_v15 = vld [vmem:[#allocation3 + $0x5] sm:$0x1]  ;;  %v1157_v16 = vld [vmem:[#allocation3] sm:$0x1] }
 0xcd7   :  { %1512 = vtanh.f32 %v829_v17 }
 0xce1   :  { %v1513_v18 = vpop.eup %1512 }
 0xce2   :  { %832 = vrot.lane.b32.xlu0 %v1513_v18, %s1543_s3  ;;  %v1160_v18 = vld [vmem:[#allocation3 + $0x6] sm:$0x1] }
 0xd54   :  { %v833_v19 = vpop.permute.xlu0 %832 }
 0xd55   :  { %v835_v20 = vmul.f32 %v1511_v11, %v833_v19  ;;  %v1197_v11 = vld [vmem:[#allocation3 + $0x3] sm:$0x1]  ;;  %v1199_v19 = vld [vmem:[#allocation3 + $0x7] sm:$0x1] }
 0xd57   :  { %837 = vrot.lane.b32.xlu1 %v835_v20, %s1544_s30 }
 0xdc9   :  { %v838_v21 = vpop.permute.xlu1 %837 }
 0xdca   :  { %841 = vst.msk [vmem:[#allocation3 + $0x8] sm:$0x3] %vm420_vm5, %v838_v21  ;;  %1387 = vmatmul.mubr.msk.f32.vlgmr.msra.gmra.mrb[6].mxu1 %vm317_vm6, %v838_v21  ;;  %v1196_v21 = vld [vmem:[#allocation3 + $0x1] sm:$0x1] }
 0xdcb   :  { %1463 = vmatpush3.bf16.msra.mxu1 %v1594_v9  ;;  %1408 = vmatprep.mubr.msk.f32.mxu1 %vm1540_vm3, %v1541_v4 }
 0xdcc   :  { %1464 = vmatprep.subr.bf16.mxu1 %v1538_v0 }
 0xdcf   :  { %1466 = vmatpush3.bf16.msra.mxu1 %v1605_v12 }
 0xe9d   :  { %v912_v23 = vpop.f32.mrb[6].mxu1 }
 0xe9e   :  { %v916_v24 = vadd.f32 %v912_v23, %v843_v22  ;;  %v1388_v25 = vpop.f32.mrb[7].mxu1  ;;  %v1176_v22 = vrot.slane %v1159_v13, 6  ;;  %v1161_v23 = vld [vmem:[#allocation3 + $0x8] sm:$0x1] }
 0xe9f   :  { %v1214_v25 = vrot.slane %v1198_v15, 6 }
 0xea0   :  { %1514 = vtanh.f32 %v916_v24  ;;  %v1257_v27 = vmul.f32 -1.442695, %v916_v24  ;;  %v1200_v24 = vld [vmem:[#allocation3 + $0x9] sm:$0x1] }
 0xea2   :  { %1516 = vpow2.f32 %v1257_v27 }
 0xeaa   :  { %v1515_v26 = vpop.eup %1514 }
 0xeab   :  { %926 = vrot.lane.b32.xlu0 %v1515_v26, %s1543_s3 }
 0xeac   :  { %v1517_v28 = vpop.eup %1516 }
 0xead   :  { %v920_v29 = vadd.f32 1.0, %v1517_v28  ;;  %v1175_v28 = vsel %vm1174_vm7, %v1173_v14, %v1157_v16 }
 0xeaf   :  { %1518 = vrcp.f32 %v920_v29  ;;  %v1179_v29 = vrot.slane %v1160_v18, 5 }
 0xeb9   :  { %v1519_v9 = vpop.eup %1518 }
 0xeba   :  { %v924_v0 = vmul.f32 %v1519_v9, %v829_v17  ;;  %v1212_v17 = vrot.slane %v1197_v11, 7 }
 0xf1d   :  { %v927_v30 = vpop.permute.xlu0 %926 }
 0xf1e   :  { %v929_v4 = vmul.f32 %v1519_v9, %v927_v30 }
 0xf20   :  { %931 = vrot.lane.b32.xlu1 %v929_v4, %s1544_s30 }
 0xf92   :  { %v932_v12 = vpop.permute.xlu1 %931 }
 0xf93   :  { %v934_v31 = vadd.f32 %v932_v12, %v924_v0  ;;  %v1213_v0 = vsel %vm1174_vm7, %v1212_v17, %v1196_v21  ;;  %v1182_v12 = vrot.slane %v1161_v23, 4 }
 0xf95   :  { %1520 = vtanh.f32 %v934_v31 }
 0xf9f   :  { %v1521_v32 = vpop.eup %1520 }
 0xfa0   :  { %937 = vrot.lane.b32.xlu0 %v1521_v32, %s1543_s3  ;;  %v1178_v32 = vsel %vm1177_vm8, %v1176_v22, %v1175_v28 }
0x1012   :  { %v938_v33 = vpop.permute.xlu0 %937 }
0x1013   :  { %v940_v34 = vmul.f32 %v1519_v9, %v938_v33  ;;  %v1216_v9 = vrot.slane %v1199_v19, 5 }
0x1015   :  { %942 = vrot.lane.b32.xlu1 %v940_v34, %s1544_s30 }
0x1087   :  { %v943_v35 = vpop.permute.xlu1 %942 }
0x1088   :  { %946 = vst.msk [vmem:[#allocation3 + $0xa] sm:$0x3] %vm420_vm5, %v943_v35  ;;  %1398 = vmatmul.mubr.msk.f32.vlgmr.msra.gmra.mrb[8].mxu0 %vm317_vm6, %v943_v35  ;;  %v1215_v35 = vsel %vm1177_vm8, %v1214_v25, %v1213_v0 }
0x108f   :  { %v1162_v26 = vld [vmem:[#allocation3 + $0xa] sm:$0x1]  ;;  %v1201_v27 = vld [vmem:[#allocation3 + $0xb] sm:$0x1] }
0x1090   :  { %v1185_v33 = vrot.slane %v1162_v26, 3  ;;  %v1220_v34 = vrot.slane %v1201_v27, 3 }
0x115b   :  { %v1017_v37 = vpop.f32.mrb[8].mxu0 }
0x115c   :  { %v1021_v38 = vadd.f32 %v1017_v37, %v948_v36  ;;  %v1399_v39 = vpop.f32.mrb[9].mxu0 }
0x115d   :  { %v1217_v39 = vsel %vm1180_vm9, %v1216_v9, %v1215_v35 }
0x115e   :  { %1522 = vtanh.f32 %v1021_v38  ;;  %v1259_v41 = vmul.f32 -1.442695, %v1021_v38  ;;  %v1181_v38 = vsel %vm1180_vm9, %v1179_v29, %v1178_v32 }
0x1160   :  { %1524 = vpow2.f32 %v1259_v41 }
0x1168   :  { %v1523_v40 = vpop.eup %1522 }
0x1169   :  { %1031 = vrot.lane.b32.xlu0 %v1523_v40, %s1543_s3  ;;  %v1184_v40 = vsel %vm1183_vm10, %v1182_v12, %v1181_v38 }
0x116a   :  { %v1525_v42 = vpop.eup %1524 }
0x116b   :  { %v1025_v43 = vadd.f32 1.0, %v1525_v42 }
0x116d   :  { %1526 = vrcp.f32 %v1025_v43 }
0x1177   :  { %v1527_v44 = vpop.eup %1526 }
0x1178   :  { %v1029_v47 = vmul.f32 %v1527_v44, %v934_v31  ;;  %v1218_v31 = vrot.slane %v1200_v24, 4 }
0x117a   :  { %v1219_v41 = vsel %vm1183_vm10, %v1218_v31, %v1217_v39 }
0x11db   :  { %v1032_v45 = vpop.permute.xlu0 %1031 }
0x11dc   :  { %v1034_v46 = vmul.f32 %v1527_v44, %v1032_v45  ;;  %v1221_v45 = vsel %vm1186_vm11, %v1220_v34, %v1219_v41 }
0x11de   :  { %1036 = vrot.lane.b32.xlu1 %v1034_v46, %s1544_s30 }
0x1250   :  { %v1037_v48 = vpop.permute.xlu1 %1036 }
0x1251   :  { %v1039_v49 = vadd.f32 %v1037_v48, %v1029_v47 }
0x1253   :  { %1528 = vtanh.f32 %v1039_v49 }
0x125d   :  { %v1529_v50 = vpop.eup %1528 }
0x125e   :  { %1042 = vrot.lane.b32.xlu0 %v1529_v50, %s1543_s3 }
0x12d0   :  { %v1043_v51 = vpop.permute.xlu0 %1042 }
0x12d1   :  { %v1045_v52 = vmul.f32 %v1527_v44, %v1043_v51  ;;  %v1187_v44 = vsel %vm1186_vm11, %v1185_v33, %v1184_v40 }
0x12d3   :  { %1047 = vrot.lane.b32.xlu1 %v1045_v52, %s1544_s30 }
0x1345   :  { %v1048_v53 = vpop.permute.xlu1 %1047 }
0x1346   :  { %1051 = vst.msk [vmem:[#allocation3 + $0xc] sm:$0x3] %vm420_vm5, %v1048_v53  ;;  %1409 = vmatmul.mubr.msk.f32.vlgmr.msra.gmra.mrb[8].mxu1 %vm317_vm6, %v1048_v53 }
0x134d   :  { %v1163_v30 = vld [vmem:[#allocation3 + $0xc] sm:$0x1]  ;;  %v1202_v4 = vld [vmem:[#allocation3 + $0xd] sm:$0x1] }
0x134e   :  { %v1188_v36 = vrot.slane %v1163_v30, 2  ;;  %v1222_v37 = vrot.slane %v1202_v4, 2 }
0x1350   :  { %v1190_v48 = vsel %vm1189_vm12, %v1188_v36, %v1187_v44 }
0x1419   :  { %v1122_v55 = vpop.f32.mrb[8].mxu1 }
0x141a   :  { %v1126_v56 = vadd.f32 %v1122_v55, %v1053_v54  ;;  %v1410_v57 = vpop.f32.mrb[9].mxu1 }
0x141c   :  { %1530 = vtanh.f32 %v1126_v56  ;;  %v1261_v59 = vmul.f32 -1.442695, %v1126_v56 }
0x141e   :  { %1532 = vpow2.f32 %v1261_v59 }
0x1426   :  { %v1531_v58 = vpop.eup %1530 }
0x1427   :  { %1136 = vrot.lane.b32.xlu0 %v1531_v58, %s1543_s3 }
0x1428   :  { %v1533_v60 = vpop.eup %1532 }
0x1429   :  { %v1130_v61 = vadd.f32 1.0, %v1533_v60 }
0x142b   :  { %1534 = vrcp.f32 %v1130_v61 }
0x1435   :  { %v1535_v62 = vpop.eup %1534 }
0x1436   :  { %v1134_v2 = vmul.f32 %v1535_v62, %v1039_v49  ;;  %v1223_v49 = vsel %vm1189_vm12, %v1222_v37, %v1221_v45 }
0x1499   :  { %v1137_v63 = vpop.permute.xlu0 %1136 }
0x149a   :  { %v1139_v1 = vmul.f32 %v1535_v62, %v1137_v63 }
0x149c   :  { %1141 = vrot.lane.b32.xlu1 %v1139_v1, %s1544_s30 }
0x150e   :  { %v1142_v3 = vpop.permute.xlu1 %1141 }
0x150f   :  { %v1144_v5 = vadd.f32 %v1142_v3, %v1134_v2 }
0x1511   :  { %1536 = vtanh.f32 %v1144_v5 }
0x151b   :  { %v1537_v6 = vpop.eup %1536 }
0x151c   :  { %1147 = vrot.lane.b32.xlu0 %v1537_v6, %s1543_s3 }
0x158e   :  { %v1148_v7 = vpop.permute.xlu0 %1147 }
0x158f   :  { %v1150_v8 = vmul.f32 %v1535_v62, %v1148_v7 }
0x1591   :  { %1152 = vrot.lane.b32.xlu1 %v1150_v8, %s1544_s30 }
0x1603   :  { %v1153_v20 = vpop.permute.xlu1 %1152 }
0x1604   :  { %1156 = vst.msk [vmem:[#allocation3 + $0xe] sm:$0x3] %vm420_vm5, %v1153_v20 }
0x160b   :  { %v1164_v42 = vld [vmem:[#allocation3 + $0xe] sm:$0x1]  ;;  %v1203_v43 = vld [vmem:[#allocation3 + $0xf] sm:$0x1] }
0x160c   :  { %v1191_v46 = vrot.slane %v1164_v42, 1  ;;  %v1224_v47 = vrot.slane %v1203_v43, 1 }
0x160e   :  { %v1193_v50 = vsel %vm1192_vm13, %v1191_v46, %v1190_v48  ;;  %v1225_v51 = vsel %vm1192_vm13, %v1224_v47, %v1223_v49 }
0x160f   :  { %1195 = vst.msk [vmem:[%s1719_s4] sm:$0xff] %vm317_vm6, %v1193_v50  ;;  %1262 = vst.msk [vmem:[%s1719_s4 + $0x8] sm:$0xff] %vm317_vm6, %v1225_v51 }

// kernel: rnnt_forward.5
= control target key start
LH: loop header
LB: loop body
LE: loop exit
PB: predicated region body
PF: predicated region fallthrough
CT: control target
= control target key end

     0   :  { %s1126_s27 = smov 0   ;;  %s1337_s0 = inlined_call_operand.vmem [shape: f32[2,8,32], index: 0, kind: input, shape index: {}]   ;;  %s1338_s1 = inlined_call_operand.vmem [shape: f32[2,8,32], index: 1, kind: input, shape index: {}]   ;;  %s1339_s2 = inlined_call_operand.vmem [shape: f32[32,256], index: 2, kind: input, shape index: {}]   ;;  %s1340_s3 = inlined_call_operand.vmem [shape: f32[1,256], index: 3, kind: input, shape index: {}]   ;;  %s1341_s4 = inlined_call_operand.vmem [shape: f32[32,256], index: 4, kind: input, shape index: {}]   ;;  %s1342_s5 = inlined_call_operand.vmem [shape: f32[1,256], index: 5, kind: input, shape index: {}]   ;;  %s1343_s6 = inlined_call_operand.vmem [shape: f32[256,128], index: 6, kind: input, shape index: {}]   ;;  %s1344_s7 = inlined_call_operand.vmem [shape: f32[1,128], index: 7, kind: input, shape index: {}]   ;;  %s1345_s8 = inlined_call_operand.vmem [shape: f32[2,64,128], index: 8, kind: output, shape index: {}]  }
   0x1 LB: > { %s894_s28 = sadd.s32 4294967295, %s1077_s27   ;;  %p898_p0 = scmp.ge.s32.totalorder %s1077_s27, 1  ;;  %s1077_s27 = sphi %s1126_s27, %s18_s27  }
   0x2   : > { %p270_p1 = scmp.lt.s32.totalorder %s1077_s27, 3 }
   0x4   : > { %p271_p2 = pnand %p898_p0, %p270_p1 }
   0x5   : > { %v323_v0 = vld [vmem:[%s1339_s2 + $0x8] sm:$0xff] (!%p271_p2)  ;;  %v325_v1 = vld [vmem:[%s1339_s2 + $0x18] sm:$0xff] (!%p271_p2)  ;;  %v322_v2 = vld [vmem:[%s1339_s2] sm:$0xff] (!%p271_p2)  ;;  %p307_p3 = scmp.lt.s32.totalorder (!%p271_p2), %s894_s28, 1  ;;  %v1079_v7 = vmov (!%p271_p2), 0.0   ;;  %vm342_vm0 = vcmask (!%p271_p2), 261120  }
   0x6   : > { %274 = sbr.rel (%p271_p2) target bundleno = 490 (0x1ea), region = 52  ;;  %v965_v3 = vpack.c.bf16 (!%p271_p2), %v325_v1, %v323_v0  ;;  %v324_v4 = vld [vmem:[%s1339_s2 + $0x10] sm:$0xff] (!%p271_p2)  ;;  %v327_v5 = vld [vmem:[%s1339_s2 + $0x28] sm:$0xff] (!%p271_p2)  ;;  %v329_v6 = vld [vmem:[%s1339_s2 + $0x38] sm:$0xff] (!%p271_p2)  ;;  %410 = vmatprep.mubr.f32.mxu0 (!%p271_p2), %v1079_v7  ;;  %504 = vmatprep.mubr.f32.mxu1 (!%p271_p2), %v1079_v7 }
   0x7   : > { %v967_v8 = vpack.c.bf16 (!%p271_p2), %v324_v4, %v322_v2  ;;  %v969_v9 = vpack.c.bf16 (!%p271_p2), %v329_v6, %v327_v5  ;;  %v326_v10 = vld [vmem:[%s1339_s2 + $0x20] sm:$0xff] (!%p271_p2)  ;;  %v328_v11 = vld [vmem:[%s1339_s2 + $0x30] sm:$0xff] (!%p271_p2)  ;;  %v418_v12 = vld [vmem:[%s1341_s4 + $0x8] sm:$0xff] (!%p271_p2) }
   0x8   : > { %966 = vmatprep.subr.bf16.mxu0 (!%p271_p2), %v965_v3  ;;  %v420_v13 = vld [vmem:[%s1341_s4 + $0x18] sm:$0xff] (!%p271_p2)  ;;  %v417_v14 = vld [vmem:[%s1341_s4] sm:$0xff] (!%p271_p2)  ;;  %v419_v15 = vld [vmem:[%s1341_s4 + $0x10] sm:$0xff] (!%p271_p2)  ;;  %v971_v16 = vpack.c.bf16 (!%p271_p2), %v328_v11, %v326_v10  ;;  %v332_v11 = vlaneseq (!%p271_p2) }
   0x9   : > { %968 = vmatpush1.bf16.msra.mxu0 (!%p271_p2), %v967_v8  ;;  %v973_v17 = vpack.c.bf16 (!%p271_p2), %v420_v13, %v418_v12  ;;  %v975_v18 = vpack.c.bf16 (!%p271_p2), %v419_v15, %v417_v14  ;;  %v422_v19 = vld [vmem:[%s1341_s4 + $0x28] sm:$0xff] (!%p271_p2)  ;;  %v424_v20 = vld [vmem:[%s1341_s4 + $0x38] sm:$0xff] (!%p271_p2)  ;;  %v421_v21 = vld [vmem:[%s1341_s4 + $0x20] sm:$0xff] (!%p271_p2) }
   0xa   : > { %970 = vmatprep.subr.bf16.mxu0 (!%p271_p2), %v969_v9  ;;  %v977_v22 = vpack.c.bf16 (!%p271_p2), %v424_v20, %v422_v19  ;;  %v423_v23 = vld [vmem:[%s1341_s4 + $0x30] sm:$0xff] (!%p271_p2)  ;;  %v691_v24 = vld [vmem:[%s1343_s6 + $0x80] sm:$0xff] (!%p271_p2)  ;;  %v692_v25 = vld [vmem:[%s1343_s6 + $0x88] sm:$0xff] (!%p271_p2)  ;;  %v333_v12 = vshrl.u32 (!%p271_p2), %v332_v11, 7 }
   0xb   : > { %974 = vmatprep.subr.bf16.mxu1 (!%p271_p2), %v973_v17  ;;  %v981_v26 = vpack.c.bf16 (!%p271_p2), %v692_v25, %v691_v24  ;;  %v675_v27 = vld [vmem:[%s1343_s6] sm:$0xff] (!%p271_p2)  ;;  %v676_v28 = vld [vmem:[%s1343_s6 + $0x8] sm:$0xff] (!%p271_p2)  ;;  %v979_v29 = vpack.c.bf16 (!%p271_p2), %v423_v23, %v421_v21  ;;  %v693_v30 = vld [vmem:[%s1343_s6 + $0x90] sm:$0xff] (!%p271_p2) }
   0xc   : > { %976 = vmatpush1.bf16.msra.mxu1 (!%p271_p2), %v975_v18  ;;  %v694_v31 = vld [vmem:[%s1343_s6 + $0x98] sm:$0xff] (!%p271_p2)  ;;  %v983_v33 = vpack.c.bf16 (!%p271_p2), %v676_v28, %v675_v27  ;;  %v677_v35 = vld [vmem:[%s1343_s6 + $0x10] sm:$0xff] (!%p271_p2)  ;;  %v695_v39 = vld [vmem:[%s1343_s6 + $0xa0] sm:$0xff] (!%p271_p2)  ;;  %v1287_v13 = vsub.s32 (!%p271_p2), 0, %v333_v12  ;;  %v1292_v15 = vsub.s32 (!%p271_p2), 1, %v333_v12 }
   0xd   : > { %s1347_s28 = smov (!%p307_p3, %s894_s28), 1  ;;  %972 = vmatpush1.bf16.msra.mxu0 %v971_v16  ;;  %978 = vmatprep.subr.bf16.mxu1 %v977_v22  ;;  %v985_v34 = vpack.c.bf16 %v694_v31, %v693_v30  ;;  %v678_v36 = vld [vmem:[%s1343_s6 + $0x18] sm:$0xff]  ;;  %v696_v40 = vld [vmem:[%s1343_s6 + $0xa8] sm:$0xff]  ;;  %v679_v42 = vld [vmem:[%s1343_s6 + $0x20] sm:$0xff]  ;;  %v1080_v16 = vmov 1966171168  }
   0xe   : > { %s899_s11 = sshll.u32 %s1347_s28, 3  ;;  %982 = vmatprep.subr.bf16.mxu0 %v981_v26  ;;  %v987_v38 = vpack.c.bf16 %v678_v36, %v677_v35  ;;  %v989_v41 = vpack.c.bf16 %v696_v40, %v695_v39  ;;  %v680_v43 = vld [vmem:[%s1343_s6 + $0x28] sm:$0xff]  ;;  %v697_v45 = vld [vmem:[%s1343_s6 + $0xb0] sm:$0xff]  ;;  %v698_v46 = vld [vmem:[%s1343_s6 + $0xb8] sm:$0xff]  ;;  %v516_v17 = vunpack.c.l.s4 %v1080_v16  ;;  %s908_s15 = sshll.u32 %s1347_s28, 6 }
   0xf   : > { %s310_s20 = scalar_lea.vmem %s1337_s0, %s899_s11  ;;  %s314_s18 = scalar_lea.vmem %s1338_s1, %s899_s11  ;;  %v991_v44 = vpack.c.bf16 %v680_v43, %v679_v42  ;;  %v993_v47 = vpack.c.bf16 %v698_v46, %v697_v45  ;;  %v681_v48 = vld [vmem:[%s1343_s6 + $0x30] sm:$0xff]  ;;  %v682_v49 = vld [vmem:[%s1343_s6 + $0x38] sm:$0xff]  ;;  %v699_v51 = vld [vmem:[%s1343_s6 + $0xc0] sm:$0xff] }
  0x10   : > { %v320_v32 = vld [vmem:[%s310_s20] sm:$0xff]  ;;  %980 = vmatpush1.bf16.msra.mxu1 %v979_v29  ;;  %v995_v50 = vpack.c.bf16 %v682_v49, %v681_v48  ;;  %v700_v52 = vld [vmem:[%s1343_s6 + $0xc8] sm:$0xff]  ;;  %v701_v57 = vld [vmem:[%s1343_s6 + $0xd0] sm:$0xff]  ;;  %v517_v20 = vunpack.c.0.s8 %v516_v17  ;;  %s1324_s21 = scalar_lea.vmem %s1345_s8, %s908_s15 }
  0x11   : > { %903 = vmatmul.mubr.msk.f32.vlgmr.msra.gmra.mrb[0].mxu0 %vm342_vm0, %v320_v32  ;;  %v321_v37 = vld [vmem:[%s314_s18] sm:$0xff]  ;;  %1013 = vmatprep.subr.bf16.mxu1 %v981_v26  ;;  %v997_v53 = vpack.c.bf16 %v700_v52, %v699_v51  ;;  %v684_v55 = vld [vmem:[%s1343_s6 + $0x48] sm:$0xff]  ;;  %v702_v58 = vld [vmem:[%s1343_s6 + $0xd8] sm:$0xff] }
  0x12   : > { %984 = vmatpush3.bf16.msra.mxu0 %v983_v33  ;;  %v683_v54 = vld [vmem:[%s1343_s6 + $0x40] sm:$0xff]  ;;  %v1001_v59 = vpack.c.bf16 %v702_v58, %v701_v57  ;;  %v685_v60 = vld [vmem:[%s1343_s6 + $0x50] sm:$0xff]  ;;  %v686_v61 = vld [vmem:[%s1343_s6 + $0x58] sm:$0xff]  ;;  %v520_v25 = vsub.s32 %v517_v20, %v333_v12 }
  0x13   : > { %986 = vmatprep.subr.bf16.mxu0 %v985_v34  ;;  %904 = vmatmul.mubr.msk.f32.vlgmr.msra.gmra.mrb[0].mxu1 %vm342_vm0, %v321_v37  ;;  %v999_v56 = vpack.c.bf16 %v684_v55, %v683_v54  ;;  %v1003_v62 = vpack.c.bf16 %v686_v61, %v685_v60  ;;  %v703_v63 = vld [vmem:[%s1343_s6 + $0xe0] sm:$0xff]  ;;  %v704_v0 = vld [vmem:[%s1343_s6 + $0xe8] sm:$0xff]  ;;  %v705_v4 = vld [vmem:[%s1343_s6 + $0xf0] sm:$0xff] }
  0x14   : > { %1021 = vmatpush3.bf16.msra.mxu1 %v983_v33  ;;  %v687_v1 = vld [vmem:[%s1343_s6 + $0x60] sm:$0xff]  ;;  %v1005_v2 = vpack.c.bf16 %v704_v0, %v703_v63  ;;  %v688_v3 = vld [vmem:[%s1343_s6 + $0x68] sm:$0xff]  ;;  %v706_v5 = vld [vmem:[%s1343_s6 + $0xf8] sm:$0xff] }
  0x15   : > { %1014 = vmatprep.subr.bf16.mxu1 %v985_v34  ;;  %v1007_v6 = vpack.c.bf16 %v688_v3, %v687_v1  ;;  %v1009_v7 = vpack.c.bf16 %v706_v5, %v705_v4  ;;  %v689_v8 = vld [vmem:[%s1343_s6 + $0x70] sm:$0xff]  ;;  %v690_v9 = vld [vmem:[%s1343_s6 + $0x78] sm:$0xff]  ;;  %v330_v14 = vld [vmem:[%s1340_s3] sm:$0x3] }
  0x16   : > { %988 = vmatpush3.bf16.msra.mxu0 %v987_v38  ;;  %v1011_v10 = vpack.c.bf16 %v690_v9, %v689_v8  ;;  %v335_v18 = vrot.slane %v330_v14, %v1287_v13  ;;  %v339_v19 = vrot.slane %v330_v14, %v1292_v15  ;;  %v425_v26 = vld [vmem:[%s1342_s5] sm:$0x3] }
  0x17   : > { %990 = vmatprep.subr.bf16.mxu0 %v989_v41  ;;  %v430_v31 = vrot.slane %v425_v26, %v1287_v13  ;;  %v434_v32 = vrot.slane %v425_v26, %v1292_v15 }
  0x18   : > { %1022 = vmatpush3.bf16.msra.mxu1 %v987_v38 }
  0x19   : > { %1015 = vmatprep.subr.bf16.mxu1 %v989_v41 }
  0x1a   : > { %992 = vmatpush3.bf16.msra.mxu0 %v991_v44 }
  0x1b   : > { %994 = vmatprep.subr.bf16.mxu0 %v993_v47 }
  0x1c   : > { %1023 = vmatpush3.bf16.msra.mxu1 %v991_v44 }
  0x1d   : > { %1016 = vmatprep.subr.bf16.mxu1 %v993_v47 }
  0x1e   : > { %996 = vmatpush3.bf16.msra.mxu0 %v995_v50 }
  0x1f   : > { %998 = vmatprep.subr.bf16.mxu0 %v997_v53 }
  0x20   : > { %1024 = vmatpush3.bf16.msra.mxu1 %v995_v50 }
  0x21   : > { %1017 = vmatprep.subr.bf16.mxu1 %v997_v53 }
  0x22   : > { %1000 = vmatpush3.bf16.msra.mxu0 %v999_v56 }
  0x23   : > { %1002 = vmatprep.subr.bf16.mxu0 %v1001_v59 }
  0x24   : > { %1025 = vmatpush3.bf16.msra.mxu1 %v999_v56 }
  0x25   : > { %1018 = vmatprep.subr.bf16.mxu1 %v1001_v59 }
  0x26   : > { %1004 = vmatpush3.bf16.msra.mxu0 %v1003_v62 }
  0x27   : > { %1006 = vmatprep.subr.bf16.mxu0 %v1005_v2 }
  0x28   : > { %1026 = vmatpush3.bf16.msra.mxu1 %v1003_v62 }
  0x29   : > { %1019 = vmatprep.subr.bf16.mxu1 %v1005_v2 }
  0x2a   : > { %1008 = vmatpush3.bf16.msra.mxu0 %v1007_v6 }
  0x2b   : > { %1010 = vmatprep.subr.bf16.mxu0 %v1009_v7 }
  0x2c   : > { %1027 = vmatpush3.bf16.msra.mxu1 %v1007_v6 }
  0x2d   : > { %1020 = vmatprep.subr.bf16.mxu1 %v1009_v7 }
  0x2e   : > { %1012 = vmatpush3.bf16.msra.mxu0 %v1011_v10 }
  0x30   : > { %1028 = vmatpush3.bf16.msra.mxu1 %v1011_v10 }
  0xe4   : > { %v412_v21 = vpop.f32.mrb[0].mxu0 }
  0xe5   : > { %v413_v22 = vadd.f32 %v412_v21, %v335_v18  ;;  %v414_v23 = vpop.f32.mrb[1].mxu0 }
  0xe6   : > { %v415_v24 = vadd.f32 %v414_v23, %v339_v19  ;;  %v506_v27 = vpop.f32.mrb[0].mxu1 }
  0xe7   : > { %v508_v30 = vpop.f32.mrb[1].mxu1  ;;  %v507_v39 = vadd.f32 %v506_v27, %v430_v31 }
  0xe8   : > { %v513_v28 = vcombine.low %v413_v22, %v415_v24  ;;  %v514_v29 = vcombine.high %v413_v22, %v415_v24  ;;  %v509_v40 = vadd.f32 %v508_v30, %v434_v32 }
  0xea   : > { %v521_v33 = vrot.slane %v513_v28, %v520_v25  ;;  %v528_v34 = vrot.slane %v514_v29, %v520_v25 }
  0xec   : > { %v529_v35 = vcombine.high %v521_v33, %v521_v33  ;;  %v530_v36 = vcombine.high %v528_v34, %v528_v34  ;;  %v537_v37 = vrot.slane %v521_v33, %v520_v25  ;;  %v544_v38 = vrot.slane %v528_v34, %v520_v25  ;;  %v905_v33 = vld [vmem:[%s1344_s7] ss:$0 sm:$0xff] }
  0xee   : > { %v551_v41 = vrot.slane %v529_v35, %v520_v25  ;;  %v558_v42 = vrot.slane %v530_v36, %v520_v25  ;;  %v559_v43 = vcombine.high %v537_v37, %v537_v37  ;;  %v560_v44 = vcombine.high %v544_v38, %v544_v38 }
  0xef   : > { %v566_v45 = vrot.slane %v537_v37, %v1287_v13  ;;  %v570_v46 = vrot.slane %v537_v37, %v1292_v15  ;;  %v598_v47 = vrot.slane %v544_v38, %v1287_v13  ;;  %v602_v48 = vrot.slane %v544_v38, %v1292_v15 }
  0xf0   : > { %v561_v49 = vcombine.high %v551_v41, %v551_v41  ;;  %v562_v50 = vcombine.high %v558_v42, %v558_v42  ;;  %v574_v51 = vrot.slane %v551_v41, %v1287_v13  ;;  %v578_v52 = vrot.slane %v551_v41, %v1292_v15 }
  0xf1   : > { %v582_v53 = vrot.slane %v559_v43, %v1287_v13  ;;  %v586_v54 = vrot.slane %v559_v43, %v1292_v15  ;;  %v606_v55 = vrot.slane %v558_v42, %v1287_v13  ;;  %v610_v56 = vrot.slane %v558_v42, %v1292_v15 }
  0xf2   : > { %v590_v57 = vrot.slane %v561_v49, %v1287_v13  ;;  %v594_v58 = vrot.slane %v561_v49, %v1292_v15  ;;  %v614_v59 = vrot.slane %v560_v44, %v1287_v13  ;;  %v618_v60 = vrot.slane %v560_v44, %v1292_v15 }
  0xf3   : > { %v622_v61 = vrot.slane %v562_v50, %v1287_v13  ;;  %v626_v62 = vrot.slane %v562_v50, %v1292_v15  ;;  %v643_v63 = vadd.f32 %v566_v45, %v507_v39  ;;  %v651_v0 = vadd.f32 %v598_v47, %v507_v39 }
  0xf4   : > { %v644_v1 = vadd.f32 %v570_v46, %v509_v40  ;;  %v652_v2 = vadd.f32 %v602_v48, %v509_v40  ;;  %v646_v3 = vadd.f32 %v578_v52, %v509_v40  ;;  %v654_v4 = vadd.f32 %v610_v56, %v509_v40 }
  0xf5   : > { %1039 = vtanh.f32 %v643_v63  ;;  %v645_v5 = vadd.f32 %v574_v51, %v507_v39  ;;  %v653_v6 = vadd.f32 %v606_v55, %v507_v39  ;;  %v648_v7 = vadd.f32 %v586_v54, %v509_v40 }
  0xf6   : > { %1041 = vtanh.f32 %v651_v0  ;;  %v656_v8 = vadd.f32 %v618_v60, %v509_v40  ;;  %v647_v9 = vadd.f32 %v582_v53, %v507_v39  ;;  %v655_v10 = vadd.f32 %v614_v59, %v507_v39 }
  0xf7   : > { %1043 = vtanh.f32 %v644_v1  ;;  %v650_v11 = vadd.f32 %v594_v58, %v509_v40  ;;  %v658_v12 = vadd.f32 %v626_v62, %v509_v40  ;;  %v649_v13 = vadd.f32 %v590_v57, %v507_v39 }
  0xf8   : > { %1045 = vtanh.f32 %v652_v2  ;;  %v657_v14 = vadd.f32 %v622_v61, %v507_v39 }
  0xf9   : > { %1047 = vtanh.f32 %v646_v3 }
  0xfa   : > { %1049 = vtanh.f32 %v654_v4 }
  0xfb   : > { %1051 = vtanh.f32 %v645_v5 }
  0xfc   : > { %1053 = vtanh.f32 %v653_v6 }
  0xfd   : > { %1055 = vtanh.f32 %v648_v7 }
  0xfe   : > { %1057 = vtanh.f32 %v656_v8 }
  0xff   : > { %v1040_v15 = vpop.eup %1039  ;;  %1059 = vtanh.f32 %v647_v9 }
 0x100   : > { %v1042_v16 = vpop.eup %1041  ;;  %1061 = vtanh.f32 %v655_v10 }
 0x101   : > { %v1044_v17 = vpop.eup %1043  ;;  %1063 = vtanh.f32 %v650_v11 }
 0x102   : > { %v1046_v18 = vpop.eup %1045  ;;  %778 = vmatprep.mubr.f32.mxu0 %v1044_v17  ;;  %1065 = vtanh.f32 %v658_v12 }
 0x103   : > { %v1048_v19 = vpop.eup %1047  ;;  %798 = vmatprep.mubr.f32.mxu1 %v1046_v18  ;;  %779 = vmatmul.mubr.f32.vlgmr.msra.gmra.mrb[2].mxu0 %v1040_v15  ;;  %1067 = vtanh.f32 %v649_v13 }
 0x104   : > { %v1050_v20 = vpop.eup %1049  ;;  %799 = vmatmul.mubr.f32.vlgmr.msra.gmra.mrb[2].mxu1 %v1042_v16  ;;  %783 = vmatprep.mubr.f32.mxu0 %v1048_v19  ;;  %1069 = vtanh.f32 %v657_v14 }
 0x105   : > { %v1052_v21 = vpop.eup %1051  ;;  %803 = vmatprep.mubr.f32.mxu1 %v1050_v20 }
 0x106   : > { %v1054_v22 = vpop.eup %1053 }
 0x107   : > { %v1056_v23 = vpop.eup %1055  ;;  %784 = vmatmul.mubr.f32.gmra.mrb[4].mxu0 %v1052_v21 }
 0x108   : > { %v1058_v24 = vpop.eup %1057  ;;  %804 = vmatmul.mubr.f32.gmra.mrb[4].mxu1 %v1054_v22  ;;  %788 = vmatprep.mubr.f32.mxu0 %v1056_v23 }
 0x109   : > { %v1060_v25 = vpop.eup %1059  ;;  %808 = vmatprep.mubr.f32.mxu1 %v1058_v24 }
 0x10a   : > { %v1062_v26 = vpop.eup %1061 }
 0x10b   : > { %v1064_v27 = vpop.eup %1063  ;;  %789 = vmatmul.mubr.f32.gmra.mrb[6].mxu0 %v1060_v25 }
 0x10c   : > { %v1066_v28 = vpop.eup %1065  ;;  %809 = vmatmul.mubr.f32.gmra.mrb[6].mxu1 %v1062_v26  ;;  %793 = vmatprep.mubr.f32.mxu0 %v1064_v27 }
 0x10d   : > { %813 = vmatprep.mubr.f32.mxu1 %v1066_v28  ;;  %v1068_v29 = vpop.eup %1067 }
 0x10e   : > { %v1070_v30 = vpop.eup %1069 }
 0x10f   : > { %794 = vmatmul.mubr.f32.gmra.mrb[8].mxu0 %v1068_v29 }
 0x110   : > { %814 = vmatmul.mubr.f32.gmra.mrb[8].mxu1 %v1070_v30 }
 0x1d6   : > { %v941_v31 = vpop.f32.mrb[2].mxu0 }
 0x1d7   : > { %v953_v32 = vpop.f32.mrb[2].mxu1  ;;  %v942_v34 = vpop.f32.mrb[3].mxu0 }
 0x1d8   : > { %v943_v35 = vadd.f32 %v942_v34, %v941_v31  ;;  %v954_v36 = vpop.f32.mrb[3].mxu1 }
 0x1d9   : > { %v955_v37 = vadd.f32 %v954_v36, %v953_v32 }
 0x1da   : > { %v781_v38 = vadd.f32 %v943_v35, %v905_v33  ;;  %v944_v39 = vpop.f32.mrb[4].mxu0 }
 0x1db   : > { %v801_v40 = vadd.f32 %v955_v37, %v905_v33  ;;  %v956_v41 = vpop.f32.mrb[4].mxu1  ;;  %v945_v42 = vpop.f32.mrb[5].mxu0 }
 0x1dc   : > { %819 = vst [vmem:[%s1324_s21] sm:$0xff] %v781_v38  ;;  %v946_v43 = vadd.f32 %v945_v42, %v944_v39  ;;  %v957_v44 = vpop.f32.mrb[5].mxu1 }
 0x1dd   : > { %823 = vst [vmem:[%s1324_s21 + $0x20] sm:$0xff] %v801_v40  ;;  %v958_v45 = vadd.f32 %v957_v44, %v956_v41 }
 0x1de   : > { %v786_v46 = vadd.f32 %v946_v43, %v905_v33  ;;  %v947_v47 = vpop.f32.mrb[6].mxu0 }
 0x1df   : > { %v806_v48 = vadd.f32 %v958_v45, %v905_v33  ;;  %v959_v49 = vpop.f32.mrb[6].mxu1  ;;  %v948_v50 = vpop.f32.mrb[7].mxu0 }
 0x1e0   : > { %820 = vst [vmem:[%s1324_s21 + $0x8] sm:$0xff] %v786_v46  ;;  %v949_v51 = vadd.f32 %v948_v50, %v947_v47  ;;  %v960_v52 = vpop.f32.mrb[7].mxu1 }
 0x1e1   : > { %824 = vst [vmem:[%s1324_s21 + $0x28] sm:$0xff] %v806_v48  ;;  %v961_v53 = vadd.f32 %v960_v52, %v959_v49 }
 0x1e2   : > { %v791_v54 = vadd.f32 %v949_v51, %v905_v33  ;;  %v950_v55 = vpop.f32.mrb[8].mxu0 }
 0x1e3   : > { %v811_v56 = vadd.f32 %v961_v53, %v905_v33  ;;  %v962_v57 = vpop.f32.mrb[8].mxu1  ;;  %v951_v58 = vpop.f32.mrb[9].mxu0 }
 0x1e4   : > { %821 = vst [vmem:[%s1324_s21 + $0x10] sm:$0xff] %v791_v54  ;;  %v952_v59 = vadd.f32 %v951_v58, %v950_v55  ;;  %v963_v60 = vpop.f32.mrb[9].mxu1 }
 0x1e5   : > { %825 = vst [vmem:[%s1324_s21 + $0x30] sm:$0xff] %v811_v56  ;;  %v964_v61 = vadd.f32 %v963_v60, %v962_v57 }
 0x1e6   : > { %v796_v62 = vadd.f32 %v952_v59, %v905_v33 }
 0x1e7   : > { %v816_v63 = vadd.f32 %v964_v61, %v905_v33 }
 0x1e8   : > { %822 = vst [vmem:[%s1324_s21 + $0x18] sm:$0xff] %v796_v62 }
 0x1e9   : > { %826 = vst [vmem:[%s1324_s21 + $0x38] sm:$0xff] %v816_v63 }
 0x1ea PF: > { %s18_s27 = sadd.s32 1, %s1077_s27  }
 0x1eb   : > { %p15_p4 = scmp.ge.s32.totalorder %s18_s27, 4  }
 0x1ed   :  { %17 = sbr.rel (!%p15_p4) target bundleno = 1 (0x1), region = 85 }

// kernel: rnnt_forward.3
= control target key start
LH: loop header
LB: loop body
LE: loop exit
PB: predicated region body
PF: predicated region fallthrough
CT: control target
= control target key end

     0   :  { %v1529_v0 = vmov 0.0|0.0   ;;  %vm1530_vm0 = vmmov 0   ;;  %v1531_v4 = vmov 0.0   ;;  %vm27_vm1 = vcmask 130048   ;;  %s1534_s30 = smov 32   ;;  %s1705_s1 = inlined_call_operand.vmem [shape: f32[16,128], index: 1, kind: input, shape index: {}]   ;;  %s1706_s2 = inlined_call_operand.vmem [shape: f32[32,128], index: 2, kind: input, shape index: {}]   ;;  %s1707_s0 = inlined_call_operand.vmem [shape: f32[2,8,16], index: 0, kind: input, shape index: {}]   ;;  %s1708_s3 = inlined_call_operand.vmem [shape: f32[1,128], index: 3, kind: input, shape index: {}]   ;;  %s1709_s4 = inlined_call_operand.vmem [shape: f32[2,8,32], index: 4, kind: output, shape index: {}]  }
   0x1   :  { %1405 = vmatprep.subr.bf16.mxu0 %v1529_v0  ;;  %1408 = vmatprep.subr.bf16.mxu1 %v1529_v0  ;;  %v17_v1 = vld [vmem:[%s1705_s1] sm:$0xff]  ;;  %v18_v2 = vld [vmem:[%s1705_s1 + $0x8] sm:$0xff]  ;;  %v310_v10 = vld [vmem:[%s1706_s2 + $0x10] sm:$0xff]  ;;  %v1532_v13 = vmov 1966171168   ;;  %v106_v15 = vlaneseq  ;;  %vm416_vm2 = vcmask 254976  }
   0x2   :  { %v1406_v3 = vpack.c.bf16 %v18_v2, %v17_v1  ;;  %1307 = vmatprep.mubr.msk.f32.mxu0 %vm1530_vm0, %v1531_v4  ;;  %1314 = vmatprep.mubr.msk.f32.mxu1 %vm1530_vm0, %v1531_v4  ;;  %v308_v5 = vld [vmem:[%s1706_s2] sm:$0xff]  ;;  %v309_v6 = vld [vmem:[%s1706_s2 + $0x8] sm:$0xff]  ;;  %v311_v11 = vld [vmem:[%s1706_s2 + $0x18] sm:$0xff]  ;;  %v104_v14 = vunpack.c.l.s4 %v1532_v13  ;;  %vm313_vm3 = vcmask 261120   ;;  %vm1170_vm4 = vcmask 1041409  }
   0x3   :  { %v20_v7 = vld [vmem:[%s1707_s0] sm:$0xff]  ;;  %v1235_v8 = vld [vmem:[%s1707_s0 + $0x8] sm:$0xff]  ;;  %v1584_v9 = vpack.c.bf16 %v309_v6, %v308_v5  ;;  %v1595_v12 = vpack.c.bf16 %v311_v11, %v310_v10  ;;  %v107_v17 = vshrl.u32 %v106_v15, 7  ;;  %vm1173_vm5 = vcmask 1042434  }
   0x4   :  { %1407 = vmatpush3.bf16.msra.mxu0 %v1406_v3  ;;  %1410 = vmatpush3.bf16.msra.mxu1 %v1406_v3  ;;  %v105_v16 = vunpack.c.0.s8 %v104_v14  ;;  %v1229_v18 = vld [vmem:[%s1708_s3] ss:$0 sm:$0xff]  ;;  %s1533_s3 = smov 64   ;;  %vm1176_vm6 = vcmask 1043459   ;;  %vm1179_vm7 = vcmask 1044484   ;;  %vm1182_vm8 = vcmask 1045509  }
   0x5   :  { %1411 = vmatprep.subr.bf16.mxu0 %v1529_v0  ;;  %1417 = vmatprep.subr.bf16.mxu1 %v1529_v0  ;;  %vm1185_vm9 = vcmask 1046534   ;;  %vm1188_vm10 = vcmask 1047559  }
   0x6   :  { %v108_v19 = vsub.s32 %v105_v16, %v107_v17 }
   0x7   :  { %1308 = vmatmul.mubr.msk.f32.vlgmr.msra.gmra.mrb[0].mxu0 %vm27_vm1, %v20_v7  ;;  %1315 = vmatmul.mubr.msk.f32.vlgmr.msra.gmra.mrb[0].mxu1 %vm27_vm1, %v1235_v8 }
   0x8   :  { %1413 = vmatpush3.bf16.msra.mxu0 %v1584_v9  ;;  %1325 = vmatprep.mubr.msk.f32.mxu0 %vm1530_vm0, %v1531_v4 }
   0x9   :  { %1414 = vmatprep.subr.bf16.mxu0 %v1529_v0  ;;  %1419 = vmatpush3.bf16.msra.mxu1 %v1584_v9 }
   0xa   :  { %1420 = vmatprep.subr.bf16.mxu1 %v1529_v0  ;;  %1336 = vmatprep.mubr.msk.f32.mxu1 %vm1530_vm0, %v1531_v4 }
   0xc   :  { %1416 = vmatpush3.bf16.msra.mxu0 %v1595_v12 }
   0xd   :  { %1422 = vmatpush3.bf16.msra.mxu1 %v1595_v12  ;;  %1423 = vmatprep.subr.bf16.mxu0 %v1529_v0 }
   0xe   :  { %1429 = vmatprep.subr.bf16.mxu1 %v1529_v0 }
   0xf   :  { %1326 = vmatmul.mubr.f32.vlgmr.msra.gmra.mrb[2].mxu0 %v1531_v4 }
  0x10   :  { %1425 = vmatpush3.bf16.msra.mxu0 %v1584_v9  ;;  %1347 = vmatprep.mubr.msk.f32.mxu0 %vm1530_vm0, %v1531_v4 }
  0x11   :  { %1426 = vmatprep.subr.bf16.mxu0 %v1529_v0 }
  0x14   :  { %1428 = vmatpush3.bf16.msra.mxu0 %v1595_v12 }
  0x15   :  { %1435 = vmatprep.subr.bf16.mxu0 %v1529_v0 }
  0xda   :  { %v97_v20 = vpop.f32.mrb[0].mxu0  ;;  %v238_v21 = vpop.f32.mrb[0].mxu1 }
  0xdb   :  { %v98_v22 = vadd.f32 %v1229_v18, %v97_v20  ;;  %v239_v23 = vadd.f32 %v1229_v18, %v238_v21  ;;  %v1309_v24 = vpop.f32.mrb[1].mxu0  ;;  %v1316_v25 = vpop.f32.mrb[1].mxu1 }
  0xdd   :  { %v102_v26 = vcombine.high %v98_v22, %v98_v22  ;;  %v109_v27 = vrot.slane %v98_v22, %v108_v19  ;;  %v243_v28 = vcombine.high %v239_v23, %v239_v23  ;;  %v250_v29 = vrot.slane %v239_v23, %v108_v19 }
  0xdf   :  { %v116_v30 = vrot.slane %v102_v26, %v108_v19  ;;  %v117_v31 = vcombine.high %v109_v27, %v109_v27  ;;  %v125_v32 = vrot.slane %v109_v27, %v108_v19  ;;  %1231 = vst.sshfl [vmem:[#allocation2] sm:$0x1 pattern:$0x73625140] %v109_v27  ;;  %v257_v33 = vrot.slane %v243_v28, %v108_v19 }
  0xe0   :  { %1237 = vst.sshfl [vmem:[#allocation2 + $0x1] sm:$0x1 pattern:$0x73625140] %v250_v29  ;;  %v258_v34 = vcombine.high %v250_v29, %v250_v29  ;;  %v266_v35 = vrot.slane %v250_v29, %v108_v19 }
  0xe1   :  { %v118_v36 = vcombine.high %v116_v30, %v116_v30  ;;  %v132_v37 = vrot.slane %v116_v30, %v108_v19  ;;  %v139_v38 = vrot.slane %v117_v31, %v108_v19  ;;  %v147_v39 = vcombine.high %v125_v32, %v125_v32  ;;  %1232 = vst.sshfl [vmem:[#allocation2 + $0x2] sm:$0x1 pattern:$0x73625140] %v117_v31 }
  0xe2   :  { %1233 = vst.sshfl [vmem:[#allocation2 + $0x8] sm:$0x1 pattern:$0x73625140] %v116_v30  ;;  %v259_v40 = vcombine.high %v257_v33, %v257_v33  ;;  %v273_v41 = vrot.slane %v257_v33, %v108_v19  ;;  %v280_v42 = vrot.slane %v258_v34, %v108_v19  ;;  %v288_v43 = vcombine.high %v266_v35, %v266_v35  ;;  %v383_v44 = vpop.f32.mrb[2].mxu0 }
  0xe3   :  { %1239 = vst.sshfl [vmem:[#allocation2 + $0x9] sm:$0x1 pattern:$0x73625140] %v257_v33  ;;  %v146_v45 = vrot.slane %v118_v36, %v108_v19  ;;  %v148_v46 = vcombine.high %v132_v37, %v132_v37  ;;  %v149_v47 = vcombine.high %v139_v38, %v139_v38  ;;  %161 = vst [vmem:[#allocation2 + $0x4] sm:$0x1] %v147_v39 }
  0xe4   :  { %1238 = vst.sshfl [vmem:[#allocation2 + $0x3] sm:$0x1 pattern:$0x73625140] %v258_v34  ;;  %v1327_v48 = vpop.f32.mrb[3].mxu0  ;;  %v287_v49 = vrot.slane %v259_v40, %v108_v19  ;;  %v289_v50 = vcombine.high %v273_v41, %v273_v41  ;;  %v290_v51 = vcombine.high %v280_v42, %v280_v42 }
  0xe5   :  { %1234 = vst.sshfl [vmem:[#allocation2 + $0xa] sm:$0x1 pattern:$0x73625140] %v118_v36  ;;  %302 = vst [vmem:[#allocation2 + $0x5] sm:$0x1] %v288_v43  ;;  %v150_v52 = vcombine.high %v146_v45, %v146_v45 }
  0xe6   :  { %1240 = vst.sshfl [vmem:[#allocation2 + $0xb] sm:$0x1 pattern:$0x73625140] %v259_v40  ;;  %162 = vst [vmem:[#allocation2 + $0x6] sm:$0x1] %v149_v47  ;;  %v291_v53 = vcombine.high %v287_v49, %v287_v49 }
  0xe7   :  { %165 = vst [vmem:[#allocation2 + $0xc] sm:$0x1] %v148_v46  ;;  %303 = vst [vmem:[#allocation2 + $0x7] sm:$0x1] %v290_v51  ;;  %v312_v54 = vld [vmem:[#allocation2] sm:$0x3] }
  0xe8   :  { %306 = vst [vmem:[#allocation2 + $0xd] sm:$0x1] %v289_v50  ;;  %166 = vst [vmem:[#allocation2 + $0xe] sm:$0x1] %v150_v52  ;;  %v387_v55 = vadd.f32 %v383_v44, %v312_v54 }
  0xe9   :  { %307 = vst [vmem:[#allocation2 + $0xf] sm:$0x1] %v291_v53 }
  0xea   :  { %1465 = vtanh.f32 %v387_v55  ;;  %v1241_v57 = vmul.f32 -1.442695, %v387_v55 }
  0xeb   :  { %v419_v8 = vld [vmem:[#allocation2 + $0x2] sm:$0x3] }
  0xec   :  { %1467 = vpow2.f32 %v1241_v57  ;;  %v524_v28 = vld [vmem:[#allocation2 + $0x4] sm:$0x3] }
  0xee   :  { %v629_v46 = vld [vmem:[#allocation2 + $0x6] sm:$0x3] }
  0xf4   :  { %v1466_v56 = vpop.eup %1465 }
  0xf5   :  { %397 = vrot.lane.b32.xlu0 %v1466_v56, %s1533_s3 }
  0xf6   :  { %v1468_v58 = vpop.eup %1467 }
  0xf7   :  { %v391_v59 = vadd.f32 1.0, %v1468_v58 }
  0xf9   :  { %1469 = vrcp.f32 %v391_v59 }
 0x103   :  { %v1470_v60 = vpop.eup %1469 }
 0x104   :  { %v395_v63 = vmul.f32 0.0, %v1470_v60 }
 0x167   :  { %v398_v61 = vpop.permute.xlu0 %397 }
 0x168   :  { %v400_v62 = vmul.f32 %v1470_v60, %v398_v61 }
 0x16a   :  { %402 = vrot.lane.b32.xlu0 %v400_v62, %s1534_s30 }
 0x1dc   :  { %v403_v1 = vpop.permute.xlu0 %402 }
 0x1dd   :  { %v405_v2 = vadd.f32 %v403_v1, %v395_v63  ;;  %v734_v1 = vld [vmem:[#allocation2 + $0x8] sm:$0x3] }
 0x1df   :  { %1471 = vtanh.f32 %v405_v2 }
 0x1e9   :  { %v1472_v3 = vpop.eup %1471 }
 0x1ea   :  { %408 = vrot.lane.b32.xlu1 %v1472_v3, %s1533_s3 }
 0x25c   :  { %v409_v5 = vpop.permute.xlu1 %408 }
 0x25d   :  { %v411_v6 = vmul.f32 %v1470_v60, %v409_v5 }
 0x25f   :  { %413 = vrot.lane.b32.xlu1 %v411_v6, %s1534_s30 }
 0x2d1   :  { %v414_v7 = vpop.permute.xlu1 %413 }
 0x2d2   :  { %417 = vst.msk [vmem:[#allocation3] sm:$0x3] %vm416_vm2, %v414_v7  ;;  %1337 = vmatmul.mubr.msk.f32.vlgmr.msra.gmra.mrb[2].mxu1 %vm313_vm3, %v414_v7 }
 0x2d3   :  { %1431 = vmatpush3.bf16.msra.mxu1 %v1584_v9  ;;  %1358 = vmatprep.mubr.msk.f32.mxu1 %vm1530_vm0, %v1531_v4 }
 0x2d4   :  { %1432 = vmatprep.subr.bf16.mxu1 %v1529_v0 }
 0x2d7   :  { %1434 = vmatpush3.bf16.msra.mxu1 %v1595_v12 }
 0x2d8   :  { %1441 = vmatprep.subr.bf16.mxu1 %v1529_v0 }
 0x3a5   :  { %v488_v10 = vpop.f32.mrb[2].mxu1 }
 0x3a6   :  { %v492_v11 = vadd.f32 %v488_v10, %v419_v8  ;;  %v1338_v13 = vpop.f32.mrb[3].mxu1 }
 0x3a8   :  { %1473 = vtanh.f32 %v492_v11  ;;  %v1243_v15 = vmul.f32 -1.442695, %v492_v11 }
 0x3aa   :  { %1475 = vpow2.f32 %v1243_v15 }
 0x3b2   :  { %v1474_v14 = vpop.eup %1473 }
 0x3b3   :  { %502 = vrot.lane.b32.xlu0 %v1474_v14, %s1533_s3 }
 0x3b4   :  { %v1476_v16 = vpop.eup %1475 }
 0x3b5   :  { %v496_v17 = vadd.f32 1.0, %v1476_v16 }
 0x3b7   :  { %1477 = vrcp.f32 %v496_v17 }
 0x3c1   :  { %v1478_v18 = vpop.eup %1477 }
 0x3c2   :  { %v500_v21 = vmul.f32 %v1478_v18, %v405_v2 }
 0x425   :  { %v503_v19 = vpop.permute.xlu0 %502 }
 0x426   :  { %v505_v20 = vmul.f32 %v1478_v18, %v503_v19 }
 0x428   :  { %507 = vrot.lane.b32.xlu1 %v505_v20, %s1534_s30 }
 0x49a   :  { %v508_v22 = vpop.permute.xlu1 %507 }
 0x49b   :  { %v510_v23 = vadd.f32 %v508_v22, %v500_v21  ;;  %v839_v22 = vld [vmem:[#allocation2 + $0xa] sm:$0x3] }
 0x49d   :  { %1479 = vtanh.f32 %v510_v23 }
 0x4a7   :  { %v1480_v24 = vpop.eup %1479 }
 0x4a8   :  { %513 = vrot.lane.b32.xlu0 %v1480_v24, %s1533_s3 }
 0x51a   :  { %v514_v25 = vpop.permute.xlu0 %513 }
 0x51b   :  { %v516_v26 = vmul.f32 %v1478_v18, %v514_v25 }
 0x51d   :  { %518 = vrot.lane.b32.xlu1 %v516_v26, %s1534_s30 }
 0x58f   :  { %v519_v27 = vpop.permute.xlu1 %518 }
 0x590   :  { %522 = vst.msk [vmem:[#allocation3 + $0x2] sm:$0x3] %vm416_vm2, %v519_v27  ;;  %1348 = vmatmul.mubr.msk.f32.vlgmr.msra.gmra.mrb[4].mxu0 %vm313_vm3, %v519_v27 }
 0x591   :  { %1437 = vmatpush3.bf16.msra.mxu0 %v1584_v9  ;;  %1369 = vmatprep.mubr.msk.f32.mxu0 %vm1530_vm0, %v1531_v4 }
 0x592   :  { %1438 = vmatprep.subr.bf16.mxu0 %v1529_v0 }
 0x595   :  { %1440 = vmatpush3.bf16.msra.mxu0 %v1595_v12 }
 0x596   :  { %1447 = vmatprep.subr.bf16.mxu0 %v1529_v0 }
 0x663   :  { %v593_v29 = vpop.f32.mrb[4].mxu0 }
 0x664   :  { %v597_v30 = vadd.f32 %v593_v29, %v524_v28  ;;  %v1349_v31 = vpop.f32.mrb[5].mxu0 }
 0x666   :  { %1481 = vtanh.f32 %v597_v30  ;;  %v1245_v33 = vmul.f32 -1.442695, %v597_v30 }
 0x668   :  { %1483 = vpow2.f32 %v1245_v33 }
 0x670   :  { %v1482_v32 = vpop.eup %1481 }
 0x671   :  { %607 = vrot.lane.b32.xlu0 %v1482_v32, %s1533_s3 }
 0x672   :  { %v1484_v34 = vpop.eup %1483 }
 0x673   :  { %v601_v35 = vadd.f32 1.0, %v1484_v34 }
 0x675   :  { %1485 = vrcp.f32 %v601_v35 }
 0x67f   :  { %v1486_v36 = vpop.eup %1485 }
 0x680   :  { %v605_v39 = vmul.f32 %v1486_v36, %v510_v23 }
 0x6e3   :  { %v608_v37 = vpop.permute.xlu0 %607 }
 0x6e4   :  { %v610_v38 = vmul.f32 %v1486_v36, %v608_v37 }
 0x6e6   :  { %612 = vrot.lane.b32.xlu1 %v610_v38, %s1534_s30 }
 0x758   :  { %v613_v40 = vpop.permute.xlu1 %612 }
 0x759   :  { %v615_v41 = vadd.f32 %v613_v40, %v605_v39 }
 0x75b   :  { %1487 = vtanh.f32 %v615_v41 }
 0x765   :  { %v1488_v42 = vpop.eup %1487 }
 0x766   :  { %618 = vrot.lane.b32.xlu0 %v1488_v42, %s1533_s3 }
 0x7d8   :  { %v619_v43 = vpop.permute.xlu0 %618 }
 0x7d9   :  { %v621_v44 = vmul.f32 %v1486_v36, %v619_v43  ;;  %v944_v36 = vld [vmem:[#allocation2 + $0xc] sm:$0x3] }
 0x7db   :  { %623 = vrot.lane.b32.xlu1 %v621_v44, %s1534_s30 }
 0x84d   :  { %v624_v45 = vpop.permute.xlu1 %623 }
 0x84e   :  { %627 = vst.msk [vmem:[#allocation3 + $0x4] sm:$0x3] %vm416_vm2, %v624_v45  ;;  %1359 = vmatmul.mubr.msk.f32.vlgmr.msra.gmra.mrb[4].mxu1 %vm313_vm3, %v624_v45 }
 0x84f   :  { %1443 = vmatpush3.bf16.msra.mxu1 %v1584_v9  ;;  %1380 = vmatprep.mubr.msk.f32.mxu1 %vm1530_vm0, %v1531_v4 }
 0x850   :  { %1444 = vmatprep.subr.bf16.mxu1 %v1529_v0 }
 0x853   :  { %1446 = vmatpush3.bf16.msra.mxu1 %v1595_v12 }
 0x854   :  { %1453 = vmatprep.subr.bf16.mxu1 %v1529_v0 }
 0x921   :  { %v698_v47 = vpop.f32.mrb[4].mxu1 }
 0x922   :  { %v702_v48 = vadd.f32 %v698_v47, %v629_v46  ;;  %v1360_v49 = vpop.f32.mrb[5].mxu1 }
 0x924   :  { %1489 = vtanh.f32 %v702_v48  ;;  %v1247_v51 = vmul.f32 -1.442695, %v702_v48 }
 0x926   :  { %1491 = vpow2.f32 %v1247_v51 }
 0x92e   :  { %v1490_v50 = vpop.eup %1489 }
 0x92f   :  { %712 = vrot.lane.b32.xlu0 %v1490_v50, %s1533_s3 }
 0x930   :  { %v1492_v52 = vpop.eup %1491 }
 0x931   :  { %v706_v53 = vadd.f32 1.0, %v1492_v52 }
 0x933   :  { %1493 = vrcp.f32 %v706_v53 }
 0x93d   :  { %v1494_v54 = vpop.eup %1493 }
 0x93e   :  { %v710_v57 = vmul.f32 %v1494_v54, %v615_v41 }
 0x9a1   :  { %v713_v55 = vpop.permute.xlu0 %712 }
 0x9a2   :  { %v715_v56 = vmul.f32 %v1494_v54, %v713_v55 }
 0x9a4   :  { %717 = vrot.lane.b32.xlu1 %v715_v56, %s1534_s30 }
 0xa16   :  { %v718_v58 = vpop.permute.xlu1 %717 }
 0xa17   :  { %v720_v59 = vadd.f32 %v718_v58, %v710_v57 }
 0xa19   :  { %1495 = vtanh.f32 %v720_v59 }
 0xa23   :  { %v1496_v60 = vpop.eup %1495 }
 0xa24   :  { %723 = vrot.lane.b32.xlu0 %v1496_v60, %s1533_s3 }
 0xa96   :  { %v724_v61 = vpop.permute.xlu0 %723 }
 0xa97   :  { %v726_v62 = vmul.f32 %v1494_v54, %v724_v61  ;;  %v1049_v54 = vld [vmem:[#allocation2 + $0xe] sm:$0x3] }
 0xa99   :  { %728 = vrot.lane.b32.xlu1 %v726_v62, %s1534_s30 }
 0xb0b   :  { %v729_v63 = vpop.permute.xlu1 %728 }
 0xb0c   :  { %732 = vst.msk [vmem:[#allocation3 + $0x6] sm:$0x3] %vm416_vm2, %v729_v63  ;;  %1370 = vmatmul.mubr.msk.f32.vlgmr.msra.gmra.mrb[6].mxu0 %vm313_vm3, %v729_v63 }
 0xb0d   :  { %1449 = vmatpush3.bf16.msra.mxu0 %v1584_v9  ;;  %1391 = vmatprep.mubr.msk.f32.mxu0 %vm1530_vm0, %v1531_v4 }
 0xb0e   :  { %1450 = vmatprep.subr.bf16.mxu0 %v1529_v0 }
 0xb11   :  { %1452 = vmatpush3.bf16.msra.mxu0 %v1595_v12 }
 0xbdf   :  { %v803_v2 = vpop.f32.mrb[6].mxu0 }
 0xbe0   :  { %v807_v3 = vadd.f32 %v803_v2, %v734_v1  ;;  %v1371_v5 = vpop.f32.mrb[7].mxu0 }
 0xbe2   :  { %1497 = vtanh.f32 %v807_v3  ;;  %v1249_v7 = vmul.f32 -1.442695, %v807_v3 }
 0xbe4   :  { %1499 = vpow2.f32 %v1249_v7 }
 0xbec   :  { %v1498_v6 = vpop.eup %1497 }
 0xbed   :  { %817 = vrot.lane.b32.xlu0 %v1498_v6, %s1533_s3 }
 0xbee   :  { %v1500_v8 = vpop.eup %1499 }
 0xbef   :  { %v811_v10 = vadd.f32 1.0, %v1500_v8 }
 0xbf1   :  { %1501 = vrcp.f32 %v811_v10  ;;  %v1154_v10 = vld [vmem:[#allocation3 + $0x2] sm:$0x1] }
 0xbfb   :  { %v1502_v11 = vpop.eup %1501 }
 0xbfc   :  { %v815_v15 = vmul.f32 %v1502_v11, %v720_v59 }
 0xc5f   :  { %v818_v13 = vpop.permute.xlu0 %817 }
 0xc60   :  { %v820_v14 = vmul.f32 %v1502_v11, %v818_v13  ;;  %v1155_v13 = vld [vmem:[#allocation3 + $0x4] sm:$0x1] }
 0xc62   :  { %822 = vrot.lane.b32.xlu1 %v820_v14, %s1534_s30  ;;  %v1169_v14 = vrot.slane %v1154_v10, 7 }
 0xcd4   :  { %v823_v16 = vpop.permute.xlu1 %822 }
 0xcd5   :  { %v825_v17 = vadd.f32 %v823_v16, %v815_v15  ;;  %v1194_v15 = vld [vmem:[#allocation3 + $0x5] sm:$0x1]  ;;  %v1153_v16 = vld [vmem:[#allocation3] sm:$0x1] }
 0xcd7   :  { %1503 = vtanh.f32 %v825_v17 }
 0xce1   :  { %v1504_v18 = vpop.eup %1503 }
 0xce2   :  { %828 = vrot.lane.b32.xlu0 %v1504_v18, %s1533_s3  ;;  %v1156_v18 = vld [vmem:[#allocation3 + $0x6] sm:$0x1] }
 0xd54   :  { %v829_v19 = vpop.permute.xlu0 %828 }
 0xd55   :  { %v831_v20 = vmul.f32 %v1502_v11, %v829_v19  ;;  %v1193_v11 = vld [vmem:[#allocation3 + $0x3] sm:$0x1]  ;;  %v1195_v19 = vld [vmem:[#allocation3 + $0x7] sm:$0x1] }
 0xd57   :  { %833 = vrot.lane.b32.xlu1 %v831_v20, %s1534_s30 }
 0xdc9   :  { %v834_v21 = vpop.permute.xlu1 %833 }
 0xdca   :  { %837 = vst.msk [vmem:[#allocation3 + $0x8] sm:$0x3] %vm416_vm2, %v834_v21  ;;  %1381 = vmatmul.mubr.msk.f32.vlgmr.msra.gmra.mrb[6].mxu1 %vm313_vm3, %v834_v21  ;;  %v1192_v21 = vld [vmem:[#allocation3 + $0x1] sm:$0x1] }
 0xdcb   :  { %1455 = vmatpush3.bf16.msra.mxu1 %v1584_v9  ;;  %1402 = vmatprep.mubr.msk.f32.mxu1 %vm1530_vm0, %v1531_v4 }
 0xdcc   :  { %1456 = vmatprep.subr.bf16.mxu1 %v1529_v0 }
 0xdcf   :  { %1458 = vmatpush3.bf16.msra.mxu1 %v1595_v12 }
 0xe9d   :  { %v908_v23 = vpop.f32.mrb[6].mxu1 }
 0xe9e   :  { %v912_v24 = vadd.f32 %v908_v23, %v839_v22  ;;  %v1382_v25 = vpop.f32.mrb[7].mxu1  ;;  %v1172_v22 = vrot.slane %v1155_v13, 6  ;;  %v1157_v23 = vld [vmem:[#allocation3 + $0x8] sm:$0x1] }
 0xe9f   :  { %v1210_v25 = vrot.slane %v1194_v15, 6 }
 0xea0   :  { %1505 = vtanh.f32 %v912_v24  ;;  %v1251_v27 = vmul.f32 -1.442695, %v912_v24  ;;  %v1196_v24 = vld [vmem:[#allocation3 + $0x9] sm:$0x1] }
 0xea2   :  { %1507 = vpow2.f32 %v1251_v27 }
 0xeaa   :  { %v1506_v26 = vpop.eup %1505 }
 0xeab   :  { %922 = vrot.lane.b32.xlu0 %v1506_v26, %s1533_s3 }
 0xeac   :  { %v1508_v28 = vpop.eup %1507 }
 0xead   :  { %v916_v29 = vadd.f32 1.0, %v1508_v28  ;;  %v1171_v28 = vsel %vm1170_vm4, %v1169_v14, %v1153_v16 }
 0xeaf   :  { %1509 = vrcp.f32 %v916_v29  ;;  %v1175_v29 = vrot.slane %v1156_v18, 5 }
 0xeb9   :  { %v1510_v9 = vpop.eup %1509 }
 0xeba   :  { %v920_v0 = vmul.f32 %v1510_v9, %v825_v17  ;;  %v1208_v17 = vrot.slane %v1193_v11, 7 }
 0xf1d   :  { %v923_v30 = vpop.permute.xlu0 %922 }
 0xf1e   :  { %v925_v4 = vmul.f32 %v1510_v9, %v923_v30 }
 0xf20   :  { %927 = vrot.lane.b32.xlu1 %v925_v4, %s1534_s30 }
 0xf92   :  { %v928_v12 = vpop.permute.xlu1 %927 }
 0xf93   :  { %v930_v31 = vadd.f32 %v928_v12, %v920_v0  ;;  %v1209_v0 = vsel %vm1170_vm4, %v1208_v17, %v1192_v21  ;;  %v1178_v12 = vrot.slane %v1157_v23, 4 }
 0xf95   :  { %1511 = vtanh.f32 %v930_v31 }
 0xf9f   :  { %v1512_v32 = vpop.eup %1511 }
 0xfa0   :  { %933 = vrot.lane.b32.xlu0 %v1512_v32, %s1533_s3  ;;  %v1174_v32 = vsel %vm1173_vm5, %v1172_v22, %v1171_v28 }
0x1012   :  { %v934_v33 = vpop.permute.xlu0 %933 }
0x1013   :  { %v936_v34 = vmul.f32 %v1510_v9, %v934_v33  ;;  %v1212_v9 = vrot.slane %v1195_v19, 5 }
0x1015   :  { %938 = vrot.lane.b32.xlu1 %v936_v34, %s1534_s30 }
0x1087   :  { %v939_v35 = vpop.permute.xlu1 %938 }
0x1088   :  { %942 = vst.msk [vmem:[#allocation3 + $0xa] sm:$0x3] %vm416_vm2, %v939_v35  ;;  %1392 = vmatmul.mubr.msk.f32.vlgmr.msra.gmra.mrb[8].mxu0 %vm313_vm3, %v939_v35  ;;  %v1211_v35 = vsel %vm1173_vm5, %v1210_v25, %v1209_v0 }
0x108f   :  { %v1158_v26 = vld [vmem:[#allocation3 + $0xa] sm:$0x1]  ;;  %v1197_v27 = vld [vmem:[#allocation3 + $0xb] sm:$0x1] }
0x1090   :  { %v1181_v33 = vrot.slane %v1158_v26, 3  ;;  %v1216_v34 = vrot.slane %v1197_v27, 3 }
0x115b   :  { %v1013_v37 = vpop.f32.mrb[8].mxu0 }
0x115c   :  { %v1017_v38 = vadd.f32 %v1013_v37, %v944_v36  ;;  %v1393_v39 = vpop.f32.mrb[9].mxu0 }
0x115d   :  { %v1213_v39 = vsel %vm1176_vm6, %v1212_v9, %v1211_v35 }
0x115e   :  { %1513 = vtanh.f32 %v1017_v38  ;;  %v1253_v41 = vmul.f32 -1.442695, %v1017_v38  ;;  %v1177_v38 = vsel %vm1176_vm6, %v1175_v29, %v1174_v32 }
0x1160   :  { %1515 = vpow2.f32 %v1253_v41 }
0x1168   :  { %v1514_v40 = vpop.eup %1513 }
0x1169   :  { %1027 = vrot.lane.b32.xlu0 %v1514_v40, %s1533_s3  ;;  %v1180_v40 = vsel %vm1179_vm7, %v1178_v12, %v1177_v38 }
0x116a   :  { %v1516_v42 = vpop.eup %1515 }
0x116b   :  { %v1021_v43 = vadd.f32 1.0, %v1516_v42 }
0x116d   :  { %1517 = vrcp.f32 %v1021_v43 }
0x1177   :  { %v1518_v44 = vpop.eup %1517 }
0x1178   :  { %v1025_v47 = vmul.f32 %v1518_v44, %v930_v31  ;;  %v1214_v31 = vrot.slane %v1196_v24, 4 }
0x117a   :  { %v1215_v41 = vsel %vm1179_vm7, %v1214_v31, %v1213_v39 }
0x11db   :  { %v1028_v45 = vpop.permute.xlu0 %1027 }
0x11dc   :  { %v1030_v46 = vmul.f32 %v1518_v44, %v1028_v45  ;;  %v1217_v45 = vsel %vm1182_vm8, %v1216_v34, %v1215_v41 }
0x11de   :  { %1032 = vrot.lane.b32.xlu1 %v1030_v46, %s1534_s30 }
0x1250   :  { %v1033_v48 = vpop.permute.xlu1 %1032 }
0x1251   :  { %v1035_v49 = vadd.f32 %v1033_v48, %v1025_v47 }
0x1253   :  { %1519 = vtanh.f32 %v1035_v49 }
0x125d   :  { %v1520_v50 = vpop.eup %1519 }
0x125e   :  { %1038 = vrot.lane.b32.xlu0 %v1520_v50, %s1533_s3 }
0x12d0   :  { %v1039_v51 = vpop.permute.xlu0 %1038 }
0x12d1   :  { %v1041_v52 = vmul.f32 %v1518_v44, %v1039_v51  ;;  %v1183_v44 = vsel %vm1182_vm8, %v1181_v33, %v1180_v40 }
0x12d3   :  { %1043 = vrot.lane.b32.xlu1 %v1041_v52, %s1534_s30 }
0x1345   :  { %v1044_v53 = vpop.permute.xlu1 %1043 }
0x1346   :  { %1047 = vst.msk [vmem:[#allocation3 + $0xc] sm:$0x3] %vm416_vm2, %v1044_v53  ;;  %1403 = vmatmul.mubr.msk.f32.vlgmr.msra.gmra.mrb[8].mxu1 %vm313_vm3, %v1044_v53 }
0x134d   :  { %v1159_v30 = vld [vmem:[#allocation3 + $0xc] sm:$0x1]  ;;  %v1198_v4 = vld [vmem:[#allocation3 + $0xd] sm:$0x1] }
0x134e   :  { %v1184_v36 = vrot.slane %v1159_v30, 2  ;;  %v1218_v37 = vrot.slane %v1198_v4, 2 }
0x1350   :  { %v1186_v48 = vsel %vm1185_vm9, %v1184_v36, %v1183_v44 }
0x1419   :  { %v1118_v55 = vpop.f32.mrb[8].mxu1 }
0x141a   :  { %v1122_v56 = vadd.f32 %v1118_v55, %v1049_v54  ;;  %v1404_v57 = vpop.f32.mrb[9].mxu1 }
0x141c   :  { %1521 = vtanh.f32 %v1122_v56  ;;  %v1255_v59 = vmul.f32 -1.442695, %v1122_v56 }
0x141e   :  { %1523 = vpow2.f32 %v1255_v59 }
0x1426   :  { %v1522_v58 = vpop.eup %1521 }
0x1427   :  { %1132 = vrot.lane.b32.xlu0 %v1522_v58, %s1533_s3 }
0x1428   :  { %v1524_v60 = vpop.eup %1523 }
0x1429   :  { %v1126_v61 = vadd.f32 1.0, %v1524_v60 }
0x142b   :  { %1525 = vrcp.f32 %v1126_v61 }
0x1435   :  { %v1526_v62 = vpop.eup %1525 }
0x1436   :  { %v1130_v2 = vmul.f32 %v1526_v62, %v1035_v49  ;;  %v1219_v49 = vsel %vm1185_vm9, %v1218_v37, %v1217_v45 }
0x1499   :  { %v1133_v63 = vpop.permute.xlu0 %1132 }
0x149a   :  { %v1135_v1 = vmul.f32 %v1526_v62, %v1133_v63 }
0x149c   :  { %1137 = vrot.lane.b32.xlu1 %v1135_v1, %s1534_s30 }
0x150e   :  { %v1138_v3 = vpop.permute.xlu1 %1137 }
0x150f   :  { %v1140_v5 = vadd.f32 %v1138_v3, %v1130_v2 }
0x1511   :  { %1527 = vtanh.f32 %v1140_v5 }
0x151b   :  { %v1528_v6 = vpop.eup %1527 }
0x151c   :  { %1143 = vrot.lane.b32.xlu0 %v1528_v6, %s1533_s3 }
0x158e   :  { %v1144_v7 = vpop.permute.xlu0 %1143 }
0x158f   :  { %v1146_v8 = vmul.f32 %v1526_v62, %v1144_v7 }
0x1591   :  { %1148 = vrot.lane.b32.xlu1 %v1146_v8, %s1534_s30 }
0x1603   :  { %v1149_v20 = vpop.permute.xlu1 %1148 }
0x1604   :  { %1152 = vst.msk [vmem:[#allocation3 + $0xe] sm:$0x3] %vm416_vm2, %v1149_v20 }
0x160b   :  { %v1160_v42 = vld [vmem:[#allocation3 + $0xe] sm:$0x1]  ;;  %v1199_v43 = vld [vmem:[#allocation3 + $0xf] sm:$0x1] }
0x160c   :  { %v1187_v46 = vrot.slane %v1160_v42, 1  ;;  %v1220_v47 = vrot.slane %v1199_v43, 1 }
0x160e   :  { %v1189_v50 = vsel %vm1188_vm10, %v1187_v46, %v1186_v48  ;;  %v1221_v51 = vsel %vm1188_vm10, %v1220_v47, %v1219_v49 }
0x160f   :  { %1191 = vst.msk [vmem:[%s1709_s4] sm:$0xff] %vm313_vm3, %v1189_v50  ;;  %1256 = vst.msk [vmem:[%s1709_s4 + $0x8] sm:$0xff] %vm313_vm3, %v1221_v51 }

</bundles_post_ra>
